<compile_context>
chip_gen: v6e
topology: v6e:2x2x1
jax: 0.10.0
libtpu: 0.0.40
codegen_flags: <defaults>
</compile_context>

<pallas_src>
import jax
import jax.numpy as jnp
from jax import lax
from jax.experimental import pallas as pl
from jax.experimental.pallas import tpu as pltpu

LANE = 128


def _round_up(x, m):
    return (x + m - 1) // m * m


# --------------------------------------------------------------------------
# Kernel: one bottleneck block, one image (batch element) per grid step.
# --------------------------------------------------------------------------
def bottleneck_kernel(x_ref, w1_ref, b1_ref, w2_ref, b2_ref, w3_ref, b3_ref,
                      ws_ref, o_ref, pad_ref, patch_ref):
    _, H, W, Cip = x_ref.shape
    Cmp = w1_ref.shape[1]
    Cop = w3_ref.shape[1]

    # ---- zero only the 1-pixel halo of the conv2 pad buffer ---------------
    # (interior [1:H+1, 1:W+1] is fully overwritten below; done every step so
    #  it is megacore-safe — each core owns private, uninitialized scratch)
    zrow = jnp.zeros((1, W + 2, Cmp), jnp.float32)
    zcol = jnp.zeros((H, 1, Cmp), jnp.float32)
    pad_ref[0:1, :, :] = zrow
    pad_ref[H + 1:H + 2, :, :] = zrow
    pad_ref[1:H + 1, 0:1, :] = zcol
    pad_ref[1:H + 1, W + 1:W + 2, :] = zcol

    x = x_ref[...].reshape(H * W, Cip)
    x_bf = x.astype(jnp.bfloat16)

    # ---- conv1: 1x1 (Cin -> Cmid) + bias + ReLU  (bf16 MXU, f32 accum) ----
    y1 = jnp.dot(x_bf, w1_ref[...], preferred_element_type=jnp.float32)
    y1 = jnp.maximum(y1 + b1_ref[...], 0.0)

    # ---- conv2: 3x3, pad=1, stride=1 via im2col + a single MXU matmul -----
    pad_ref[1:H + 1, 1:W + 1, :] = y1.reshape(H, W, Cmp)
    for k in range(9):                      # static unroll: build patch matrix
        ky, kx = divmod(k, 3)
        win = pad_ref[ky:ky + H, kx:kx + W, :].reshape(H * W, Cmp)
        patch_ref[:, k * Cmp:(k + 1) * Cmp] = win.astype(jnp.bfloat16)
    y2 = jnp.dot(patch_ref[...], w2_ref[...], preferred_element_type=jnp.float32)
    y2 = jnp.maximum(y2 + b2_ref[...], 0.0)

    # ---- conv3: 1x1 (Cmid -> Cout) + bias ----------------------------------
    y3 = jnp.dot(y2.astype(jnp.bfloat16), w3_ref[...],
                 preferred_element_type=jnp.float32) + b3_ref[...]

    # ---- shortcut: 1x1 (Cin -> Cout); identity weights when Cin == Cout ----
    sc = jnp.dot(x_bf, ws_ref[...], preferred_element_type=jnp.float32)

    # ---- residual add + final ReLU (f32 elementwise, lane-dense store) -----
    o_ref[...] = jnp.maximum(y3 + sc, 0.0).reshape(1, H, W, Cop)


# --------------------------------------------------------------------------
# Per-block pallas_call wrapper (inputs already channel-padded NHWC).
# --------------------------------------------------------------------------
def bottleneck_block_pallas(x, w1, b1, w2, b2, w3, b3, ws):
    """x: (N, H, W, Cin_pad) f32.  Weights bf16 in matmul layout, biases
    (1, C_pad) f32.  Returns (N, H, W, Cout_pad) f32."""
    N, H, W, Cip = x.shape
    Cmp = w1.shape[1]
    Cop = w3.shape[1]

    full = lambda a: pl.BlockSpec(a.shape, lambda n: (0,) * a.ndim)

    return pl.pallas_call(
        bottleneck_kernel,
        out_shape=jax.ShapeDtypeStruct((N, H, W, Cop), jnp.float32),
        grid=(N,),
        in_specs=[
            pl.BlockSpec((1, H, W, Cip), lambda n: (n, 0, 0, 0)),
            full(w1), full(b1), full(w2), full(b2), full(w3), full(b3),
            full(ws),
        ],
        out_specs=pl.BlockSpec((1, H, W, Cop), lambda n: (n, 0, 0, 0)),
        scratch_shapes=[
            pltpu.VMEM((H + 2, W + 2, Cmp), jnp.float32),    # conv2 pad buffer
            pltpu.VMEM((H * W, 9 * Cmp), jnp.bfloat16),      # im2col patch
        ],
        compiler_params=pltpu.CompilerParams(
            dimension_semantics=("parallel",),
            vmem_limit_bytes=48 * 1024 * 1024,
        ),
    )(x, w1, b1, w2, b2, w3, b3, ws)


# --------------------------------------------------------------------------
# Parameter construction (PyTorch layout) + conversion to kernel layout.
# --------------------------------------------------------------------------
def make_block_params(key, in_d, out_d):
    """Synthetic parameters in PyTorch layout (OIHW convs, 1-D biases)."""
    mid_d = max(out_d // 4, 1)
    ks = jax.random.split(key, 7)
    s = 0.1
    p = dict(
        w1=s * jax.random.normal(ks[0], (mid_d, in_d, 1, 1), jnp.float32),
        b1=s * jax.random.normal(ks[1], (mid_d,), jnp.float32),
        w2=s * jax.random.normal(ks[2], (mid_d, mid_d, 3, 3), jnp.float32),
        b2=s * jax.random.normal(ks[3], (mid_d,), jnp.float32),
        w3=s * jax.random.normal(ks[4], (out_d, mid_d, 1, 1), jnp.float32),
        b3=s * jax.random.normal(ks[5], (out_d,), jnp.float32),
    )
    if in_d != out_d:
        p['ws'] = s * jax.random.normal(ks[6], (out_d, in_d, 1, 1), jnp.float32)
    else:
        # identity shortcut expressed as a 1x1 conv with identity weights
        p['ws'] = jnp.eye(in_d, dtype=jnp.float32)[:, :, None, None]
    return p


def to_kernel_layout(p):
    """PyTorch OIHW params -> lane-padded matmul layouts (weights bf16)."""
    mid_d, in_d = p['w1'].shape[:2]
    out_d = p['w3'].shape[0]
    cip, cmp_, cop = (_round_up(c, LANE) for c in (in_d, mid_d, out_d))

    def pad2(a, r, c):
        return jnp.zeros((r, c), a.dtype).at[:a.shape[0], :a.shape[1]].set(a)

    w1 = pad2(p['w1'][:, :, 0, 0].T, cip, cmp_).astype(jnp.bfloat16)
    w3 = pad2(p['w3'][:, :, 0, 0].T, cmp_, cop).astype(jnp.bfloat16)
    ws = pad2(p['ws'][:, :, 0, 0].T, cip, cop).astype(jnp.bfloat16)

    # conv2: (O, I, 3, 3) -> (3, 3, I, O) -> pad I, O -> (9*Cmid_pad, Cmid_pad)
    w2_t = jnp.transpose(p['w2'], (2, 3, 1, 0))
    w2_p = jnp.zeros((3, 3, cmp_, cmp_), jnp.float32)
    w2_p = w2_p.at[:, :, :mid_d, :mid_d].set(w2_t)
    w2 = w2_p.reshape(9 * cmp_, cmp_).astype(jnp.bfloat16)

    def padb(b, c):
        return jnp.zeros((1, c), jnp.float32).at[0, :b.shape[0]].set(b)

    return dict(w1=w1, b1=padb(p['b1'], cmp_), w2=w2, b2=padb(p['b2'], cmp_),
                w3=w3, b3=padb(p['b3'], cop), ws=ws,
                in_d=in_d, out_d=out_d, cip=cip, cop=cop)


# --------------------------------------------------------------------------
# Whole-ResNet forward: layout conversion once, blocks chained in NHWC-padded.
# --------------------------------------------------------------------------
def resnet_forward_pallas(x_nchw, kparams_list):
    N, C, H, W = x_nchw.shape
    cip0 = kparams_list[0]['cip']
    x = jnp.transpose(x_nchw, (0, 2, 3, 1))                          # NHWC once
    x = jnp.zeros((N, H, W, cip0), jnp.float32).at[..., :C].set(x)   # pad lanes
    for kp in kparams_list:
        x = bottleneck_block_pallas(x, kp['w1'], kp['b1'], kp['w2'], kp['b2'],
                                    kp['w3'], kp['b3'], kp['ws'])
    out_d = kparams_list[-1]['out_d']
    return jnp.transpose(x[..., :out_d], (0, 3, 1, 2))               # NCHW once


# --------------------------------------------------------------------------
# Plain-JAX reference (mirrors the PyTorch forward, NCHW).
# --------------------------------------------------------------------------
def ref_block_nchw(x, p):
    dn = ('NCHW', 'OIHW', 'NCHW')
    conv = lambda a, w, pad: lax.conv_general_dilated(
        a, w, window_strides=(1, 1), padding=pad, dimension_numbers=dn)
    out = jnp.maximum(conv(x, p['w1'], 'VALID') + p['b1'][None, :, None, None], 0.0)
    out = jnp.maximum(conv(out, p['w2'], [(1, 1), (1, 1)]) + p['b2'][None, :, None, None], 0.0)
    out = conv(out, p['w3'], 'VALID') + p['b3'][None, :, None, None]
    out = out + conv(x, p['ws'], 'VALID')
    return jnp.maximum(out, 0.0)


def ref_resnet_nchw(x, params_list):
    for p in params_list:
        x = ref_block_nchw(x, p)
    return x


if __name__ == "__main__":
    key = jax.random.PRNGKey(0)
    k_x, k_p = jax.random.split(key)

    # ResNet(BottleneckBlock, blocks=[4, 8, 8]) -> Block(4->8), Block(8->8)
    blocks = [4, 8, 8]
    N, H, W = 2, 16, 16

    x_nchw = jax.random.normal(k_x, (N, blocks[0], H, W), jnp.float32)

    pkeys = jax.random.split(k_p, len(blocks) - 1)
    params = [make_block_params(pkeys[i], blocks[i], blocks[i + 1])
              for i in range(len(blocks) - 1)]
    kparams = [to_kernel_layout(p) for p in params]

    out = jax.block_until_ready(resnet_forward_pallas(x_nchw, kparams))
    ref = jax.block_until_ready(ref_resnet_nchw(x_nchw, params))

    assert out.shape == (N, blocks[-1], H, W)
    # Matmuls run in bf16 on the MXU (f32 accumulation), so the tolerance vs
    # the pure-f32 reference is relaxed accordingly.
    err = float(jnp.max(jnp.abs(out - ref)))
    assert err < 5e-2, f"mismatch vs reference: {err}"

    print("KERNEL_OK")
</pallas_src>

<mosaic_0001>
module attributes {stable_mosaic.version = 11 : i64} {
  func.func @bottleneck_kernel(%arg0: i32, %arg1: memref<1x16x16x128xf32, #tpu.memory_space<vmem>>, %arg2: memref<128x128xbf16, #tpu.memory_space<vmem>>, %arg3: memref<1x128xf32, #tpu.memory_space<vmem>>, %arg4: memref<1152x128xbf16, #tpu.memory_space<vmem>>, %arg5: memref<1x128xf32, #tpu.memory_space<vmem>>, %arg6: memref<128x128xbf16, #tpu.memory_space<vmem>>, %arg7: memref<1x128xf32, #tpu.memory_space<vmem>>, %arg8: memref<128x128xbf16, #tpu.memory_space<vmem>>, %arg9: memref<1x16x16x128xf32, #tpu.memory_space<vmem>>, %arg10: memref<18x18x128xf32, #tpu.memory_space<vmem>>, %arg11: memref<256x1152xbf16, #tpu.memory_space<vmem>>) attributes {dimension_semantics = [#tpu.dimension_semantics<parallel>], iteration_bounds = array<i64: 2>, scalar_prefetch = 0 : i64, scratch_operands = 2 : i64, tpu.core_type = #tpu.core_type<tc>, window_params = [{transform_indices = @transform_0, window_bounds = array<i64: 1, 16, 16, 128>}, {pipeline_mode = #tpu.pipeline_mode<synchronous>, transform_indices = @transform_1, window_bounds = array<i64: 128, 128>}, {pipeline_mode = #tpu.pipeline_mode<synchronous>, transform_indices = @transform_2, window_bounds = array<i64: 1, 128>}, {pipeline_mode = #tpu.pipeline_mode<synchronous>, transform_indices = @transform_3, window_bounds = array<i64: 1152, 128>}, {pipeline_mode = #tpu.pipeline_mode<synchronous>, transform_indices = @transform_4, window_bounds = array<i64: 1, 128>}, {pipeline_mode = #tpu.pipeline_mode<synchronous>, transform_indices = @transform_5, window_bounds = array<i64: 128, 128>}, {pipeline_mode = #tpu.pipeline_mode<synchronous>, transform_indices = @transform_6, window_bounds = array<i64: 1, 128>}, {pipeline_mode = #tpu.pipeline_mode<synchronous>, transform_indices = @transform_7, window_bounds = array<i64: 128, 128>}, {transform_indices = @transform_8, window_bounds = array<i64: 1, 16, 16, 128>}]} {
    %cst = arith.constant 0.000000e+00 : f32
    %0 = vector.broadcast %cst : f32 to vector<1x18x128xf32>
    %cst_0 = arith.constant 0.000000e+00 : f32
    %1 = vector.broadcast %cst_0 : f32 to vector<16x1x128xf32>
    %c0 = arith.constant 0 : index
    %c0_1 = arith.constant 0 : index
    %c0_2 = arith.constant 0 : index
    %2 = vector.load %arg10[%c0, %c0_1, %c0_2] : memref<18x18x128xf32, #tpu.memory_space<vmem>>, vector<1x18x128xf32>
    tpu.vector_store %arg10[%c0, %c0_1, %c0_2], %0 {strides = array<i32>} : memref<18x18x128xf32, #tpu.memory_space<vmem>>, vector<1x18x128xf32>,
    %c17 = arith.constant 17 : index
    %c0_3 = arith.constant 0 : index
    %c0_4 = arith.constant 0 : index
    %3 = vector.load %arg10[%c17, %c0_3, %c0_4] : memref<18x18x128xf32, #tpu.memory_space<vmem>>, vector<1x18x128xf32>
    tpu.vector_store %arg10[%c17, %c0_3, %c0_4], %0 {strides = array<i32>} : memref<18x18x128xf32, #tpu.memory_space<vmem>>, vector<1x18x128xf32>,
    %c1 = arith.constant 1 : index
    %c0_5 = arith.constant 0 : index
    %c0_6 = arith.constant 0 : index
    %4 = vector.load %arg10[%c1, %c0_5, %c0_6] : memref<18x18x128xf32, #tpu.memory_space<vmem>>, vector<16x1x128xf32>
    tpu.vector_store %arg10[%c1, %c0_5, %c0_6], %1 {strides = array<i32>} : memref<18x18x128xf32, #tpu.memory_space<vmem>>, vector<16x1x128xf32>,
    %c1_7 = arith.constant 1 : index
    %c17_8 = arith.constant 17 : index
    %c0_9 = arith.constant 0 : index
    %5 = vector.load %arg10[%c1_7, %c17_8, %c0_9] : memref<18x18x128xf32, #tpu.memory_space<vmem>>, vector<16x1x128xf32>
    tpu.vector_store %arg10[%c1_7, %c17_8, %c0_9], %1 {strides = array<i32>} : memref<18x18x128xf32, #tpu.memory_space<vmem>>, vector<16x1x128xf32>,
    %c0_10 = arith.constant 0 : index
    %c0_11 = arith.constant 0 : index
    %c0_12 = arith.constant 0 : index
    %c0_13 = arith.constant 0 : index
    %6 = vector.load %arg1[%c0_10, %c0_11, %c0_12, %c0_13] : memref<1x16x16x128xf32, #tpu.memory_space<vmem>>, vector<1x16x16x128xf32>
    %7 = vector.shape_cast %6 : vector<1x16x16x128xf32> to vector<256x128xf32>
    %8 = arith.truncf %7 : vector<256x128xf32> to vector<256x128xbf16>
    %c0_14 = arith.constant 0 : index
    %c0_15 = arith.constant 0 : index
    %9 = vector.load %arg2[%c0_14, %c0_15] : memref<128x128xbf16, #tpu.memory_space<vmem>>, vector<128x128xbf16>
    %cst_16 = arith.constant dense<0.000000e+00> : vector<256x128xf32>
    %10 = tpu.matmul %8, %9, %cst_16 {dimension_numbers = #tpu.dot_dimension_numbers<[1], [0], [0], [1], [0, 0, 1, 1], [], []>} : vector<256x128xbf16>, vector<128x128xbf16>, vector<256x128xf32> -> vector<256x128xf32>
    %c0_17 = arith.constant 0 : index
    %c0_18 = arith.constant 0 : index
    %11 = vector.load %arg3[%c0_17, %c0_18] : memref<1x128xf32, #tpu.memory_space<vmem>>, vector<1x128xf32>
    %12 = vector.broadcast %11 : vector<1x128xf32> to vector<256x128xf32>
    %13 = arith.addf %10, %12 : vector<256x128xf32>
    %cst_19 = arith.constant 0.000000e+00 : f32
    %14 = vector.broadcast %cst_19 : f32 to vector<256x128xf32>
    %15 = arith.maximumf %13, %14 : vector<256x128xf32>
    %16 = vector.shape_cast %15 : vector<256x128xf32> to vector<16x16x128xf32>
    %c1_20 = arith.constant 1 : index
    %c1_21 = arith.constant 1 : index
    %c0_22 = arith.constant 0 : index
    %17 = vector.load %arg10[%c1_20, %c1_21, %c0_22] : memref<18x18x128xf32, #tpu.memory_space<vmem>>, vector<16x16x128xf32>
    tpu.vector_store %arg10[%c1_20, %c1_21, %c0_22], %16 {strides = array<i32>} : memref<18x18x128xf32, #tpu.memory_space<vmem>>, vector<16x16x128xf32>,
    %c0_23 = arith.constant 0 : index
    %c0_24 = arith.constant 0 : index
    %c0_25 = arith.constant 0 : index
    %18 = vector.load %arg10[%c0_23, %c0_24, %c0_25] : memref<18x18x128xf32, #tpu.memory_space<vmem>>, vector<16x16x128xf32>
    %19 = vector.shape_cast %18 : vector<16x16x128xf32> to vector<256x128xf32>
    %20 = arith.truncf %19 : vector<256x128xf32> to vector<256x128xbf16>
    %c0_26 = arith.constant 0 : index
    %c0_27 = arith.constant 0 : index
    %21 = vector.load %arg11[%c0_26, %c0_27] : memref<256x1152xbf16, #tpu.memory_space<vmem>>, vector<256x128xbf16>
    tpu.vector_store %arg11[%c0_26, %c0_27], %20 {strides = array<i32>} : memref<256x1152xbf16, #tpu.memory_space<vmem>>, vector<256x128xbf16>,
    %c0_28 = arith.constant 0 : index
    %c1_29 = arith.constant 1 : index
    %c0_30 = arith.constant 0 : index
    %22 = vector.load %arg10[%c0_28, %c1_29, %c0_30] : memref<18x18x128xf32, #tpu.memory_space<vmem>>, vector<16x16x128xf32>
    %23 = vector.shape_cast %22 : vector<16x16x128xf32> to vector<256x128xf32>
    %24 = arith.truncf %23 : vector<256x128xf32> to vector<256x128xbf16>
    %c0_31 = arith.constant 0 : index
    %c128 = arith.constant 128 : index
    %25 = vector.load %arg11[%c0_31, %c128] : memref<256x1152xbf16, #tpu.memory_space<vmem>>, vector<256x128xbf16>
    tpu.vector_store %arg11[%c0_31, %c128], %24 {strides = array<i32>} : memref<256x1152xbf16, #tpu.memory_space<vmem>>, vector<256x128xbf16>,
    %c0_32 = arith.constant 0 : index
    %c2 = arith.constant 2 : index
    %c0_33 = arith.constant 0 : index
    %26 = vector.load %arg10[%c0_32, %c2, %c0_33] : memref<18x18x128xf32, #tpu.memory_space<vmem>>, vector<16x16x128xf32>
    %27 = vector.shape_cast %26 : vector<16x16x128xf32> to vector<256x128xf32>
    %28 = arith.truncf %27 : vector<256x128xf32> to vector<256x128xbf16>
    %c0_34 = arith.constant 0 : index
    %c256 = arith.constant 256 : index
    %29 = vector.load %arg11[%c0_34, %c256] : memref<256x1152xbf16, #tpu.memory_space<vmem>>, vector<256x128xbf16>
    tpu.vector_store %arg11[%c0_34, %c256], %28 {strides = array<i32>} : memref<256x1152xbf16, #tpu.memory_space<vmem>>, vector<256x128xbf16>,
    %c1_35 = arith.constant 1 : index
    %c0_36 = arith.constant 0 : index
    %c0_37 = arith.constant 0 : index
    %30 = vector.load %arg10[%c1_35, %c0_36, %c0_37] : memref<18x18x128xf32, #tpu.memory_space<vmem>>, vector<16x16x128xf32>
    %31 = vector.shape_cast %30 : vector<16x16x128xf32> to vector<256x128xf32>
    %32 = arith.truncf %31 : vector<256x128xf32> to vector<256x128xbf16>
    %c0_38 = arith.constant 0 : index
    %c384 = arith.constant 384 : index
    %33 = vector.load %arg11[%c0_38, %c384] : memref<256x1152xbf16, #tpu.memory_space<vmem>>, vector<256x128xbf16>
    tpu.vector_store %arg11[%c0_38, %c384], %32 {strides = array<i32>} : memref<256x1152xbf16, #tpu.memory_space<vmem>>, vector<256x128xbf16>,
    %c1_39 = arith.constant 1 : index
    %c1_40 = arith.constant 1 : index
    %c0_41 = arith.constant 0 : index
    %34 = vector.load %arg10[%c1_39, %c1_40, %c0_41] : memref<18x18x128xf32, #tpu.memory_space<vmem>>, vector<16x16x128xf32>
    %35 = vector.shape_cast %34 : vector<16x16x128xf32> to vector<256x128xf32>
    %36 = arith.truncf %35 : vector<256x128xf32> to vector<256x128xbf16>
    %c0_42 = arith.constant 0 : index
    %c512 = arith.constant 512 : index
    %37 = vector.load %arg11[%c0_42, %c512] : memref<256x1152xbf16, #tpu.memory_space<vmem>>, vector<256x128xbf16>
    tpu.vector_store %arg11[%c0_42, %c512], %36 {strides = array<i32>} : memref<256x1152xbf16, #tpu.memory_space<vmem>>, vector<256x128xbf16>,
    %c1_43 = arith.constant 1 : index
    %c2_44 = arith.constant 2 : index
    %c0_45 = arith.constant 0 : index
    %38 = vector.load %arg10[%c1_43, %c2_44, %c0_45] : memref<18x18x128xf32, #tpu.memory_space<vmem>>, vector<16x16x128xf32>
    %39 = vector.shape_cast %38 : vector<16x16x128xf32> to vector<256x128xf32>
    %40 = arith.truncf %39 : vector<256x128xf32> to vector<256x128xbf16>
    %c0_46 = arith.constant 0 : index
    %c640 = arith.constant 640 : index
    %41 = vector.load %arg11[%c0_46, %c640] : memref<256x1152xbf16, #tpu.memory_space<vmem>>, vector<256x128xbf16>
    tpu.vector_store %arg11[%c0_46, %c640], %40 {strides = array<i32>} : memref<256x1152xbf16, #tpu.memory_space<vmem>>, vector<256x128xbf16>,
    %c2_47 = arith.constant 2 : index
    %c0_48 = arith.constant 0 : index
    %c0_49 = arith.constant 0 : index
    %42 = vector.load %arg10[%c2_47, %c0_48, %c0_49] : memref<18x18x128xf32, #tpu.memory_space<vmem>>, vector<16x16x128xf32>
    %43 = vector.shape_cast %42 : vector<16x16x128xf32> to vector<256x128xf32>
    %44 = arith.truncf %43 : vector<256x128xf32> to vector<256x128xbf16>
    %c0_50 = arith.constant 0 : index
    %c768 = arith.constant 768 : index
    %45 = vector.load %arg11[%c0_50, %c768] : memref<256x1152xbf16, #tpu.memory_space<vmem>>, vector<256x128xbf16>
    tpu.vector_store %arg11[%c0_50, %c768], %44 {strides = array<i32>} : memref<256x1152xbf16, #tpu.memory_space<vmem>>, vector<256x128xbf16>,
    %c2_51 = arith.constant 2 : index
    %c1_52 = arith.constant 1 : index
    %c0_53 = arith.constant 0 : index
    %46 = vector.load %arg10[%c2_51, %c1_52, %c0_53] : memref<18x18x128xf32, #tpu.memory_space<vmem>>, vector<16x16x128xf32>
    %47 = vector.shape_cast %46 : vector<16x16x128xf32> to vector<256x128xf32>
    %48 = arith.truncf %47 : vector<256x128xf32> to vector<256x128xbf16>
    %c0_54 = arith.constant 0 : index
    %c896 = arith.constant 896 : index
    %49 = vector.load %arg11[%c0_54, %c896] : memref<256x1152xbf16, #tpu.memory_space<vmem>>, vector<256x128xbf16>
    tpu.vector_store %arg11[%c0_54, %c896], %48 {strides = array<i32>} : memref<256x1152xbf16, #tpu.memory_space<vmem>>, vector<256x128xbf16>,
    %c2_55 = arith.constant 2 : index
    %c2_56 = arith.constant 2 : index
    %c0_57 = arith.constant 0 : index
    %50 = vector.load %arg10[%c2_55, %c2_56, %c0_57] : memref<18x18x128xf32, #tpu.memory_space<vmem>>, vector<16x16x128xf32>
    %51 = vector.shape_cast %50 : vector<16x16x128xf32> to vector<256x128xf32>
    %52 = arith.truncf %51 : vector<256x128xf32> to vector<256x128xbf16>
    %c0_58 = arith.constant 0 : index
    %c1024 = arith.constant 1024 : index
    %53 = vector.load %arg11[%c0_58, %c1024] : memref<256x1152xbf16, #tpu.memory_space<vmem>>, vector<256x128xbf16>
    tpu.vector_store %arg11[%c0_58, %c1024], %52 {strides = array<i32>} : memref<256x1152xbf16, #tpu.memory_space<vmem>>, vector<256x128xbf16>,
    %c0_59 = arith.constant 0 : index
    %c0_60 = arith.constant 0 : index
    %54 = vector.load %arg11[%c0_59, %c0_60] : memref<256x1152xbf16, #tpu.memory_space<vmem>>, vector<256x1152xbf16>
    %c0_61 = arith.constant 0 : index
    %c0_62 = arith.constant 0 : index
    %55 = vector.load %arg4[%c0_61, %c0_62] : memref<1152x128xbf16, #tpu.memory_space<vmem>>, vector<1152x128xbf16>
    %cst_63 = arith.constant dense<0.000000e+00> : vector<256x128xf32>
    %56 = tpu.matmul %54, %55, %cst_63 {dimension_numbers = #tpu.dot_dimension_numbers<[1], [0], [0], [1], [0, 0, 1, 1], [], []>} : vector<256x1152xbf16>, vector<1152x128xbf16>, vector<256x128xf32> -> vector<256x128xf32>
    %c0_64 = arith.constant 0 : index
    %c0_65 = arith.constant 0 : index
    %57 = vector.load %arg5[%c0_64, %c0_65] : memref<1x128xf32, #tpu.memory_space<vmem>>, vector<1x128xf32>
    %58 = vector.broadcast %57 : vector<1x128xf32> to vector<256x128xf32>
    %59 = arith.addf %56, %58 : vector<256x128xf32>
    %cst_66 = arith.constant 0.000000e+00 : f32
    %60 = vector.broadcast %cst_66 : f32 to vector<256x128xf32>
    %61 = arith.maximumf %59, %60 : vector<256x128xf32>
    %62 = arith.truncf %61 : vector<256x128xf32> to vector<256x128xbf16>
    %c0_67 = arith.constant 0 : index
    %c0_68 = arith.constant 0 : index
    %63 = vector.load %arg6[%c0_67, %c0_68] : memref<128x128xbf16, #tpu.memory_space<vmem>>, vector<128x128xbf16>
    %cst_69 = arith.constant dense<0.000000e+00> : vector<256x128xf32>
    %64 = tpu.matmul %62, %63, %cst_69 {dimension_numbers = #tpu.dot_dimension_numbers<[1], [0], [0], [1], [0, 0, 1, 1], [], []>} : vector<256x128xbf16>, vector<128x128xbf16>, vector<256x128xf32> -> vector<256x128xf32>
    %c0_70 = arith.constant 0 : index
    %c0_71 = arith.constant 0 : index
    %65 = vector.load %arg7[%c0_70, %c0_71] : memref<1x128xf32, #tpu.memory_space<vmem>>, vector<1x128xf32>
    %66 = vector.broadcast %65 : vector<1x128xf32> to vector<256x128xf32>
    %67 = arith.addf %64, %66 : vector<256x128xf32>
    %c0_72 = arith.constant 0 : index
    %c0_73 = arith.constant 0 : index
    %68 = vector.load %arg8[%c0_72, %c0_73] : memref<128x128xbf16, #tpu.memory_space<vmem>>, vector<128x128xbf16>
    %cst_74 = arith.constant dense<0.000000e+00> : vector<256x128xf32>
    %69 = tpu.matmul %8, %68, %cst_74 {dimension_numbers = #tpu.dot_dimension_numbers<[1], [0], [0], [1], [0, 0, 1, 1], [], []>} : vector<256x128xbf16>, vector<128x128xbf16>, vector<256x128xf32> -> vector<256x128xf32>
    %70 = arith.addf %67, %69 : vector<256x128xf32>
    %cst_75 = arith.constant 0.000000e+00 : f32
    %71 = vector.broadcast %cst_75 : f32 to vector<256x128xf32>
    %72 = arith.maximumf %70, %71 : vector<256x128xf32>
    %73 = vector.shape_cast %72 : vector<256x128xf32> to vector<1x16x16x128xf32>
    %c0_76 = arith.constant 0 : index
    %c0_77 = arith.constant 0 : index
    %c0_78 = arith.constant 0 : index
    %c0_79 = arith.constant 0 : index
    %74 = vector.load %arg9[%c0_76, %c0_77, %c0_78, %c0_79] : memref<1x16x16x128xf32, #tpu.memory_space<vmem>>, vector<1x16x16x128xf32>
    tpu.vector_store %arg9[%c0_76, %c0_77, %c0_78, %c0_79], %73 {strides = array<i32>} : memref<1x16x16x128xf32, #tpu.memory_space<vmem>>, vector<1x16x16x128xf32>,
    return
  }
  func.func @transform_0(%arg0: i32) -> (i32, i32, i32, i32) {
    %c0_i32 = arith.constant 0 : i32
    %c0_i32_0 = arith.constant 0 : i32
    %c0_i32_1 = arith.constant 0 : i32
    %c0_i32_2 = arith.constant 0 : i32
    return %arg0, %c0_i32, %c0_i32_0, %c0_i32_1 : i32, i32, i32, i32
  }
  func.func @transform_1(%arg0: i32) -> (i32, i32) {
    %c0_i32 = arith.constant 0 : i32
    %c0_i32_0 = arith.constant 0 : i32
    %c0_i32_1 = arith.constant 0 : i32
    return %c0_i32, %c0_i32_0 : i32, i32
  }
  func.func @transform_2(%arg0: i32) -> (i32, i32) {
    %c0_i32 = arith.constant 0 : i32
    %c0_i32_0 = arith.constant 0 : i32
    %c0_i32_1 = arith.constant 0 : i32
    return %c0_i32, %c0_i32_0 : i32, i32
  }
  func.func @transform_3(%arg0: i32) -> (i32, i32) {
    %c0_i32 = arith.constant 0 : i32
    %c0_i32_0 = arith.constant 0 : i32
    %c0_i32_1 = arith.constant 0 : i32
    return %c0_i32, %c0_i32_0 : i32, i32
  }
  func.func @transform_4(%arg0: i32) -> (i32, i32) {
    %c0_i32 = arith.constant 0 : i32
    %c0_i32_0 = arith.constant 0 : i32
    %c0_i32_1 = arith.constant 0 : i32
    return %c0_i32, %c0_i32_0 : i32, i32
  }
  func.func @transform_5(%arg0: i32) -> (i32, i32) {
    %c0_i32 = arith.constant 0 : i32
    %c0_i32_0 = arith.constant 0 : i32
    %c0_i32_1 = arith.constant 0 : i32
    return %c0_i32, %c0_i32_0 : i32, i32
  }
  func.func @transform_6(%arg0: i32) -> (i32, i32) {
    %c0_i32 = arith.constant 0 : i32
    %c0_i32_0 = arith.constant 0 : i32
    %c0_i32_1 = arith.constant 0 : i32
    return %c0_i32, %c0_i32_0 : i32, i32
  }
  func.func @transform_7(%arg0: i32) -> (i32, i32) {
    %c0_i32 = arith.constant 0 : i32
    %c0_i32_0 = arith.constant 0 : i32
    %c0_i32_1 = arith.constant 0 : i32
    return %c0_i32, %c0_i32_0 : i32, i32
  }
  func.func @transform_8(%arg0: i32) -> (i32, i32, i32, i32) {
    %c0_i32 = arith.constant 0 : i32
    %c0_i32_0 = arith.constant 0 : i32
    %c0_i32_1 = arith.constant 0 : i32
    %c0_i32_2 = arith.constant 0 : i32
    return %arg0, %c0_i32, %c0_i32_0, %c0_i32_1 : i32, i32, i32, i32
  }
}

</mosaic_0001>

<bundles_post_ra>
// kernel: tpu_custom_call.1
= control target key start
LH: loop header
LB: loop body
LE: loop exit
PB: predicated region body
PF: predicated region fallthrough
CT: control target
= control target key end

     0   :  { %s8632_s0 = inlined_call_operand.hbm [shape: f32[2,16,16,128], index: 0, kind: input, shape index: {}]   ;;  %s8633_s1 = inlined_call_operand.hbm [shape: bf16[128,128], index: 1, kind: input, shape index: {}]   ;;  %s8634_s2 = inlined_call_operand.vmem [shape: f32[1,128], index: 2, kind: input, shape index: {}]   ;;  %s8635_s3 = inlined_call_operand.hbm [shape: bf16[1152,128], index: 3, kind: input, shape index: {}]   ;;  %s8636_s4 = inlined_call_operand.vmem [shape: f32[1,128], index: 4, kind: input, shape index: {}]   ;;  %s8637_s5 = inlined_call_operand.hbm [shape: bf16[128,128], index: 5, kind: input, shape index: {}]   ;;  %s8638_s6 = inlined_call_operand.vmem [shape: f32[1,128], index: 6, kind: input, shape index: {}]   ;;  %s8639_s7 = inlined_call_operand.hbm [shape: bf16[128,128], index: 7, kind: input, shape index: {}]   ;;  %s8640_s8 = inlined_call_operand.hbm [shape: f32[2,16,16,128], index: 8, kind: output, shape index: {}]  }
   0x1   :  { %8645 = sst [smem:[#allocation47_spill]] %s8633_s1 }
   0x2   :  { %8646 = sst [smem:[#allocation48_spill]] %s8635_s3 }
   0x3   :  { %13 = vsyncpa [#allocation5], 0 }
   0x4   :  { %15 = vsyncpa [#allocation5 + $0x1], 0 }
   0x5   :  { %16 = vsyncpa [#allocation8], 0 }
   0x6   :  { %17 = vsyncpa [#allocation11], 0 }
   0x7   :  { %18 = vsyncpa [#allocation6], 0 }
   0x8   :  { %20 = vsyncpa [#allocation6 + $0x1], 0  ;;  %s7751_s27 = smov 0   ;;  %s7753_s28 = smov 0  }
   0x9   :  { %s7755_s29 = smov 0   ;;  %s7757_s30 = smov 0  }
   0xa LB: > { %s7772_s9 = sadd.s32 4294967295, %s7690_s30   ;;  %s5506_s10 = sadd.s32 4294967294, %s7690_s30   ;;  %s7690_s30 = sphi %s7757_s30, %s8727_s30   ;;  %s7686_s29 = sphi %s7755_s29, %s8726_s29   ;;  %s7682_s28 = sphi %s7753_s28, %s8725_s28   ;;  %s7678_s27 = sphi %s7751_s27, %s8724_s27  }
   0xb   : > { %p46_p0 = scmp.ne.s32.totalorder %s7682_s28, %s7678_s27  ;;  %p8641_p1 = scmp.eq.s32.totalorder %s7772_s9, 0 }
   0xc   : > { %p217_p2 = scmp.eq.s32.totalorder %s7772_s9, 1  ;;  %p223_p3 = scmp.eq.s32.totalorder %s5506_s10, 1 }
   0xd   : > { %p7781_p4 = por %p8641_p1, %p46_p0  ;;  %p5507_p5 = scmp.ge.s32.totalorder %s7690_s30, 1 }
   0xe   : > { %p7786_p6 = por %p223_p3, %p46_p0  ;;  %p230_p7 = scmp.lt.s32.totalorder %s7690_s30, 3 }
   0xf   : > { %s8647_s11 = scalar_select %p7781_p4, 1, 0 }
  0x10   : > { %s8648_s12 = scalar_select %p7786_p6, 1, 0 }
  0x11   : > { %p7791_p8 = pnand %p5507_p5, %p230_p7  ;;  %s7692_s14 = smov [#allocation7]  }
  0x12   : > { %s242_s15 = sshll.u32 %s7692_s14, 4  ;;  %s7693_s17 = smov [#allocation10]   ;;  %s243_s15 = int_to_ptr.vmem [resolvable:$true] %s242_s15 }
  0x13   : > { %s8649_s13 = scalar_select %p7791_p8, 1, 0 }
  0x14   : > { %p7105_p9 = pneg %p7791_p8  ;;  %s274_s18 = sshll.u32 %s7693_s17, 4  ;;  %s275_s18 = int_to_ptr.vmem [resolvable:$true] %s274_s18 }
  0x15   : > { %s7694_s19 = smov [#allocation9]   ;;  %s7497_s21 = scalar_lea.vmem %s243_s15, 1024 }
  0x16   : > { %p7800_p11 = pnand %p7105_p9, %p8641_p1  ;;  %s258_s20 = sshll.u32 %s7694_s19, 4  ;;  %s259_s20 = int_to_ptr.vmem [resolvable:$true] %s258_s20 }
  0x17   : > { %p7498_p13 = scmp.ne.s32.totalorder %s243_s15, %s7497_s21  ;;  %p7505_p5 = scmp.lt.s32.totalorder %s243_s15, %s243_s15 }
  0x18   : > { %p7488_p12 = pneg %p7800_p11  ;;  %p7506_p7 = scmp.lt.s32.totalorder %s7497_s21, %s7497_s21 }
  0x1a   : > { %p7500_p0 = pnand %p7498_p13, %p7488_p12  ;;  %p7507_p9 = por %p7506_p7, %p7505_p5 }
  0x1c   : > { %p7501_p3 = pneg %p7500_p0 }
  0x1e   : > { %p7508_p10 = pnand %p7507_p9, %p7501_p3 }
  0x20   : > { %7511 = shalt.err (!%p7508_p10)
}
  0x21   : > { %s7695_s22 = smov 64   ;;  %s7696_s23 = smov 4  }
  0x22   : > { %s8651_s1 = sld [smem:[#allocation47_spill]]  ;;  %s7523_s26 = scalar_lea.vmem %s275_s18, 1024 }
  0x23   : > { %p7524_p13 = scmp.ne.s32.totalorder %s275_s18, %s7523_s26  ;;  %p7531_p3 = scmp.lt.s32.totalorder %s275_s18, %s275_s18 }
  0x24   : > { %p7532_p10 = scmp.lt.s32.totalorder %s7523_s26, %s7523_s26 }
  0x25   : > { %p7526_p0 = pnand %p7524_p13, %p7488_p12 }
  0x26   : > { %p7533_p7 = por %p7532_p10, %p7531_p3 }
  0x27   : > { %p7527_p5 = pneg %p7526_p0 }
  0x28   : > { %7108 = dma.hbm_to_vmem [thread:$0]  (!%p7800_p11), %s8651_s1, 1024, %s243_s15, [#allocation8], %s7695_s22, %s7695_s22, %s7696_s23  }
  0x29   : > { %p7534_p9 = pnand %p7533_p7, %p7527_p5 }
  0x2b   : > { %7537 = shalt.err (!%p7534_p9)
}
  0x2c   : > { %7114 = dma.hbm_to_vmem [thread:$0]  (!%p7800_p11), %s8637_s5, 1024, %s275_s18, [#allocation11], %s7695_s22, %s7695_s22, %s7696_s23  }
  0x2d   : > { %s7549_s15 = scalar_lea.vmem %s259_s20, 9216  ;;  %p7557_p3 = scmp.lt.s32.totalorder %s259_s20, %s259_s20 }
  0x2e   : > { %p7550_p1 = scmp.ne.s32.totalorder %s259_s20, %s7549_s15  ;;  %p7558_p5 = scmp.lt.s32.totalorder %s7549_s15, %s7549_s15 }
  0x30   : > { %p7552_p13 = pnand %p7550_p1, %p7488_p12  ;;  %p7559_p10 = por %p7558_p5, %p7557_p3 }
  0x32   : > { %p7553_p0 = pneg %p7552_p13 }
  0x34   : > { %p7560_p7 = pnand %p7559_p10, %p7553_p0 }
  0x36   : > { %7563 = shalt.err (!%p7560_p7)
}
  0x37   : > { %s8652_s3 = sld [smem:[#allocation48_spill]]  ;;  %s7697_s18 = smov [#allocation12]  }
  0x38   : > { %s290_s21 = sshll.u32 %s7697_s18, 4  ;;  %s291_s21 = int_to_ptr.vmem [resolvable:$true] %s290_s21 }
  0x39   : > { %s7575_s24 = scalar_lea.vmem %s291_s21, 1024  ;;  %p7583_p0 = scmp.lt.s32.totalorder %s291_s21, %s291_s21 }
  0x3a   : > { %p7576_p1 = scmp.ne.s32.totalorder %s291_s21, %s7575_s24  ;;  %p7584_p3 = scmp.lt.s32.totalorder %s7575_s24, %s7575_s24 }
  0x3c   : > { %p7578_p9 = pnand %p7576_p1, %p7488_p12  ;;  %p7585_p5 = por %p7584_p3, %p7583_p0 }
  0x3d   : > { %7111 = dma.hbm_to_vmem [thread:$0]  (!%p7800_p11), %s8652_s3, 9216, %s259_s20, [#allocation8], %s7695_s22, %s7695_s22, %s7696_s23  }
  0x3e   : > { %p7579_p13 = pneg %p7578_p9 }
  0x40   : > { %p7586_p10 = pnand %p7585_p5, %p7579_p13 }
  0x42   : > { %7589 = shalt.err (!%p7586_p10)
}
  0x43   : > { %7117 = dma.hbm_to_vmem [thread:$0]  (!%p7800_p11), %s8639_s7, 1024, %s291_s21, [#allocation11], %s7695_s22, %s7695_s22, %s7696_s23  }
  0x44   : > { %s7851_s26 = sadd.s32 1, %s7690_s30   ;;  %s33_s16 = sadd.s32 1, %s7686_s29 }
  0x45   : > { %s30_s10 = ssub.s32 %s7690_s30, %s7851_s26  ;;  %p40_p12 = scmp.ne.s32.totalorder %s7686_s29, %s7682_s28 }
  0x46   : > { %p31_p7 = scmp.eq.s32.totalorder %s30_s10, 0  ;;  %p41_p1 = scmp.eq.s32.totalorder %s7690_s30, 0 }
  0x47   : > { %p7861_p9 = por %p217_p2, %p40_p12  ;;  %p7130_p13 = scmp.lt.s32.totalorder %s7690_s30, 2 }
  0x48   : > { %s7867_s15 = scalar_select %p31_p7, %s7686_s29, %s33_s16  }
  0x49   : > { %s8653_s14 = scalar_select %p7861_p9, 1, 0 }
  0x4a   : > { %p42_p0 = por %p41_p1, %p40_p12  ;;  %s304_s17 = sand.u32 1, %s7686_s29  }
  0x4b   : > { %s5513_s19 = sshll.u32 %s304_s17, 8  ;;  %s6059_s22 = sshll.u32 %s7690_s30, 12 }
  0x4c   : > { %s7874_s21 = scalar_lea.hbm %s8632_s0, %s6059_s22  ;;  %s308_s24 = scalar_lea.vmem [#allocation4], %s5513_s19 }
  0x4d   : > { %s315_s20 = sshll.u32 %s308_s24, 4  ;;  %p7878_p2 = pnand %p7130_p13, %p42_p0  ;;  %s7876_s20 = int_to_ptr.vmem [resolvable:$true] %s315_s20 }
  0x4e   : > { %s7882_s16 = scalar_lea.sflag [#allocation5], %s304_s17  ;;  %s7590_s10 = scalar_lea.hbm %s7874_s21, 4096 }
  0x4f   : > { %p7591_p11 = scmp.ne.s32.totalorder %s7874_s21, %s7590_s10  ;;  %p7592_p3 = pneg %p7878_p2 }
  0x50   : > { %s7595_s19 = scalar_lea.hbm %s8632_s0, 8192  ;;  %p7596_p12 = scmp.lt.s32.totalorder %s7874_s21, %s8632_s0 }
  0x51   : > { %p7593_p5 = pnand %p7592_p3, %p7591_p11  ;;  %p7597_p7 = scmp.lt.s32.totalorder %s7595_s19, %s7590_s10 }
  0x53   : > { %p7594_p10 = pneg %p7593_p5  ;;  %p7598_p1 = por %p7597_p7, %p7596_p12 }
  0x55   : > { %p7599_p13 = pnand %p7598_p1, %p7594_p10 }
  0x57   : > { %7602 = shalt.err (!%p7599_p13)
}
  0x58   : > { %s7603_s17 = scalar_lea.vmem %s7876_s20, 4096  ;;  %s7698_s1 = smov [#allocation4]  }
  0x59   : > { %p7604_p0 = scmp.ne.s32.totalorder %s7876_s20, %s7603_s17  ;;  %s7608_s3 = sshll.u32 %s7698_s1, 4  ;;  %s7609_s3 = int_to_ptr.vmem [resolvable:$false] %s7608_s3 }
  0x5a   : > { %s7610_s22 = scalar_lea.vmem %s7609_s3, 8192  ;;  %p7611_p5 = scmp.lt.s32.totalorder %s7876_s20, %s7609_s3 }
  0x5b   : > { %p7606_p6 = pnand %p7604_p0, %p7592_p3  ;;  %p7612_p9 = scmp.lt.s32.totalorder %s7610_s22, %s7603_s17 }
  0x5d   : > { %p7607_p11 = pneg %p7606_p6  ;;  %p7613_p4 = por %p7612_p9, %p7611_p5 }
  0x5f   : > { %p7614_p8 = pnand %p7613_p4, %p7607_p11 }
  0x61   : > { %7617 = shalt.err (!%p7614_p8)
}
  0x62   : > { %s7699_s10 = smov 128   ;;  %s7700_s23 = smov 8  }
  0x63   : > { %7121 = dma.hbm_to_vmem [thread:$0]  (!%p7878_p2), %s7874_s21, 4096, %s7876_s20, %s7882_s16, %s7699_s10, %s7699_s10, %s7700_s23  }
  0x64   : > { %p8655_p3 = scmp.ne.s32.totalorder %s8649_s13, 0 }
  0x66   : > { %327 = sbr.rel (%p8655_p3) target bundleno = 1159 (0x487), region = 52 }
  0x6b   : > { %s7906_s1 = sand.u32 1, %s7682_s28   ;;  %p8656_p4 = scmp.ne.s32.totalorder %s8647_s11, 0 }
  0x6c   : > { %s5517_s3 = sshll.u32 %s7906_s1, 8  ;;  %s330_s19 = scalar_lea.sflag [#allocation5], %s7906_s1 }
  0x6d   : > { %s7912_s18 = scalar_lea.vmem [#allocation4], %s5517_s3 }
  0x6e   : > { %7661 = dma.done.wait (%p8656_p4), %s330_s19, 4096  }
  0x6f   : > { %7663 = vsyncadd (%p8656_p4), %s330_s19, 4294963200  ;;  %p8657_p6 = scmp.eq.s32.totalorder %s7772_s9, 0 }
  0x71   : > { %7665 = dma.done.wait (%p8657_p6), [#allocation8], 10240   ;;  %p8658_p8 = pmov %p8657_p6 }
  0x72   : > { %p8659_p9 = pmov %p8657_p6 }
  0x73   : > { %7667 = vsyncadd (%p8658_p8), [#allocation8], 4294957056 }
  0x74   : > { %7669 = dma.done.wait (%p8659_p9), [#allocation11], 2048   ;;  %p8660_p2 = pmov %p8657_p6 }
  0x75   : > { %v7701_v0 = vmov 0.0   ;;  %v7179_v1 = vld [vmem:[#allocation7 + $0x38] sm:$0xff]   ;;  %v7180_v2 = vld [vmem:[#allocation7 + $0x30] sm:$0xff]   ;;  %v7181_v3 = vld [vmem:[#allocation7 + $0x28] sm:$0xff]   ;;  %s8500_s22 = scalar_lea.vmem [#allocation13], %s5517_s3  ;;  %s6348_s10 = sshll.u32 %s7772_s9, 12 }
  0x76   : > { %7671 = vsyncadd (%p8660_p2), [#allocation11], 4294965248  ;;  %392 = vst [vmem:[#allocation2 + $0x30] sm:$0x1] %v7701_v0  ;;  %6893 = vmatprep.subr.bf16.mxu0 %v7179_v1  ;;  %v7182_v4 = vld [vmem:[#allocation7 + $0x20] sm:$0xff]   ;;  %v424_v6 = vld [vmem:[%s7912_s18 + $0x8] sm:$0xff] }
  0x77   : > { %383 = vst [vmem:[#allocation2] sm:$0xff] %v7701_v0  ;;  %384 = vst [vmem:[#allocation2 + $0x8] sm:$0xff] %v7701_v0  ;;  %6894 = vmatpush3.bf16.msra.mxu0 %v7179_v1  ;;  %v423_v5 = vld [vmem:[%s7912_s18] sm:$0xff]  ;;  %v7183_v8 = vld [vmem:[#allocation7 + $0x18] sm:$0xff]   ;;  %s5395_s23 = sshll.u32 %s8500_s22, 4  ;;  %s5382_s11 = scalar_lea.sflag [#allocation6], %s7906_s1  ;;  %s8587_s23 = int_to_ptr.vmem [resolvable:$true] %s5395_s23 }
  0x78   : > { %385 = vst [vmem:[#allocation2 + $0x10] sm:$0x3] %v7701_v0  ;;  %387 = vst [vmem:[#allocation2 + $0x198] sm:$0xff] %v7701_v0  ;;  %6895 = vmatprep.subr.bf16.mxu0 %v7180_v2  ;;  %v7928_v7 = vpack.c.bf16 %v424_v6, %v423_v5  ;;  %v7184_v9 = vld [vmem:[#allocation7 + $0x10] sm:$0xff]   ;;  %v7185_v10 = vld [vmem:[#allocation7 + $0x8] sm:$0xff]   ;;  %s7618_s9 = scalar_lea.vmem %s8587_s23, 4096 }
  0x79   : > { %388 = vst [vmem:[#allocation2 + $0x1a0] sm:$0xff] %v7701_v0  ;;  %389 = vst [vmem:[#allocation2 + $0x1a8] sm:$0x3] %v7701_v0  ;;  %v7187_v11 = vld [vmem:[#allocation9 + $0x78] sm:$0xff]   ;;  %v7189_v13 = vld [vmem:[#allocation9 + $0x70] sm:$0xff]   ;;  %p7619_p10 = scmp.ne.s32.totalorder %s8587_s23, %s7618_s9  ;;  %p8721_p12 = scmp.ne.s32.totalorder %s8653_s14, 0 }
  0x7a   : > { %391 = vst [vmem:[#allocation2 + $0x18] sm:$0x1] %v7701_v0  ;;  %393 = vst [vmem:[#allocation2 + $0x48] sm:$0x1] %v7701_v0  ;;  %6909 = vmatprep.mubr.bf16.mxu0 %v7928_v7  ;;  %v7188_v12 = vld [vmem:[#allocation9 + $0x38] sm:$0xff]   ;;  %6373 = vmatprep.subr.bf16.mxu1 %v7187_v11  ;;  %v7190_v14 = vld [vmem:[#allocation9 + $0x30] sm:$0xff]  }
  0x7b   : > { %394 = vst [vmem:[#allocation2 + $0x60] sm:$0x1] %v7701_v0  ;;  %395 = vst [vmem:[#allocation2 + $0x78] sm:$0x1] %v7701_v0  ;;  %6896 = vmatpush3.bf16.msra.mxu0 %v7180_v2  ;;  %6374 = vmatpush3.bf16.msra.mxu1 %v7188_v12  ;;  %v7191_v15 = vld [vmem:[#allocation9 + $0x68] sm:$0xff]   ;;  %v7186_v16 = vld [vmem:[#allocation7] sm:$0xff]   ;;  %p7620_p7 = pnand %p7619_p10, %p8721_p12 }
  0x7c   : > { %396 = vst [vmem:[#allocation2 + $0x90] sm:$0x1] %v7701_v0  ;;  %397 = vst [vmem:[#allocation2 + $0xa8] sm:$0x1] %v7701_v0  ;;  %6897 = vmatprep.subr.bf16.mxu0 %v7181_v3  ;;  %6375 = vmatprep.subr.bf16.mxu1 %v7189_v13  ;;  %v425_v17 = vld [vmem:[%s7912_s18 + $0x10] sm:$0xff]  ;;  %v426_v18 = vld [vmem:[%s7912_s18 + $0x18] sm:$0xff] }
  0x7d   : > { %398 = vst [vmem:[#allocation2 + $0xc0] sm:$0x1] %v7701_v0  ;;  %399 = vst [vmem:[#allocation2 + $0xd8] sm:$0x1] %v7701_v0  ;;  %v7192_v19 = vld [vmem:[#allocation9 + $0x28] sm:$0xff]   ;;  %v427_v20 = vld [vmem:[%s7912_s18 + $0x20] sm:$0xff]  ;;  %v7935_v24 = vpack.c.bf16 %v426_v18, %v425_v17  ;;  %p7621_p1 = pneg %p7620_p7 }
  0x7e   : > { %400 = vst [vmem:[#allocation2 + $0xf0] sm:$0x1] %v7701_v0  ;;  %401 = vst [vmem:[#allocation2 + $0x108] sm:$0x1] %v7701_v0  ;;  %v428_v21 = vld [vmem:[%s7912_s18 + $0x28] sm:$0xff]  ;;  %v7193_v22 = vld [vmem:[#allocation9 + $0x60] sm:$0xff]  }
  0x7f   : > { %402 = vst [vmem:[#allocation2 + $0x120] sm:$0x1] %v7701_v0  ;;  %403 = vst [vmem:[#allocation2 + $0x138] sm:$0x1] %v7701_v0  ;;  %6898 = vmatpush3.bf16.msra.mxu0 %v7181_v3  ;;  %6376 = vmatpush3.bf16.msra.mxu1 %v7190_v14  ;;  %v7194_v23 = vld [vmem:[#allocation9 + $0x20] sm:$0xff]   ;;  %v7937_v25 = vpack.c.bf16 %v428_v21, %v427_v20  ;;  %v429_v26 = vld [vmem:[%s7912_s18 + $0x30] sm:$0xff] }
  0x80   : > { %404 = vst [vmem:[#allocation2 + $0x150] sm:$0x1] %v7701_v0  ;;  %405 = vst [vmem:[#allocation2 + $0x168] sm:$0x1] %v7701_v0  ;;  %6899 = vmatprep.subr.bf16.mxu0 %v7182_v4  ;;  %6377 = vmatprep.subr.bf16.mxu1 %v7191_v15  ;;  %v430_v27 = vld [vmem:[%s7912_s18 + $0x38] sm:$0xff]  ;;  %v431_v28 = vld [vmem:[%s7912_s18 + $0x40] sm:$0xff] }
  0x81   : > { %406 = vst [vmem:[#allocation2 + $0x180] sm:$0x1] %v7701_v0  ;;  %407 = vst [vmem:[#allocation2 + $0x29] sm:$0x1] %v7701_v0  ;;  %v432_v29 = vld [vmem:[%s7912_s18 + $0x48] sm:$0xff]  ;;  %v7945_v30 = vpack.c.bf16 %v430_v27, %v429_v26  ;;  %v433_v32 = vld [vmem:[%s7912_s18 + $0x50] sm:$0xff] }
  0x82   : > { %408 = vst [vmem:[#allocation2 + $0x41] sm:$0x1] %v7701_v0  ;;  %409 = vst [vmem:[#allocation2 + $0x59] sm:$0x1] %v7701_v0  ;;  %v7947_v31 = vpack.c.bf16 %v432_v29, %v431_v28  ;;  %v434_v33 = vld [vmem:[%s7912_s18 + $0x58] sm:$0xff]  ;;  %v435_v34 = vld [vmem:[%s7912_s18 + $0x60] sm:$0xff] }
  0x83   : > { %410 = vst [vmem:[#allocation2 + $0x71] sm:$0x1] %v7701_v0  ;;  %411 = vst [vmem:[#allocation2 + $0x89] sm:$0x1] %v7701_v0  ;;  %6900 = vmatpush3.bf16.msra.mxu0 %v7182_v4  ;;  %6378 = vmatpush3.bf16.msra.mxu1 %v7192_v19  ;;  %v436_v35 = vld [vmem:[%s7912_s18 + $0x68] sm:$0xff]  ;;  %v7955_v36 = vpack.c.bf16 %v434_v33, %v433_v32  ;;  %v437_v38 = vld [vmem:[%s7912_s18 + $0x70] sm:$0xff] }
  0x84   : > { %412 = vst [vmem:[#allocation2 + $0xa1] sm:$0x1] %v7701_v0  ;;  %413 = vst [vmem:[#allocation2 + $0xb9] sm:$0x1] %v7701_v0  ;;  %6901 = vmatprep.subr.bf16.mxu0 %v7183_v8  ;;  %6379 = vmatprep.subr.bf16.mxu1 %v7193_v22  ;;  %v7957_v37 = vpack.c.bf16 %v436_v35, %v435_v34  ;;  %v438_v39 = vld [vmem:[%s7912_s18 + $0x78] sm:$0xff]  ;;  %v439_v40 = vld [vmem:[%s7912_s18 + $0x80] sm:$0xff] }
  0x85   : > { %414 = vst [vmem:[#allocation2 + $0xd1] sm:$0x1] %v7701_v0  ;;  %415 = vst [vmem:[#allocation2 + $0xe9] sm:$0x1] %v7701_v0  ;;  %v440_v41 = vld [vmem:[%s7912_s18 + $0x88] sm:$0xff]  ;;  %v7965_v42 = vpack.c.bf16 %v438_v39, %v437_v38  ;;  %v441_v44 = vld [vmem:[%s7912_s18 + $0x90] sm:$0xff] }
  0x86   : > { %416 = vst [vmem:[#allocation2 + $0x101] sm:$0x1] %v7701_v0  ;;  %417 = vst [vmem:[#allocation2 + $0x119] sm:$0x1] %v7701_v0  ;;  %v7967_v43 = vpack.c.bf16 %v440_v41, %v439_v40  ;;  %v442_v45 = vld [vmem:[%s7912_s18 + $0x98] sm:$0xff]  ;;  %v443_v46 = vld [vmem:[%s7912_s18 + $0xa0] sm:$0xff] }
  0x87   : > { %418 = vst [vmem:[#allocation2 + $0x131] sm:$0x1] %v7701_v0  ;;  %419 = vst [vmem:[#allocation2 + $0x149] sm:$0x1] %v7701_v0  ;;  %6902 = vmatpush3.bf16.msra.mxu0 %v7183_v8  ;;  %6380 = vmatpush3.bf16.msra.mxu1 %v7194_v23  ;;  %v444_v47 = vld [vmem:[%s7912_s18 + $0xa8] sm:$0xff]  ;;  %v7975_v48 = vpack.c.bf16 %v442_v45, %v441_v44  ;;  %v445_v50 = vld [vmem:[%s7912_s18 + $0xb0] sm:$0xff] }
  0x88   : > { %420 = vst [vmem:[#allocation2 + $0x161] sm:$0x1] %v7701_v0  ;;  %421 = vst [vmem:[#allocation2 + $0x179] sm:$0x1] %v7701_v0  ;;  %6903 = vmatprep.subr.bf16.mxu0 %v7184_v9  ;;  %v7977_v49 = vpack.c.bf16 %v444_v47, %v443_v46  ;;  %v446_v51 = vld [vmem:[%s7912_s18 + $0xb8] sm:$0xff]  ;;  %v447_v52 = vld [vmem:[%s7912_s18 + $0xc0] sm:$0xff] }
  0x89   : > { %422 = vst [vmem:[#allocation2 + $0x191] sm:$0x1] %v7701_v0  ;;  %v448_v53 = vld [vmem:[%s7912_s18 + $0xc8] sm:$0xff]  ;;  %v7985_v54 = vpack.c.bf16 %v446_v51, %v445_v50  ;;  %v449_v56 = vld [vmem:[%s7912_s18 + $0xd0] sm:$0xff]  ;;  %v450_v57 = vld [vmem:[%s7912_s18 + $0xd8] sm:$0xff]  ;;  %v7702_v18 = vmov 0.0|0.0  }
  0x8a   : > { %v7987_v55 = vpack.c.bf16 %v448_v53, %v447_v52  ;;  %v451_v58 = vld [vmem:[%s7912_s18 + $0xe0] sm:$0xff]  ;;  %v452_v59 = vld [vmem:[%s7912_s18 + $0xe8] sm:$0xff]  ;;  %v7995_v60 = vpack.c.bf16 %v450_v57, %v449_v56  ;;  %v453_v62 = vld [vmem:[%s7912_s18 + $0xf0] sm:$0xff]  ;;  %927 = vst [vmem:[#allocation3] sm:$0xf] %v7702_v18  ;;  %s7703_s13 = smov [#allocation13]  }
  0x8b   : > { %6904 = vmatpush3.bf16.msra.mxu0 %v7184_v9  ;;  %v7997_v61 = vpack.c.bf16 %v452_v59, %v451_v58  ;;  %v454_v63 = vld [vmem:[%s7912_s18 + $0xf8] sm:$0xff]  ;;  %v7199_v5 = vld [vmem:[#allocation9 + $0xf0] sm:$0xff]   ;;  %v7204_v13 = vld [vmem:[#allocation9 + $0xa8] sm:$0xff]   ;;  %928 = vst [vmem:[#allocation3 + $0x24] sm:$0xf] %v7702_v18  ;;  %s8585_s18 = scalar_lea.hbm %s8640_s8, %s6348_s10  ;;  %s7622_s21 = sshll.u32 %s7703_s13, 4  ;;  %s7623_s21 = int_to_ptr.vmem [resolvable:$false] %s7622_s21 }
  0x8c   : > { %6905 = vmatprep.subr.bf16.mxu0 %v7185_v10  ;;  %v8003_v0 = vpack.c.bf16 %v454_v63, %v453_v62  ;;  %v7195_v1 = vld [vmem:[#allocation9 + $0xf8] sm:$0xff]   ;;  %v7200_v6 = vld [vmem:[#allocation9 + $0xb0] sm:$0xff]   ;;  %v7206_v17 = vld [vmem:[#allocation9 + $0x8] sm:$0xff]   ;;  %s7624_s20 = scalar_lea.vmem %s7623_s21, 8192  ;;  %p7625_p13 = scmp.lt.s32.totalorder %s8587_s23, %s7623_s21 }
  0x8d   : > { %v7196_v2 = vld [vmem:[#allocation9 + $0xb8] sm:$0xff]   ;;  %v7201_v8 = vld [vmem:[#allocation9 + $0x50] sm:$0xff]   ;;  %v7207_v19 = vld [vmem:[#allocation9 + $0xe0] sm:$0xff]   ;;  %p7626_p0 = scmp.lt.s32.totalorder %s7624_s20, %s7618_s9 }
  0x8e   : > { %v7197_v3 = vld [vmem:[#allocation9 + $0x58] sm:$0xff]   ;;  %v7202_v9 = vld [vmem:[#allocation9 + $0x10] sm:$0xff]   ;;  %v7208_v20 = vld [vmem:[#allocation9 + $0xa0] sm:$0xff]  }
  0x8f   : > { %6906 = vmatpush3.bf16.msra.mxu0 %v7185_v10  ;;  %v7198_v4 = vld [vmem:[#allocation9 + $0x18] sm:$0xff]   ;;  %6381 = vmatprep.subr.bf16.mxu1 %v7197_v3  ;;  %v7203_v10 = vld [vmem:[#allocation9 + $0xe8] sm:$0xff]   ;;  %v7209_v21 = vld [vmem:[#allocation9 + $0x40] sm:$0xff]   ;;  %p7627_p11 = por %p7626_p0, %p7625_p13 }
  0x90   : > { %6907 = vmatprep.subr.bf16.mxu0 %v7186_v16  ;;  %6382 = vmatpush3.bf16.msra.mxu1 %v7198_v4  ;;  %v959_v11 = vld [vmem:[#allocation2 + $0x1] sm:$0xff]  ;;  %v960_v12 = vld [vmem:[#allocation2 + $0x9] sm:$0xff]  ;;  %v7219_v39 = vld [vmem:[#allocation9 + $0xc8] sm:$0xff]  }
  0x91   : > { %6383 = vmatprep.subr.bf16.mxu1 %v7201_v8  ;;  %v6092_v14 = vpack.c.bf16 %v959_v11, %v959_v11  ;;  %v6093_v15 = vpack.c.bf16 %v960_v12, %v960_v12  ;;  %v7210_v22 = vld [vmem:[#allocation9] sm:$0xff]   ;;  %v7211_v23 = vld [vmem:[#allocation9 + $0xd8] sm:$0xff]   ;;  %v7216_v33 = vld [vmem:[#allocation9 + $0xd0] sm:$0xff]   ;;  %p7628_p5 = pnand %p7627_p11, %p7621_p1 }
  0x92   : > { %v7212_v27 = vld [vmem:[#allocation3] ss:$36 sps:$4 sm:$0xff]   ;;  %v7215_v28 = vld [vmem:[#allocation9 + $0x98] sm:$0xff]   ;;  %v7217_v34 = vld [vmem:[#allocation9 + $0x90] sm:$0xff]  }
  0x93   : > { %6908 = vmatpush3.bf16.msra.mxu0 %v7186_v16  ;;  %v7205_v16 = vld [vmem:[#allocation9 + $0x48] sm:$0xff]   ;;  %1119 = vst [vmem:[#allocation3 + $0x4] sm:$0xf] %v6092_v14  ;;  %1120 = vst [vmem:[#allocation3 + $0x28] sm:$0xf] %v6093_v15  ;;  %v1151_v29 = vld [vmem:[#allocation2 + $0x2] sm:$0xff] }
  0x94   : > { %6485 = vmatprep.subr.bf16.mxu0 %v7195_v1  ;;  %6384 = vmatpush3.bf16.msra.mxu1 %v7202_v9  ;;  %v6124_v32 = vpack.c.bf16 %v1151_v29, %v1151_v29  ;;  %v1152_v35 = vld [vmem:[#allocation2 + $0xa] sm:$0xff]  ;;  %v7221_v40 = vld [vmem:[#allocation9 + $0x88] sm:$0xff]   ;;  %v7234_v47 = vld [vmem:[#allocation9 + $0x170] sm:$0xff]  }
  0x95   : > { %6385 = vmatprep.subr.bf16.mxu1 %v7205_v16  ;;  %v6125_v38 = vpack.c.bf16 %v1152_v35, %v1152_v35  ;;  %v7222_v41 = vld [vmem:[#allocation9 + $0xc0] sm:$0xff]   ;;  %v7218_v45 = vld [vmem:[#allocation9 + $0x178] sm:$0xff]   ;;  %v7237_v50 = vld [vmem:[#allocation9 + $0x130] sm:$0xff]  }
  0x96   : > { %6910 = vmatmul.mubr.bf16.vlgmr.msra.gmra.mxu0 %v7935_v24  ;;  %1311 = vst [vmem:[#allocation3 + $0x8] sm:$0xf] %v6124_v32  ;;  %v7223_v44 = vld [vmem:[#allocation9 + $0x80] sm:$0xff]   ;;  %v7220_v46 = vld [vmem:[#allocation9 + $0x138] sm:$0xff]   ;;  %v7248_v51 = vld [vmem:[#allocation9 + $0x168] sm:$0xff]  }
  0x97   : > { %6913 = vmatprep.mubr.bf16.mxu0 %v7937_v25  ;;  %6486 = vmatpush3.bf16.msra.mxu0 %v7196_v2  ;;  %1312 = vst [vmem:[#allocation3 + $0x2c] sm:$0xf] %v6125_v38  ;;  %v7251_v52 = vld [vmem:[#allocation9 + $0x128] sm:$0xff]   ;;  %v7262_v53 = vld [vmem:[#allocation9 + $0x160] sm:$0xff]   ;;  %v7276_v57 = vld [vmem:[#allocation9 + $0x1f8] sm:$0xff]  }
  0x98   : > { %6487 = vmatprep.subr.bf16.mxu0 %v7199_v5  ;;  %6386 = vmatpush3.bf16.msra.mxu1 %v7206_v17  ;;  %v7265_v56 = vld [vmem:[#allocation9 + $0x120] sm:$0xff]   ;;  %v7278_v58 = vld [vmem:[#allocation9 + $0x158] sm:$0xff]   ;;  %v7294_v62 = vld [vmem:[#allocation9 + $0x150] sm:$0xff]  }
  0x99   : > { %6387 = vmatprep.subr.bf16.mxu1 %v7209_v21  ;;  %v7281_v59 = vld [vmem:[#allocation9 + $0x118] sm:$0xff]   ;;  %v7297_v63 = vld [vmem:[#allocation9 + $0x110] sm:$0xff]   ;;  %v7310_v1 = vld [vmem:[#allocation9 + $0x148] sm:$0xff]  }
  0x9a   : > { %v7214_v26 = vld [vmem:[#allocation3 + $0x4] ss:$36 sps:$4 sm:$0xff]   ;;  %v8009_v3 = vld [vmem:[%s8634_s2] ss:$0 sm:$0xff] }
  0x9b   : > { %6488 = vmatpush3.bf16.msra.mxu0 %v7200_v6  ;;  %4007 = vmatprep.mubr.bf16.mxu1 %v7214_v26  ;;  %v7313_v2 = vld [vmem:[#allocation9 + $0x108] sm:$0xff]   ;;  %v7326_v8 = vld [vmem:[#allocation9 + $0x140] sm:$0xff]  }
  0x9c   : > { %6489 = vmatprep.subr.bf16.mxu0 %v7203_v10  ;;  %6388 = vmatpush3.bf16.msra.mxu1 %v7210_v22 }
  0x9d   : > { %6597 = vmatprep.subr.bf16.mxu1 %v7218_v45 }
  0x9e   : > { %6914 = vmatmul.mubr.bf16.gmra.mxu0 %v7945_v30 }
  0x9f   : > { %6917 = vmatprep.mubr.bf16.mxu0 %v7947_v31  ;;  %6490 = vmatpush3.bf16.msra.mxu0 %v7204_v13 }
  0xa0   : > { %6491 = vmatprep.subr.bf16.mxu0 %v7207_v19  ;;  %4008 = vmatmul.mubr.bf16.vlgmr.msra.gmra.mxu1 %v7212_v27 }
  0xa1   : > { %6598 = vmatpush3.bf16.msra.mxu1 %v7220_v46 }
  0xa2   : > { %6599 = vmatprep.subr.bf16.mxu1 %v7234_v47 }
  0xa3   : > { %6492 = vmatpush3.bf16.msra.mxu0 %v7208_v20 }
  0xa4   : > { %6493 = vmatprep.subr.bf16.mxu0 %v7211_v23  ;;  %v7329_v23 = vld [vmem:[#allocation9 + $0x100] sm:$0xff]  }
  0xa5   : > { %6600 = vmatpush3.bf16.msra.mxu1 %v7237_v50 }
  0xa6   : > { %6918 = vmatmul.mubr.bf16.gmra.mxu0 %v7955_v36  ;;  %6601 = vmatprep.subr.bf16.mxu1 %v7248_v51 }
  0xa7   : > { %6921 = vmatprep.mubr.bf16.mxu0 %v7957_v37  ;;  %6494 = vmatpush3.bf16.msra.mxu0 %v7215_v28 }
  0xa8   : > { %6495 = vmatprep.subr.bf16.mxu0 %v7216_v33 }
  0xa9   : > { %6602 = vmatpush3.bf16.msra.mxu1 %v7251_v52 }
  0xaa   : > { %6603 = vmatprep.subr.bf16.mxu1 %v7262_v53 }
  0xab   : > { %6496 = vmatpush3.bf16.msra.mxu0 %v7217_v34 }
  0xac   : > { %6497 = vmatprep.subr.bf16.mxu0 %v7219_v39 }
  0xad   : > { %6604 = vmatpush3.bf16.msra.mxu1 %v7265_v56 }
  0xae   : > { %6922 = vmatmul.mubr.bf16.gmra.mxu0 %v7965_v42  ;;  %6605 = vmatprep.subr.bf16.mxu1 %v7278_v58 }
  0xaf   : > { %6925 = vmatprep.mubr.bf16.mxu0 %v7967_v43  ;;  %6498 = vmatpush3.bf16.msra.mxu0 %v7221_v40 }
  0xb0   : > { %6499 = vmatprep.subr.bf16.mxu0 %v7222_v41 }
  0xb1   : > { %6606 = vmatpush3.bf16.msra.mxu1 %v7281_v59 }
  0xb2   : > { %6607 = vmatprep.subr.bf16.mxu1 %v7294_v62 }
  0xb3   : > { %6500 = vmatpush3.bf16.msra.mxu0 %v7223_v44 }
  0xb4   : > { %6709 = vmatprep.subr.bf16.mxu0 %v7276_v57 }
  0xb5   : > { %6608 = vmatpush3.bf16.msra.mxu1 %v7297_v63 }
  0xb6   : > { %6926 = vmatmul.mubr.bf16.gmra.mxu0 %v7975_v48  ;;  %6609 = vmatprep.subr.bf16.mxu1 %v7310_v1 }
  0xb7   : > { %6929 = vmatprep.mubr.bf16.mxu0 %v7977_v49 }
  0xb9   : > { %6610 = vmatpush3.bf16.msra.mxu1 %v7313_v2 }
  0xba   : > { %6611 = vmatprep.subr.bf16.mxu1 %v7326_v8 }
  0xbd   : > { %6612 = vmatpush3.bf16.msra.mxu1 %v7329_v23 }
  0xbe   : > { %6930 = vmatmul.mubr.bf16.gmra.mxu0 %v7985_v54 }
  0xbf   : > { %6933 = vmatprep.mubr.bf16.mxu0 %v7987_v55 }
  0xc6   : > { %6934 = vmatmul.mubr.bf16.gmra.mxu0 %v7995_v60 }
  0xc7   : > { %6937 = vmatprep.mubr.bf16.mxu0 %v7997_v61 }
  0xce   : > { %6938 = vmatmul.mubr.bf16.gmra.mxu0 %v8003_v0 }
 0x156   : > { %v6911_v4 = vpop.f32.mrf.mxu0 }
 0x157   : > { %v585_v5 = vadd.f32 %v6911_v4, %v8009_v3 }
 0x158   : > { %v576_v6 = vpop.f32.mrf.mxu0 }
 0x159   : > { %v705_v9 = vmax.f32 %v585_v5, 0.0  ;;  %v577_v10 = vadd.f32 %v8009_v3, %v576_v6 }
 0x15a   : > { %v6912_v11 = vpop.f32.mrf.mxu0 }
 0x15b   : > { %737 = vst [vmem:[#allocation2 + $0x31] sm:$0xff] %v705_v9  ;;  %v6096_v12 = vpack.c.bf16 %v705_v9, %v705_v9  ;;  %v703_v13 = vmax.f32 %v577_v10, 0.0  ;;  %v588_v14 = vadd.f32 %v6912_v11, %v8009_v3 }
 0x15c   : > { %v579_v15 = vpop.f32.mrf.mxu0 }
 0x15d   : > { %1123 = vst [vmem:[#allocation3 + $0x94] sm:$0xf] %v6096_v12  ;;  %1697 = vst [vmem:[#allocation3 + $0x58] sm:$0xf] %v6096_v12  ;;  %v6094_v16 = vpack.c.bf16 %v703_v13, %v703_v13  ;;  %v706_v17 = vmax.f32 %v588_v14, 0.0  ;;  %v580_v18 = vadd.f32 %v8009_v3, %v579_v15  ;;  %v7345_v15 = vld [vmem:[#allocation9 + $0x238] sm:$0xff]  }
 0x15e   : > { %2272 = vst [vmem:[#allocation3 + $0x1c] sm:$0xf] %v6096_v12  ;;  %735 = vst [vmem:[#allocation2 + $0x19] sm:$0xff] %v703_v13  ;;  %v6915_v19 = vpop.f32.mrf.mxu0  ;;  %6941 = vmatprep.subr.bf16.mxu1 %v7345_v15 }
 0x15f   : > { %1121 = vst [vmem:[#allocation3 + $0x4c] sm:$0xf] %v6094_v16  ;;  %1695 = vst [vmem:[#allocation3 + $0x10] sm:$0xf] %v6094_v16  ;;  %v6097_v20 = vpack.c.bf16 %v706_v17, %v706_v17  ;;  %v704_v21 = vmax.f32 %v580_v18, 0.0  ;;  %v601_v22 = vadd.f32 %v6915_v19, %v8009_v3 }
 0x160   : > { %738 = vst [vmem:[#allocation2 + $0x39] sm:$0xff] %v706_v17  ;;  %v592_v26 = vpop.f32.mrf.mxu0 }
 0x161   : > { %1124 = vst [vmem:[#allocation3 + $0xb8] sm:$0xf] %v6097_v20  ;;  %1698 = vst [vmem:[#allocation3 + $0x7c] sm:$0xf] %v6097_v20  ;;  %v6095_v27 = vpack.c.bf16 %v704_v21, %v704_v21  ;;  %v709_v28 = vmax.f32 %v601_v22, 0.0  ;;  %v593_v29 = vadd.f32 %v8009_v3, %v592_v26 }
 0x162   : > { %2273 = vst [vmem:[#allocation3 + $0x40] sm:$0xf] %v6097_v20  ;;  %736 = vst [vmem:[#allocation2 + $0x21] sm:$0xff] %v704_v21  ;;  %v771_v32 = vld [vmem:[#allocation2 + $0x30] sm:$0xff]  ;;  %v6916_v33 = vpop.f32.mrf.mxu0 }
 0x163   : > { %v6064_v34 = vpack.c.bf16 %v771_v32, %v771_v32  ;;  %1122 = vst [vmem:[#allocation3 + $0x70] sm:$0xf] %v6095_v27  ;;  %1696 = vst [vmem:[#allocation3 + $0x34] sm:$0xf] %v6095_v27  ;;  %v6100_v35 = vpack.c.bf16 %v709_v28, %v709_v28  ;;  %v707_v38 = vmax.f32 %v593_v29, 0.0  ;;  %v604_v39 = vadd.f32 %v6916_v33, %v8009_v3 }
 0x164   : > { %741 = vst [vmem:[#allocation2 + $0x61] sm:$0xff] %v709_v28  ;;  %v595_v41 = vpop.f32.mrf.mxu0 }
 0x165   : > { %v769_v40 = vld [vmem:[#allocation2 + $0x18] sm:$0xff]  ;;  %931 = vst [vmem:[#allocation3 + $0x90] sm:$0xf] %v6064_v34  ;;  %1505 = vst [vmem:[#allocation3 + $0x54] sm:$0xf] %v6064_v34  ;;  %v6098_v45 = vpack.c.bf16 %v707_v38, %v707_v38  ;;  %v710_v46 = vmax.f32 %v604_v39, 0.0  ;;  %v596_v47 = vadd.f32 %v8009_v3, %v595_v41 }
 0x166   : > { %2080 = vst [vmem:[#allocation3 + $0x18] sm:$0xf] %v6064_v34  ;;  %v6062_v44 = vpack.c.bf16 %v769_v40, %v769_v40  ;;  %1127 = vst [vmem:[#allocation3 + $0x124] sm:$0xf] %v6100_v35  ;;  %v6919_v53 = vpop.f32.mrf.mxu0 }
 0x167   : > { %1701 = vst [vmem:[#allocation3 + $0xe8] sm:$0xf] %v6100_v35  ;;  %2276 = vst [vmem:[#allocation3 + $0xac] sm:$0xf] %v6100_v35  ;;  %v772_v50 = vld [vmem:[#allocation2 + $0x38] sm:$0xff]  ;;  %v6101_v59 = vpack.c.bf16 %v710_v46, %v710_v46  ;;  %v708_v2 = vmax.f32 %v596_v47, 0.0  ;;  %v617_v4 = vadd.f32 %v6919_v53, %v8009_v3 }
 0x168   : > { %739 = vst [vmem:[#allocation2 + $0x49] sm:$0xff] %v707_v38  ;;  %v1155_v51 = vld [vmem:[#allocation2 + $0x32] sm:$0xff]  ;;  %v1156_v52 = vld [vmem:[#allocation2 + $0x3a] sm:$0xff]  ;;  %929 = vst [vmem:[#allocation3 + $0x48] sm:$0xf] %v6062_v44  ;;  %v6065_v56 = vpack.c.bf16 %v772_v50, %v772_v50  ;;  %v608_v5 = vpop.f32.mrf.mxu0 }
 0x169   : > { %1503 = vst [vmem:[#allocation3 + $0xc] sm:$0xf] %v6062_v44  ;;  %v6128_v57 = vpack.c.bf16 %v1155_v51, %v1155_v51  ;;  %v6129_v58 = vpack.c.bf16 %v1156_v52, %v1156_v52  ;;  %1125 = vst [vmem:[#allocation3 + $0xdc] sm:$0xf] %v6098_v45  ;;  %v770_v62 = vld [vmem:[#allocation2 + $0x20] sm:$0xff]  ;;  %v609_v10 = vadd.f32 %v8009_v3, %v608_v5  ;;  %v713_v13 = vmax.f32 %v617_v4, 0.0 }
 0x16a   : > { %1699 = vst [vmem:[#allocation3 + $0xa0] sm:$0xf] %v6098_v45  ;;  %2274 = vst [vmem:[#allocation3 + $0x64] sm:$0xf] %v6098_v45  ;;  %v1153_v63 = vld [vmem:[#allocation2 + $0x1a] sm:$0xff]  ;;  %v1154_v1 = vld [vmem:[#allocation2 + $0x22] sm:$0xff]  ;;  %v6063_v6 = vpack.c.bf16 %v770_v62, %v770_v62  ;;  %v6099_v12 = vpack.c.bf16 %v708_v2, %v708_v2  ;;  %v6920_v14 = vpop.f32.mrf.mxu0 }
 0x16b   : > { %742 = vst [vmem:[#allocation2 + $0x69] sm:$0xff] %v710_v46  ;;  %932 = vst [vmem:[#allocation3 + $0xb4] sm:$0xf] %v6065_v56  ;;  %v6126_v8 = vpack.c.bf16 %v1153_v63, %v1153_v63  ;;  %v6127_v9 = vpack.c.bf16 %v1154_v1, %v1154_v1  ;;  %v775_v11 = vld [vmem:[#allocation2 + $0x60] sm:$0xff]  ;;  %v711_v17 = vmax.f32 %v609_v10, 0.0  ;;  %v620_v18 = vadd.f32 %v6920_v14, %v8009_v3  ;;  %v8026_v4 = vld [vmem:[#allocation9 + $0x1b8] sm:$0xff]  }
 0x16c   : > { %1315 = vst [vmem:[#allocation3 + $0x98] sm:$0xf] %v6128_v57  ;;  %1316 = vst [vmem:[#allocation3 + $0xbc] sm:$0xf] %v6129_v58  ;;  %v6068_v16 = vpack.c.bf16 %v775_v11, %v775_v11  ;;  %v6104_v20 = vpack.c.bf16 %v713_v13, %v713_v13  ;;  %v611_v21 = vpop.f32.mrf.mxu0  ;;  %v7292_v11 = vld [vmem:[#allocation9 + $0x1f0] sm:$0xff]  }
 0x16d   : > { %1506 = vst [vmem:[#allocation3 + $0x78] sm:$0xf] %v6065_v56  ;;  %1889 = vst [vmem:[#allocation3 + $0x5c] sm:$0xf] %v6128_v57  ;;  %v6102_v23 = vpack.c.bf16 %v711_v17, %v711_v17  ;;  %v714_v26 = vmax.f32 %v620_v18, 0.0  ;;  %v612_v27 = vadd.f32 %v8009_v3, %v611_v21 }
 0x16e   : > { %1890 = vst [vmem:[#allocation3 + $0x80] sm:$0xf] %v6129_v58  ;;  %2081 = vst [vmem:[#allocation3 + $0x3c] sm:$0xf] %v6065_v56  ;;  %v6923_v33 = vpop.f32.mrf.mxu0 }
 0x16f   : > { %2464 = vst [vmem:[#allocation3 + $0x20] sm:$0xf] %v6128_v57  ;;  %2465 = vst [vmem:[#allocation3 + $0x44] sm:$0xf] %v6129_v58  ;;  %v773_v19 = vld [vmem:[#allocation2 + $0x48] sm:$0xff]  ;;  %v6105_v39 = vpack.c.bf16 %v714_v26, %v714_v26  ;;  %v712_v40 = vmax.f32 %v612_v27, 0.0  ;;  %v633_v41 = vadd.f32 %v6923_v33, %v8009_v3 }
 0x170   : > { %1128 = vst [vmem:[#allocation3 + $0x148] sm:$0xf] %v6101_v59  ;;  %1702 = vst [vmem:[#allocation3 + $0x10c] sm:$0xf] %v6101_v59  ;;  %v6066_v22 = vpack.c.bf16 %v773_v19, %v773_v19  ;;  %v624_v44 = vpop.f32.mrf.mxu0  ;;  %v7224_v58 = vld [vmem:[#allocation3 + $0x4c] ss:$36 sps:$4 sm:$0xff]  }
 0x171   : > { %2277 = vst [vmem:[#allocation3 + $0xd0] sm:$0xf] %v6101_v59  ;;  %740 = vst [vmem:[#allocation2 + $0x51] sm:$0xff] %v708_v2  ;;  %v625_v50 = vadd.f32 %v8009_v3, %v624_v44  ;;  %v6103_v56 = vpack.c.bf16 %v712_v40, %v712_v40  ;;  %v717_v62 = vmax.f32 %v633_v41, 0.0  ;;  %v7226_v2 = vld [vmem:[#allocation3 + $0x8] ss:$36 sps:$4 sm:$0xff]   ;;  %4015 = vmatprep.mubr.bf16.mxu1 %v7224_v58 }
 0x172   : > { %930 = vst [vmem:[#allocation3 + $0x6c] sm:$0xf] %v6063_v6  ;;  %1313 = vst [vmem:[#allocation3 + $0x50] sm:$0xf] %v6126_v8  ;;  %v776_v28 = vld [vmem:[#allocation2 + $0x68] sm:$0xff]  ;;  %v6924_v57 = vpop.f32.mrf.mxu0 }
 0x173   : > { %1314 = vst [vmem:[#allocation3 + $0x74] sm:$0xf] %v6127_v9  ;;  %1504 = vst [vmem:[#allocation3 + $0x30] sm:$0xf] %v6063_v6  ;;  %v1159_v29 = vld [vmem:[#allocation2 + $0x62] sm:$0xff]  ;;  %v1160_v32 = vld [vmem:[#allocation2 + $0x6a] sm:$0xff]  ;;  %v6069_v34 = vpack.c.bf16 %v776_v28, %v776_v28  ;;  %v636_v1 = vadd.f32 %v6924_v57, %v8009_v3 }
 0x174   : > { %1887 = vst [vmem:[#allocation3 + $0x14] sm:$0xf] %v6126_v8  ;;  %1888 = vst [vmem:[#allocation3 + $0x38] sm:$0xf] %v6127_v9  ;;  %v6132_v35 = vpack.c.bf16 %v1159_v29, %v1159_v29  ;;  %v6133_v38 = vpack.c.bf16 %v1160_v32, %v1160_v32  ;;  %v715_v63 = vmax.f32 %v625_v50, 0.0  ;;  %v627_v9 = vpop.f32.mrf.mxu0  ;;  %v7308_v50 = vld [vmem:[#allocation9 + $0x1e8] sm:$0xff]  }
 0x175   : > { %1126 = vst [vmem:[#allocation3 + $0x100] sm:$0xf] %v6099_v12  ;;  %1700 = vst [vmem:[#allocation3 + $0xc4] sm:$0xf] %v6099_v12  ;;  %v718_v15 = vmax.f32 %v636_v1, 0.0  ;;  %v628_v21 = vadd.f32 %v8009_v3, %v627_v9  ;;  %v8033_v57 = vld [vmem:[#allocation9 + $0x1a8] sm:$0xff]  }
 0x176   : > { %2275 = vst [vmem:[#allocation3 + $0x88] sm:$0xf] %v6099_v12  ;;  %745 = vst [vmem:[#allocation2 + $0x91] sm:$0xff] %v713_v13  ;;  %v6108_v13 = vpack.c.bf16 %v717_v62, %v717_v62  ;;  %v6106_v14 = vpack.c.bf16 %v715_v63, %v715_v63  ;;  %v8035_v1 = vld [vmem:[#allocation9 + $0x1e0] sm:$0xff]  }
 0x177   : > { %935 = vst [vmem:[#allocation3 + $0x120] sm:$0xf] %v6068_v16  ;;  %1509 = vst [vmem:[#allocation3 + $0xe4] sm:$0xf] %v6068_v16  ;;  %v6109_v28 = vpack.c.bf16 %v718_v15, %v718_v15  ;;  %v716_v29 = vmax.f32 %v628_v21, 0.0 }
 0x178   : > { %2084 = vst [vmem:[#allocation3 + $0xa8] sm:$0xf] %v6068_v16  ;;  %743 = vst [vmem:[#allocation2 + $0x79] sm:$0xff] %v711_v17  ;;  %v774_v45 = vld [vmem:[#allocation2 + $0x50] sm:$0xff]  ;;  %v7230_v16 = vld [vmem:[#allocation3 + $0x94] ss:$36 sps:$4 sm:$0xff]  }
 0x179   : > { %1131 = vst [vmem:[#allocation3 + $0x1b4] sm:$0xf] %v6104_v20  ;;  %1705 = vst [vmem:[#allocation3 + $0x178] sm:$0xf] %v6104_v20  ;;  %v1157_v46 = vld [vmem:[#allocation2 + $0x4a] sm:$0xff]  ;;  %v1158_v47 = vld [vmem:[#allocation2 + $0x52] sm:$0xff]  ;;  %v6067_v51 = vpack.c.bf16 %v774_v45, %v774_v45 }
 0x17a   : > { %2280 = vst [vmem:[#allocation3 + $0x13c] sm:$0xf] %v6104_v20  ;;  %933 = vst [vmem:[#allocation3 + $0xd8] sm:$0xf] %v6066_v22  ;;  %v6130_v52 = vpack.c.bf16 %v1157_v46, %v1157_v46  ;;  %v6131_v53 = vpack.c.bf16 %v1158_v47, %v1158_v47  ;;  %v7228_v8 = vld [vmem:[#allocation3 + $0xc] ss:$36 sps:$4 sm:$0xff]   ;;  %v6107_v46 = vpack.c.bf16 %v716_v29, %v716_v29 }
 0x17b   : > { %1507 = vst [vmem:[#allocation3 + $0x9c] sm:$0xf] %v6066_v22  ;;  %2082 = vst [vmem:[#allocation3 + $0x60] sm:$0xf] %v6066_v22  ;;  %v7229_v10 = vld [vmem:[#allocation3 + $0x48] ss:$36 sps:$4 sm:$0xff]   ;;  %4168 = vmatprep.mubr.bf16.mxu0 %v7228_v8  ;;  %v6927_v22 = vpop.f32.mrf.mxu0 }
 0x17c   : > { %1129 = vst [vmem:[#allocation3 + $0x16c] sm:$0xf] %v6102_v23  ;;  %1703 = vst [vmem:[#allocation3 + $0x130] sm:$0xf] %v6102_v23  ;;  %v7232_v17 = vld [vmem:[#allocation3 + $0x54] ss:$36 sps:$4 sm:$0xff]   ;;  %4016 = vmatmul.mubr.bf16.gmra.mxu1 %v7229_v10  ;;  %4169 = vmatmul.mubr.bf16.vlgmr.msra.gmra.mxu0 %v7226_v2  ;;  %v649_v32 = vadd.f32 %v6927_v22, %v8009_v3 }
 0x17d   : > { %2278 = vst [vmem:[#allocation3 + $0xf4] sm:$0xf] %v6102_v23  ;;  %746 = vst [vmem:[#allocation2 + $0x99] sm:$0xff] %v714_v26  ;;  %v779_v59 = vld [vmem:[#allocation2 + $0x90] sm:$0xff]  ;;  %4023 = vmatprep.mubr.bf16.mxu1 %v7230_v16  ;;  %4176 = vmatprep.mubr.bf16.mxu0 %v7232_v17  ;;  %v640_v33 = vpop.f32.mrf.mxu0 }
 0x17e   : > { %936 = vst [vmem:[#allocation3 + $0x144] sm:$0xf] %v6069_v34  ;;  %1319 = vst [vmem:[#allocation3 + $0x128] sm:$0xf] %v6132_v35  ;;  %v6072_v5 = vpack.c.bf16 %v779_v59, %v779_v59  ;;  %6710 = vmatpush3.bf16.msra.mxu0 %v8026_v4 }
 0x17f   : > { %1320 = vst [vmem:[#allocation3 + $0x14c] sm:$0xf] %v6133_v38  ;;  %1510 = vst [vmem:[#allocation3 + $0x108] sm:$0xf] %v6069_v34  ;;  %v777_v6 = vld [vmem:[#allocation2 + $0x78] sm:$0xff]  ;;  %v6928_v47 = vpop.f32.mrf.mxu0  ;;  %6711 = vmatprep.subr.bf16.mxu0 %v7292_v11 }
 0x180   : > { %1893 = vst [vmem:[#allocation3 + $0xec] sm:$0xf] %v6132_v35  ;;  %1894 = vst [vmem:[#allocation3 + $0x110] sm:$0xf] %v6133_v38  ;;  %v6070_v12 = vpack.c.bf16 %v777_v6, %v777_v6 }
 0x181   : > { %2085 = vst [vmem:[#allocation3 + $0xcc] sm:$0xf] %v6069_v34  ;;  %2468 = vst [vmem:[#allocation3 + $0xb0] sm:$0xf] %v6132_v35  ;;  %v7293_v34 = vld [vmem:[#allocation9 + $0x1b0] sm:$0xff]  }
 0x182   : > { %2469 = vst [vmem:[#allocation3 + $0xd4] sm:$0xf] %v6133_v38  ;;  %1132 = vst [vmem:[#allocation3 + $0x1d8] sm:$0xf] %v6105_v39  ;;  %6712 = vmatpush3.bf16.msra.mxu0 %v7293_v34 }
 0x183   : > { %1706 = vst [vmem:[#allocation3 + $0x19c] sm:$0xf] %v6105_v39  ;;  %2281 = vst [vmem:[#allocation3 + $0x160] sm:$0xf] %v6105_v39  ;;  %6713 = vmatprep.subr.bf16.mxu0 %v7308_v50 }
 0x184   : > { %744 = vst [vmem:[#allocation2 + $0x81] sm:$0xff] %v712_v40  ;;  %2466 = vst [vmem:[#allocation3 + $0x68] sm:$0xf] %v6130_v52  ;;  %v780_v18 = vld [vmem:[#allocation2 + $0x98] sm:$0xff]  ;;  %v641_v40 = vadd.f32 %v8009_v3, %v640_v33 }
 0x185   : > { %2467 = vst [vmem:[#allocation3 + $0x8c] sm:$0xf] %v6131_v53  ;;  %934 = vst [vmem:[#allocation3 + $0xfc] sm:$0xf] %v6067_v51  ;;  %v1163_v19 = vld [vmem:[#allocation2 + $0x92] sm:$0xff]  ;;  %v1164_v20 = vld [vmem:[#allocation2 + $0x9a] sm:$0xff]  ;;  %v6073_v23 = vpack.c.bf16 %v780_v18, %v780_v18 }
 0x186   : > { %1317 = vst [vmem:[#allocation3 + $0xe0] sm:$0xf] %v6130_v52  ;;  %1318 = vst [vmem:[#allocation3 + $0x104] sm:$0xf] %v6131_v53  ;;  %v6136_v26 = vpack.c.bf16 %v1163_v19, %v1163_v19  ;;  %v6137_v27 = vpack.c.bf16 %v1164_v20, %v1164_v20  ;;  %v7325_v19 = vld [vmem:[#allocation9 + $0x1a0] sm:$0xff]   ;;  %6714 = vmatpush3.bf16.msra.mxu0 %v8033_v57 }
 0x187   : > { %1508 = vst [vmem:[#allocation3 + $0xc0] sm:$0xf] %v6067_v51  ;;  %1891 = vst [vmem:[#allocation3 + $0xa4] sm:$0xf] %v6130_v52  ;;  %v721_v52 = vmax.f32 %v649_v32, 0.0  ;;  %6715 = vmatprep.subr.bf16.mxu0 %v8035_v1 }
 0x188   : > { %1892 = vst [vmem:[#allocation3 + $0xc8] sm:$0xf] %v6131_v53  ;;  %2083 = vst [vmem:[#allocation3 + $0x84] sm:$0xf] %v6067_v51  ;;  %v7235_v51 = vld [vmem:[#allocation3 + $0x90] ss:$36 sps:$4 sm:$0xff]  }
 0x189   : > { %1130 = vst [vmem:[#allocation3 + $0x190] sm:$0xf] %v6103_v56  ;;  %1704 = vst [vmem:[#allocation3 + $0x154] sm:$0xf] %v6103_v56  ;;  %v719_v53 = vmax.f32 %v641_v40, 0.0  ;;  %v6112_v8 = vpack.c.bf16 %v721_v52, %v721_v52  ;;  %4024 = vmatmul.mubr.bf16.gmra.mxu1 %v7235_v51 }
 0x18a   : > { %2279 = vst [vmem:[#allocation3 + $0x118] sm:$0xf] %v6103_v56  ;;  %749 = vst [vmem:[#allocation2 + $0xc1] sm:$0xff] %v717_v62  ;;  %v652_v56 = vadd.f32 %v6928_v47, %v8009_v3  ;;  %v7236_v62 = vld [vmem:[#allocation3 + $0x50] ss:$36 sps:$4 sm:$0xff]   ;;  %6716 = vmatpush3.bf16.msra.mxu0 %v7325_v19 }
 0x18b   : > { %747 = vst [vmem:[#allocation2 + $0xa9] sm:$0xff] %v715_v63  ;;  %939 = vst [vmem:[#allocation3 + $0x1b0] sm:$0xf] %v6072_v5  ;;  %v778_v35 = vld [vmem:[#allocation2 + $0x80] sm:$0xff]  ;;  %v643_v63 = vpop.f32.mrf.mxu0  ;;  %v6110_v9 = vpack.c.bf16 %v719_v53, %v719_v53  ;;  %4177 = vmatmul.mubr.bf16.gmra.mxu0 %v7236_v62  ;;  %v7244_v57 = vld [vmem:[#allocation3 + $0x124] ss:$36 sps:$4 sm:$0xff]  }
 0x18c   : > { %1513 = vst [vmem:[#allocation3 + $0x174] sm:$0xf] %v6072_v5  ;;  %2088 = vst [vmem:[#allocation3 + $0x138] sm:$0xf] %v6072_v5  ;;  %v1161_v38 = vld [vmem:[#allocation2 + $0x7a] sm:$0xff]  ;;  %v1162_v39 = vld [vmem:[#allocation2 + $0x82] sm:$0xff]  ;;  %v6071_v41 = vpack.c.bf16 %v778_v35, %v778_v35 }
 0x18d   : > { %937 = vst [vmem:[#allocation3 + $0x168] sm:$0xf] %v6070_v12  ;;  %1511 = vst [vmem:[#allocation3 + $0x12c] sm:$0xf] %v6070_v12  ;;  %v6134_v44 = vpack.c.bf16 %v1161_v38, %v1161_v38  ;;  %v6135_v45 = vpack.c.bf16 %v1162_v39, %v1162_v39  ;;  %v7238_v5 = vld [vmem:[#allocation3 + $0xdc] ss:$36 sps:$4 sm:$0xff]  }
 0x18e   : > { %2086 = vst [vmem:[#allocation3 + $0xf0] sm:$0xf] %v6070_v12  ;;  %1135 = vst [vmem:[#allocation3 + $0x244] sm:$0xf] %v6108_v13  ;;  %v7240_v6 = vld [vmem:[#allocation3 + $0x9c] ss:$36 sps:$4 sm:$0xff]   ;;  %4031 = vmatprep.mubr.bf16.mxu1 %v7238_v5 }
 0x18f   : > { %1709 = vst [vmem:[#allocation3 + $0x208] sm:$0xf] %v6108_v13  ;;  %2284 = vst [vmem:[#allocation3 + $0x1cc] sm:$0xf] %v6108_v13  ;;  %v722_v13 = vmax.f32 %v652_v56, 0.0  ;;  %4184 = vmatprep.mubr.bf16.mxu0 %v7240_v6  ;;  %v7336_v39 = vld [vmem:[#allocation9 + $0x1d8] sm:$0xff]  }
 0x190   : > { %1133 = vst [vmem:[#allocation3 + $0x1fc] sm:$0xf] %v6106_v14  ;;  %1707 = vst [vmem:[#allocation3 + $0x1c0] sm:$0xf] %v6106_v14  ;;  %v7242_v50 = vld [vmem:[#allocation3 + $0xd8] ss:$36 sps:$4 sm:$0xff]   ;;  %6717 = vmatprep.subr.bf16.mxu0 %v7336_v39 }
 0x191   : > { %2282 = vst [vmem:[#allocation3 + $0x184] sm:$0xf] %v6106_v14  ;;  %750 = vst [vmem:[#allocation2 + $0xc9] sm:$0xff] %v718_v15  ;;  %v783_v58 = vld [vmem:[#allocation2 + $0xc0] sm:$0xff]  ;;  %v644_v14 = vadd.f32 %v8009_v3, %v643_v63  ;;  %v6931_v15 = vpop.f32.mrf.mxu0  ;;  %v6113_v20 = vpack.c.bf16 %v722_v13, %v722_v13  ;;  %v7243_v56 = vld [vmem:[#allocation3 + $0x98] ss:$36 sps:$4 sm:$0xff]   ;;  %4032 = vmatmul.mubr.bf16.gmra.mxu1 %v7242_v50 }
 0x192   : > { %940 = vst [vmem:[#allocation3 + $0x1d4] sm:$0xf] %v6073_v23  ;;  %1323 = vst [vmem:[#allocation3 + $0x1b8] sm:$0xf] %v6136_v26  ;;  %v781_v59 = vld [vmem:[#allocation2 + $0xa8] sm:$0xff]  ;;  %v6076_v2 = vpack.c.bf16 %v783_v58, %v783_v58  ;;  %v665_v22 = vadd.f32 %v6931_v15, %v8009_v3  ;;  %4039 = vmatprep.mubr.bf16.mxu1 %v7244_v57 }
 0x193   : > { %1324 = vst [vmem:[#allocation3 + $0x1dc] sm:$0xf] %v6137_v27  ;;  %1514 = vst [vmem:[#allocation3 + $0x198] sm:$0xf] %v6073_v23  ;;  %v6074_v4 = vpack.c.bf16 %v781_v59, %v781_v59  ;;  %v720_v21 = vmax.f32 %v644_v14, 0.0  ;;  %4185 = vmatmul.mubr.bf16.gmra.mxu0 %v7243_v56 }
 0x194   : > { %1897 = vst [vmem:[#allocation3 + $0x17c] sm:$0xf] %v6136_v26  ;;  %1898 = vst [vmem:[#allocation3 + $0x1a0] sm:$0xf] %v6137_v27  ;;  %v725_v40 = vmax.f32 %v665_v22, 0.0 }
 0x195   : > { %2089 = vst [vmem:[#allocation3 + $0x15c] sm:$0xf] %v6073_v23  ;;  %2472 = vst [vmem:[#allocation3 + $0x140] sm:$0xf] %v6136_v26  ;;  %v656_v23 = vpop.f32.mrf.mxu0  ;;  %v6111_v35 = vpack.c.bf16 %v720_v21, %v720_v21  ;;  %v7246_v62 = vld [vmem:[#allocation3 + $0xe4] ss:$36 sps:$4 sm:$0xff]  }
 0x196   : > { %2473 = vst [vmem:[#allocation3 + $0x164] sm:$0xf] %v6137_v27  ;;  %1136 = vst [vmem:[#allocation3 + $0x268] sm:$0xf] %v6109_v28  ;;  %v6116_v58 = vpack.c.bf16 %v725_v40, %v725_v40  ;;  %4192 = vmatprep.mubr.bf16.mxu0 %v7246_v62 }
 0x197   : > { %1710 = vst [vmem:[#allocation3 + $0x22c] sm:$0xf] %v6109_v28  ;;  %2285 = vst [vmem:[#allocation3 + $0x1f0] sm:$0xf] %v6109_v28  ;;  %v6932_v38 = vpop.f32.mrf.mxu0 }
 0x198   : > { %748 = vst [vmem:[#allocation2 + $0xb1] sm:$0xff] %v716_v29  ;;  %2470 = vst [vmem:[#allocation3 + $0xf8] sm:$0xf] %v6134_v44  ;;  %v784_v10 = vld [vmem:[#allocation2 + $0xc8] sm:$0xff]  ;;  %v657_v29 = vadd.f32 %v8009_v3, %v656_v23 }
 0x199   : > { %2471 = vst [vmem:[#allocation3 + $0x11c] sm:$0xf] %v6135_v45  ;;  %938 = vst [vmem:[#allocation3 + $0x18c] sm:$0xf] %v6071_v41  ;;  %v1167_v11 = vld [vmem:[#allocation2 + $0xc2] sm:$0xff]  ;;  %v1168_v12 = vld [vmem:[#allocation2 + $0xca] sm:$0xff]  ;;  %v6077_v16 = vpack.c.bf16 %v784_v10, %v784_v10  ;;  %v659_v51 = vpop.f32.mrf.mxu0 }
 0x19a   : > { %1321 = vst [vmem:[#allocation3 + $0x170] sm:$0xf] %v6134_v44  ;;  %1322 = vst [vmem:[#allocation3 + $0x194] sm:$0xf] %v6135_v45  ;;  %v6140_v17 = vpack.c.bf16 %v1167_v11, %v1167_v11  ;;  %v6141_v18 = vpack.c.bf16 %v1168_v12, %v1168_v12  ;;  %v660_v1 = vadd.f32 %v8009_v3, %v659_v51  ;;  %v8047_v10 = vld [vmem:[#allocation9 + $0x190] sm:$0xff]  }
 0x19b   : > { %1512 = vst [vmem:[#allocation3 + $0x150] sm:$0xf] %v6071_v41  ;;  %1895 = vst [vmem:[#allocation3 + $0x134] sm:$0xf] %v6134_v44  ;;  %v668_v44 = vadd.f32 %v6932_v38, %v8009_v3 }
 0x19c   : > { %1896 = vst [vmem:[#allocation3 + $0x158] sm:$0xf] %v6135_v45  ;;  %2087 = vst [vmem:[#allocation3 + $0x114] sm:$0xf] %v6071_v41  ;;  %v723_v41 = vmax.f32 %v657_v29, 0.0  ;;  %v8043_v45 = vld [vmem:[#allocation9 + $0x198] sm:$0xff]  }
 0x19d   : > { %1134 = vst [vmem:[#allocation3 + $0x220] sm:$0xf] %v6107_v46  ;;  %1708 = vst [vmem:[#allocation3 + $0x1e4] sm:$0xf] %v6107_v46  ;;  %v726_v63 = vmax.f32 %v668_v44, 0.0  ;;  %v724_v19 = vmax.f32 %v660_v1, 0.0  ;;  %6718 = vmatpush3.bf16.msra.mxu0 %v8043_v45 }
 0x19e   : > { %2283 = vst [vmem:[#allocation3 + $0x1a8] sm:$0xf] %v6107_v46  ;;  %753 = vst [vmem:[#allocation2 + $0xf1] sm:$0xff] %v721_v52  ;;  %v6114_v59 = vpack.c.bf16 %v723_v41, %v723_v41  ;;  %v7252_v44 = vld [vmem:[#allocation3 + $0x16c] ss:$36 sps:$4 sm:$0xff]  }
 0x19f   : > { %751 = vst [vmem:[#allocation2 + $0xd9] sm:$0xff] %v719_v53  ;;  %943 = vst [vmem:[#allocation3 + $0x240] sm:$0xf] %v6076_v2  ;;  %v782_v26 = vld [vmem:[#allocation2 + $0xb0] sm:$0xff]  ;;  %v6117_v14 = vpack.c.bf16 %v726_v63, %v726_v63  ;;  %v6115_v29 = vpack.c.bf16 %v724_v19, %v724_v19 }
 0x1a0   : > { %1517 = vst [vmem:[#allocation3 + $0x204] sm:$0xf] %v6076_v2  ;;  %2092 = vst [vmem:[#allocation3 + $0x1c8] sm:$0xf] %v6076_v2  ;;  %v1165_v27 = vld [vmem:[#allocation2 + $0xaa] sm:$0xff]  ;;  %v1166_v28 = vld [vmem:[#allocation2 + $0xb2] sm:$0xff]  ;;  %v6075_v32 = vpack.c.bf16 %v782_v26, %v782_v26  ;;  %v6935_v2 = vpop.f32.mrf.mxu0 }
 0x1a1   : > { %941 = vst [vmem:[#allocation3 + $0x1f8] sm:$0xf] %v6074_v4  ;;  %1515 = vst [vmem:[#allocation3 + $0x1bc] sm:$0xf] %v6074_v4  ;;  %v6138_v33 = vpack.c.bf16 %v1165_v27, %v1165_v27  ;;  %v6139_v34 = vpack.c.bf16 %v1166_v28, %v1166_v28  ;;  %v7347_v28 = vld [vmem:[#allocation9 + $0x1c8] sm:$0xff]  }
 0x1a2   : > { %2090 = vst [vmem:[#allocation3 + $0x180] sm:$0xf] %v6074_v4  ;;  %1139 = vst [vmem:[#allocation3 + $0x2d4] sm:$0xf] %v6112_v8  ;;  %v7343_v4 = vld [vmem:[#allocation9 + $0x1d0] sm:$0xff]   ;;  %v672_v15 = vpop.f32.mrf.mxu0 }
 0x1a3   : > { %1713 = vst [vmem:[#allocation3 + $0x298] sm:$0xf] %v6112_v8  ;;  %2288 = vst [vmem:[#allocation3 + $0x25c] sm:$0xf] %v6112_v8  ;;  %6719 = vmatprep.subr.bf16.mxu0 %v7343_v4  ;;  %v7254_v51 = vld [vmem:[#allocation3 + $0x12c] ss:$36 sps:$4 sm:$0xff]  }
 0x1a4   : > { %1137 = vst [vmem:[#allocation3 + $0x28c] sm:$0xf] %v6110_v9  ;;  %1711 = vst [vmem:[#allocation3 + $0x250] sm:$0xf] %v6110_v9  ;;  %v6936_v27 = vpop.f32.mrf.mxu0  ;;  %6720 = vmatpush3.bf16.msra.mxu0 %v8047_v10 }
 0x1a5   : > { %2286 = vst [vmem:[#allocation3 + $0x214] sm:$0xf] %v6110_v9  ;;  %754 = vst [vmem:[#allocation2 + $0xf9] sm:$0xff] %v722_v13  ;;  %v787_v46 = vld [vmem:[#allocation2 + $0xf0] sm:$0xff]  ;;  %v681_v9 = vadd.f32 %v6935_v2, %v8009_v3  ;;  %6721 = vmatprep.subr.bf16.mxu0 %v7347_v28  ;;  %v7257_v28 = vld [vmem:[#allocation3 + $0x128] ss:$36 sps:$4 sm:$0xff]  }
 0x1a6   : > { %944 = vst [vmem:[#allocation3 + $0x264] sm:$0xf] %v6077_v16  ;;  %1327 = vst [vmem:[#allocation3 + $0x248] sm:$0xf] %v6140_v17  ;;  %v785_v47 = vld [vmem:[#allocation2 + $0xd8] sm:$0xff]  ;;  %v6080_v52 = vpack.c.bf16 %v787_v46, %v787_v46 }
 0x1a7   : > { %1328 = vst [vmem:[#allocation3 + $0x26c] sm:$0xf] %v6141_v18  ;;  %1518 = vst [vmem:[#allocation3 + $0x228] sm:$0xf] %v6077_v16  ;;  %v6078_v53 = vpack.c.bf16 %v785_v47, %v785_v47 }
 0x1a8   : > { %1901 = vst [vmem:[#allocation3 + $0x20c] sm:$0xf] %v6140_v17  ;;  %1902 = vst [vmem:[#allocation3 + $0x230] sm:$0xf] %v6141_v18 }
 0x1a9   : > { %2093 = vst [vmem:[#allocation3 + $0x1ec] sm:$0xf] %v6077_v16  ;;  %2476 = vst [vmem:[#allocation3 + $0x1d0] sm:$0xf] %v6140_v17 }
 0x1aa   : > { %2477 = vst [vmem:[#allocation3 + $0x1f4] sm:$0xf] %v6141_v18  ;;  %1140 = vst [vmem:[#allocation3 + $0x2f8] sm:$0xf] %v6113_v20 }
 0x1ab   : > { %1714 = vst [vmem:[#allocation3 + $0x2bc] sm:$0xf] %v6113_v20  ;;  %2289 = vst [vmem:[#allocation3 + $0x280] sm:$0xf] %v6113_v20  ;;  %v729_v20 = vmax.f32 %v681_v9, 0.0 }
 0x1ac   : > { %752 = vst [vmem:[#allocation2 + $0xe1] sm:$0xff] %v720_v21  ;;  %2474 = vst [vmem:[#allocation3 + $0x188] sm:$0xf] %v6138_v33  ;;  %v788_v5 = vld [vmem:[#allocation2 + $0xf8] sm:$0xff]  ;;  %v673_v21 = vadd.f32 %v8009_v3, %v672_v15 }
 0x1ad   : > { %2475 = vst [vmem:[#allocation3 + $0x1ac] sm:$0xf] %v6139_v34  ;;  %942 = vst [vmem:[#allocation3 + $0x21c] sm:$0xf] %v6075_v32  ;;  %v1171_v6 = vld [vmem:[#allocation2 + $0xf2] sm:$0xff]  ;;  %v1172_v8 = vld [vmem:[#allocation2 + $0xfa] sm:$0xff]  ;;  %v6081_v11 = vpack.c.bf16 %v788_v5, %v788_v5 }
 0x1ae   : > { %1325 = vst [vmem:[#allocation3 + $0x200] sm:$0xf] %v6138_v33  ;;  %1326 = vst [vmem:[#allocation3 + $0x224] sm:$0xf] %v6139_v34  ;;  %v6144_v12 = vpack.c.bf16 %v1171_v6, %v1171_v6  ;;  %v6145_v13 = vpack.c.bf16 %v1172_v8, %v1172_v8 }
 0x1af   : > { %1516 = vst [vmem:[#allocation3 + $0x1e0] sm:$0xf] %v6075_v32  ;;  %1899 = vst [vmem:[#allocation3 + $0x1c4] sm:$0xf] %v6138_v33  ;;  %v727_v33 = vmax.f32 %v673_v21, 0.0 }
 0x1b0   : > { %1900 = vst [vmem:[#allocation3 + $0x1e8] sm:$0xf] %v6139_v34  ;;  %2091 = vst [vmem:[#allocation3 + $0x1a4] sm:$0xf] %v6075_v32  ;;  %v6120_v32 = vpack.c.bf16 %v729_v20, %v729_v20  ;;  %v684_v34 = vadd.f32 %v6936_v27, %v8009_v3 }
 0x1b1   : > { %1138 = vst [vmem:[#allocation3 + $0x2b0] sm:$0xf] %v6111_v35  ;;  %1712 = vst [vmem:[#allocation3 + $0x274] sm:$0xf] %v6111_v35  ;;  %v6118_v47 = vpack.c.bf16 %v727_v33, %v727_v33 }
 0x1b2   : > { %2287 = vst [vmem:[#allocation3 + $0x238] sm:$0xf] %v6111_v35  ;;  %757 = vst [vmem:[#allocation2 + $0x121] sm:$0xff] %v725_v40  ;;  %v7249_v35 = vld [vmem:[#allocation3 + $0x120] ss:$36 sps:$4 sm:$0xff]   ;;  %v675_v40 = vpop.f32.mrf.mxu0  ;;  %v730_v50 = vmax.f32 %v684_v34, 0.0 }
 0x1b3   : > { %755 = vst [vmem:[#allocation2 + $0x109] sm:$0xff] %v723_v41  ;;  %947 = vst [vmem:[#allocation3 + $0x2d0] sm:$0xf] %v6080_v52  ;;  %v786_v16 = vld [vmem:[#allocation2 + $0xe0] sm:$0xff]  ;;  %v7250_v41 = vld [vmem:[#allocation3 + $0xe0] ss:$36 sps:$4 sm:$0xff]   ;;  %4040 = vmatmul.mubr.bf16.gmra.mxu1 %v7249_v35 }
 0x1b4   : > { %1521 = vst [vmem:[#allocation3 + $0x294] sm:$0xf] %v6080_v52  ;;  %2096 = vst [vmem:[#allocation3 + $0x258] sm:$0xf] %v6080_v52  ;;  %v1169_v17 = vld [vmem:[#allocation2 + $0xda] sm:$0xff]  ;;  %v1170_v18 = vld [vmem:[#allocation2 + $0xe2] sm:$0xff]  ;;  %v6079_v22 = vpack.c.bf16 %v786_v16, %v786_v16  ;;  %v676_v52 = vadd.f32 %v8009_v3, %v675_v40  ;;  %4193 = vmatmul.mubr.bf16.gmra.mxu0 %v7250_v41  ;;  %4047 = vmatprep.mubr.bf16.mxu1 %v7252_v44 }
 0x1b5   : > { %945 = vst [vmem:[#allocation3 + $0x288] sm:$0xf] %v6078_v53  ;;  %1519 = vst [vmem:[#allocation3 + $0x24c] sm:$0xf] %v6078_v53  ;;  %v6142_v23 = vpack.c.bf16 %v1169_v17, %v1169_v17  ;;  %v6143_v26 = vpack.c.bf16 %v1170_v18, %v1170_v18  ;;  %v7483_v3 = vld [vmem:[%s8634_s2] ss:$0 sm:$0xff]  ;;  %4200 = vmatprep.mubr.bf16.mxu0 %v7254_v51 }
 0x1b6   : > { %2094 = vst [vmem:[#allocation3 + $0x210] sm:$0xf] %v6078_v53  ;;  %1143 = vst [vmem:[#allocation3 + $0x364] sm:$0xf] %v6116_v58  ;;  %v6939_v53 = vpop.f32.mrf.mxu0  ;;  %v728_v4 = vmax.f32 %v676_v52, 0.0 }
 0x1b7   : > { %1717 = vst [vmem:[#allocation3 + $0x328] sm:$0xf] %v6116_v58  ;;  %2292 = vst [vmem:[#allocation3 + $0x2ec] sm:$0xf] %v6116_v58  ;;  %v697_v62 = vadd.f32 %v7483_v3, %v6939_v53  ;;  %v7258_v17 = vld [vmem:[#allocation3 + $0x1b4] ss:$36 sps:$4 sm:$0xff]  }
 0x1b8   : > { %1141 = vst [vmem:[#allocation3 + $0x31c] sm:$0xf] %v6114_v59  ;;  %1715 = vst [vmem:[#allocation3 + $0x2e0] sm:$0xf] %v6114_v59  ;;  %v688_v5 = vpop.f32.mrf.mxu0 }
 0x1b9   : > { %2290 = vst [vmem:[#allocation3 + $0x2a4] sm:$0xf] %v6114_v59  ;;  %758 = vst [vmem:[#allocation2 + $0x129] sm:$0xff] %v726_v63  ;;  %v791_v38 = vld [vmem:[#allocation2 + $0x120] sm:$0xff]  ;;  %v6121_v59 = vpack.c.bf16 %v730_v50, %v730_v50  ;;  %v733_v6 = vmax.f32 %v697_v62, 0.0  ;;  %v689_v8 = vadd.f32 %v7483_v3, %v688_v5 }
 0x1ba   : > { %948 = vst [vmem:[#allocation3 + $0x2f4] sm:$0xf] %v6081_v11  ;;  %1331 = vst [vmem:[#allocation3 + $0x2d8] sm:$0xf] %v6144_v12  ;;  %v789_v39 = vld [vmem:[#allocation2 + $0x108] sm:$0xff]  ;;  %v6084_v45 = vpack.c.bf16 %v791_v38, %v791_v38 }
 0x1bb   : > { %1332 = vst [vmem:[#allocation3 + $0x2fc] sm:$0xf] %v6145_v13  ;;  %1522 = vst [vmem:[#allocation3 + $0x2b8] sm:$0xf] %v6081_v11  ;;  %v6082_v46 = vpack.c.bf16 %v789_v39, %v789_v39  ;;  %v7263_v62 = vld [vmem:[#allocation3 + $0x1b0] ss:$36 sps:$4 sm:$0xff]  }
 0x1bc   : > { %1905 = vst [vmem:[#allocation3 + $0x29c] sm:$0xf] %v6144_v12  ;;  %1906 = vst [vmem:[#allocation3 + $0x2c0] sm:$0xf] %v6145_v13  ;;  %4201 = vmatmul.mubr.bf16.gmra.mxu0 %v7257_v28 }
 0x1bd   : > { %2097 = vst [vmem:[#allocation3 + $0x27c] sm:$0xf] %v6081_v11  ;;  %2480 = vst [vmem:[#allocation3 + $0x260] sm:$0xf] %v6144_v12  ;;  %v6119_v12 = vpack.c.bf16 %v728_v4, %v728_v4 }
 0x1be   : > { %2481 = vst [vmem:[#allocation3 + $0x284] sm:$0xf] %v6145_v13  ;;  %1144 = vst [vmem:[#allocation3 + $0x388] sm:$0xf] %v6117_v14  ;;  %v6940_v13 = vpop.f32.mrf.mxu0 }
 0x1bf   : > { %1718 = vst [vmem:[#allocation3 + $0x34c] sm:$0xf] %v6117_v14  ;;  %2293 = vst [vmem:[#allocation3 + $0x310] sm:$0xf] %v6117_v14 }
 0x1c0   : > { %756 = vst [vmem:[#allocation2 + $0x111] sm:$0xff] %v724_v19  ;;  %761 = vst [vmem:[#allocation2 + $0x151] sm:$0xff] %v729_v20  ;;  %v792_v56 = vld [vmem:[#allocation2 + $0x128] sm:$0xff]  ;;  %v6218_v19 = vpack.c.bf16 %v733_v6, %v733_v6  ;;  %v7256_v20 = vld [vmem:[#allocation3 + $0x168] ss:$36 sps:$4 sm:$0xff]   ;;  %v691_v27 = vpop.f32.mrf.mxu0 }
 0x1c1   : > { %2478 = vst [vmem:[#allocation3 + $0x218] sm:$0xf] %v6142_v23  ;;  %2479 = vst [vmem:[#allocation3 + $0x23c] sm:$0xf] %v6143_v26  ;;  %v1175_v57 = vld [vmem:[#allocation2 + $0x122] sm:$0xff]  ;;  %v1176_v58 = vld [vmem:[#allocation2 + $0x12a] sm:$0xff]  ;;  %v6085_v63 = vpack.c.bf16 %v792_v56, %v792_v56  ;;  %4048 = vmatmul.mubr.bf16.gmra.mxu1 %v7256_v20 }
 0x1c2   : > { %946 = vst [vmem:[#allocation3 + $0x2ac] sm:$0xf] %v6079_v22  ;;  %1329 = vst [vmem:[#allocation3 + $0x290] sm:$0xf] %v6142_v23  ;;  %v6148_v1 = vpack.c.bf16 %v1175_v57, %v1175_v57  ;;  %v6149_v2 = vpack.c.bf16 %v1176_v58, %v1176_v58  ;;  %4055 = vmatprep.mubr.bf16.mxu1 %v7258_v17  ;;  %v7272_v20 = vld [vmem:[#allocation3 + $0x244] ss:$36 sps:$4 sm:$0xff]  }
 0x1c3   : > { %1330 = vst [vmem:[#allocation3 + $0x2b4] sm:$0xf] %v6143_v26  ;;  %1520 = vst [vmem:[#allocation3 + $0x270] sm:$0xf] %v6079_v22 }
 0x1c4   : > { %1903 = vst [vmem:[#allocation3 + $0x254] sm:$0xf] %v6142_v23  ;;  %1904 = vst [vmem:[#allocation3 + $0x278] sm:$0xf] %v6143_v26  ;;  %v731_v23 = vmax.f32 %v689_v8, 0.0  ;;  %v700_v26 = vadd.f32 %v7483_v3, %v6940_v13 }
 0x1c5   : > { %2095 = vst [vmem:[#allocation3 + $0x234] sm:$0xf] %v6079_v22  ;;  %1142 = vst [vmem:[#allocation3 + $0x340] sm:$0xf] %v6115_v29 }
 0x1c6   : > { %1716 = vst [vmem:[#allocation3 + $0x304] sm:$0xf] %v6115_v29  ;;  %2291 = vst [vmem:[#allocation3 + $0x2c8] sm:$0xf] %v6115_v29  ;;  %v7260_v29 = vld [vmem:[#allocation3 + $0x174] ss:$36 sps:$4 sm:$0xff]   ;;  %v6122_v39 = vpack.c.bf16 %v731_v23, %v731_v23 }
 0x1c7   : > { %1147 = vst [vmem:[#allocation3 + $0x3f4] sm:$0xf] %v6120_v32  ;;  %1721 = vst [vmem:[#allocation3 + $0x3b8] sm:$0xf] %v6120_v32  ;;  %v790_v9 = vld [vmem:[#allocation2 + $0x110] sm:$0xff]  ;;  %v734_v40 = vmax.f32 %v700_v26, 0.0  ;;  %4208 = vmatprep.mubr.bf16.mxu0 %v7260_v29  ;;  %v6389_v26 = vpop.f32.mrf.mxu1 }
 0x1c8   : > { %2296 = vst [vmem:[#allocation3 + $0x37c] sm:$0xf] %v6120_v32  ;;  %759 = vst [vmem:[#allocation2 + $0x139] sm:$0xff] %v727_v33  ;;  %v1173_v10 = vld [vmem:[#allocation2 + $0x10a] sm:$0xff]  ;;  %v1174_v11 = vld [vmem:[#allocation2 + $0x112] sm:$0xff]  ;;  %v6083_v14 = vpack.c.bf16 %v790_v9, %v790_v9  ;;  %v692_v33 = vadd.f32 %v7483_v3, %v691_v27 }
 0x1c9   : > { %951 = vst [vmem:[#allocation3 + $0x360] sm:$0xf] %v6084_v45  ;;  %1525 = vst [vmem:[#allocation3 + $0x324] sm:$0xf] %v6084_v45  ;;  %v6146_v15 = vpack.c.bf16 %v1173_v10, %v1173_v10  ;;  %v6147_v16 = vpack.c.bf16 %v1174_v11, %v1174_v11  ;;  %v795_v18 = vld [vmem:[#allocation2 + $0x150] sm:$0xff]  ;;  %4056 = vmatmul.mubr.bf16.gmra.mxu1 %v7263_v62  ;;  %v6390_v28 = vpop.f32.mrf.mxu1 }
 0x1ca   : > { %2100 = vst [vmem:[#allocation3 + $0x2e8] sm:$0xf] %v6084_v45  ;;  %949 = vst [vmem:[#allocation3 + $0x318] sm:$0xf] %v6082_v46  ;;  %v6088_v21 = vpack.c.bf16 %v795_v18, %v795_v18  ;;  %v7354_v27 = vld [vmem:[#allocation9 + $0x1c0] sm:$0xff]   ;;  %v8057_v29 = vadd.f32 %v6390_v28, %v6389_v26 }
 0x1cb   : > { %1523 = vst [vmem:[#allocation3 + $0x2dc] sm:$0xf] %v6082_v46  ;;  %2098 = vst [vmem:[#allocation3 + $0x2a0] sm:$0xf] %v6082_v46  ;;  %v732_v46 = vmax.f32 %v692_v33, 0.0 }
 0x1cc   : > { %1145 = vst [vmem:[#allocation3 + $0x3ac] sm:$0xf] %v6118_v47  ;;  %1719 = vst [vmem:[#allocation3 + $0x370] sm:$0xf] %v6118_v47  ;;  %v7280_v33 = vld [vmem:[#allocation3 + $0x200] ss:$36 sps:$4 sm:$0xff]  }
 0x1cd   : > { %2294 = vst [vmem:[#allocation3 + $0x334] sm:$0xf] %v6118_v47  ;;  %762 = vst [vmem:[#allocation2 + $0x159] sm:$0xff] %v730_v50  ;;  %v6219_v47 = vpack.c.bf16 %v734_v40, %v734_v40  ;;  %v6123_v53 = vpack.c.bf16 %v732_v46, %v732_v46  ;;  %v7356_v28 = vld [vmem:[#allocation3 + $0x58] ss:$36 sps:$4 sm:$0xff]  }
 0x1ce   : > { %1148 = vst [vmem:[#allocation3 + $0x418] sm:$0xf] %v6121_v59  ;;  %1722 = vst [vmem:[#allocation3 + $0x3dc] sm:$0xf] %v6121_v59 }
 0x1cf   : > { %2297 = vst [vmem:[#allocation3 + $0x3a0] sm:$0xf] %v6121_v59  ;;  %952 = vst [vmem:[#allocation3 + $0x384] sm:$0xf] %v6085_v63  ;;  %v793_v22 = vld [vmem:[#allocation2 + $0x138] sm:$0xff] }
 0x1d0   : > { %1335 = vst [vmem:[#allocation3 + $0x368] sm:$0xf] %v6148_v1  ;;  %1336 = vst [vmem:[#allocation3 + $0x38c] sm:$0xf] %v6149_v2  ;;  %v6086_v32 = vpack.c.bf16 %v793_v22, %v793_v22  ;;  %v7274_v22 = vld [vmem:[#allocation3 + $0x204] ss:$36 sps:$4 sm:$0xff]  }
 0x1d1   : > { %1526 = vst [vmem:[#allocation3 + $0x348] sm:$0xf] %v6085_v63  ;;  %1909 = vst [vmem:[#allocation3 + $0x32c] sm:$0xf] %v6148_v1 }
 0x1d2   : > { %1910 = vst [vmem:[#allocation3 + $0x350] sm:$0xf] %v6149_v2  ;;  %2101 = vst [vmem:[#allocation3 + $0x30c] sm:$0xf] %v6085_v63  ;;  %v7264_v63 = vld [vmem:[#allocation3 + $0x170] ss:$36 sps:$4 sm:$0xff]  }
 0x1d3   : > { %2484 = vst [vmem:[#allocation3 + $0x2f0] sm:$0xf] %v6148_v1  ;;  %2485 = vst [vmem:[#allocation3 + $0x314] sm:$0xf] %v6149_v2  ;;  %v7266_v1 = vld [vmem:[#allocation3 + $0x1fc] ss:$36 sps:$4 sm:$0xff]   ;;  %4209 = vmatmul.mubr.bf16.gmra.mxu0 %v7264_v63 }
 0x1d4   : > { %760 = vst [vmem:[#allocation2 + $0x141] sm:$0xff] %v728_v4  ;;  %765 = vst [vmem:[#allocation2 + $0x181] sm:$0xff] %v733_v6  ;;  %v796_v34 = vld [vmem:[#allocation2 + $0x158] sm:$0xff]  ;;  %v7268_v4 = vld [vmem:[#allocation3 + $0x1bc] ss:$36 sps:$4 sm:$0xff]   ;;  %4063 = vmatprep.mubr.bf16.mxu1 %v7266_v1 }
 0x1d5   : > { %1146 = vst [vmem:[#allocation3 + $0x3d0] sm:$0xf] %v6119_v12  ;;  %1720 = vst [vmem:[#allocation3 + $0x394] sm:$0xf] %v6119_v12  ;;  %v1179_v35 = vld [vmem:[#allocation2 + $0x152] sm:$0xff]  ;;  %v1180_v38 = vld [vmem:[#allocation2 + $0x15a] sm:$0xff]  ;;  %v6089_v41 = vpack.c.bf16 %v796_v34, %v796_v34  ;;  %4216 = vmatprep.mubr.bf16.mxu0 %v7268_v4 }
 0x1d6   : > { %2295 = vst [vmem:[#allocation3 + $0x358] sm:$0xf] %v6119_v12  ;;  %2482 = vst [vmem:[#allocation3 + $0x2a8] sm:$0xf] %v6146_v15  ;;  %v6152_v44 = vpack.c.bf16 %v1179_v35, %v1179_v35  ;;  %v6153_v45 = vpack.c.bf16 %v1180_v38, %v1180_v38  ;;  %v7282_v34 = vld [vmem:[#allocation3 + $0x28c] ss:$36 sps:$4 sm:$0xff]  }
 0x1d7   : > { %2483 = vst [vmem:[#allocation3 + $0x2cc] sm:$0xf] %v6147_v16  ;;  %950 = vst [vmem:[#allocation3 + $0x33c] sm:$0xf] %v6083_v14  ;;  %v7355_v35 = vld [vmem:[#allocation9 + $0x180] sm:$0xff]  }
 0x1d8   : > { %1333 = vst [vmem:[#allocation3 + $0x320] sm:$0xf] %v6146_v15  ;;  %1334 = vst [vmem:[#allocation3 + $0x344] sm:$0xf] %v6147_v16  ;;  %v7284_v38 = vld [vmem:[#allocation3 + $0x24c] ss:$36 sps:$4 sm:$0xff]  }
 0x1d9   : > { %1524 = vst [vmem:[#allocation3 + $0x300] sm:$0xf] %v6083_v14  ;;  %1907 = vst [vmem:[#allocation3 + $0x2e4] sm:$0xf] %v6146_v15  ;;  %v7319_v63 = vld [vmem:[#allocation3 + $0x368] ss:$36 sps:$4 sm:$0xff]  }
 0x1da   : > { %1908 = vst [vmem:[#allocation3 + $0x308] sm:$0xf] %v6147_v16  ;;  %2099 = vst [vmem:[#allocation3 + $0x2c4] sm:$0xf] %v6083_v14  ;;  %v7320_v1 = vld [vmem:[#allocation3 + $0x3f4] ss:$36 sps:$4 sm:$0xff]  }
 0x1db   : > { %1725 = vst [vmem:[#allocation3 + $0x448] sm:$0xf] %v6218_v19  ;;  %2300 = vst [vmem:[#allocation3 + $0x40c] sm:$0xf] %v6218_v19  ;;  %v794_v50 = vld [vmem:[#allocation2 + $0x140] sm:$0xff] }
 0x1dc   : > { %955 = vst [vmem:[#allocation3 + $0x3f0] sm:$0xf] %v6088_v21  ;;  %1529 = vst [vmem:[#allocation3 + $0x3b4] sm:$0xf] %v6088_v21  ;;  %v1177_v51 = vld [vmem:[#allocation2 + $0x13a] sm:$0xff]  ;;  %v1178_v52 = vld [vmem:[#allocation2 + $0x142] sm:$0xff]  ;;  %v6087_v56 = vpack.c.bf16 %v794_v50, %v794_v50 }
 0x1dd   : > { %2104 = vst [vmem:[#allocation3 + $0x378] sm:$0xf] %v6088_v21  ;;  %763 = vst [vmem:[#allocation2 + $0x169] sm:$0xff] %v731_v23  ;;  %v6150_v57 = vpack.c.bf16 %v1177_v51, %v1177_v51  ;;  %v6151_v58 = vpack.c.bf16 %v1178_v52, %v1178_v52  ;;  %v1373_v59 = vld [vmem:[#allocation2 + $0x180] sm:$0xff]  ;;  %v7270_v19 = vld [vmem:[#allocation3 + $0x1f8] ss:$36 sps:$4 sm:$0xff]  }
 0x1de   : > { %953 = vst [vmem:[#allocation3 + $0x3a8] sm:$0xf] %v6086_v32  ;;  %1527 = vst [vmem:[#allocation3 + $0x36c] sm:$0xf] %v6086_v32  ;;  %v6186_v3 = vpack.c.bf16 %v1373_v59, %v1373_v59  ;;  %v7271_v21 = vld [vmem:[#allocation3 + $0x1b8] ss:$36 sps:$4 sm:$0xff]   ;;  %4064 = vmatmul.mubr.bf16.gmra.mxu1 %v7270_v19 }
 0x1df   : > { %2102 = vst [vmem:[#allocation3 + $0x330] sm:$0xf] %v6086_v32  ;;  %1149 = vst [vmem:[#allocation3 + $0x43c] sm:$0xf] %v6122_v39  ;;  %4217 = vmatmul.mubr.bf16.gmra.mxu0 %v7271_v21  ;;  %4071 = vmatprep.mubr.bf16.mxu1 %v7272_v20  ;;  %v7350_v23 = vld [vmem:[#allocation9 + $0x188] sm:$0xff]   ;;  %v7485_v20 = vld [vmem:[#allocation2] sm:$0xff] }
 0x1e0   : > { %1723 = vst [vmem:[#allocation3 + $0x400] sm:$0xf] %v6122_v39  ;;  %2298 = vst [vmem:[#allocation3 + $0x3c4] sm:$0xf] %v6122_v39  ;;  %4224 = vmatprep.mubr.bf16.mxu0 %v7274_v22  ;;  %6722 = vmatpush3.bf16.msra.mxu0 %v7350_v23  ;;  %v7279_v32 = vld [vmem:[#allocation3 + $0x240] ss:$36 sps:$4 sm:$0xff]   ;;  %v6282_v21 = vpack.c.bf16 %v7485_v20, %v7485_v20  ;;  %v6392_v20 = vpop.f32.mrf.mxu1 }
 0x1e1   : > { %766 = vst [vmem:[#allocation2 + $0x189] sm:$0xff] %v734_v40  ;;  %956 = vst [vmem:[#allocation3 + $0x414] sm:$0xf] %v6089_v41  ;;  %6723 = vmatprep.subr.bf16.mxu0 %v7354_v27  ;;  %v7286_v39 = vld [vmem:[#allocation3 + $0x288] ss:$36 sps:$4 sm:$0xff]   ;;  %v2143_v23 = vld [vmem:[#allocation2 + $0x1a1] sm:$0xff] }
 0x1e2   : > { %1339 = vst [vmem:[#allocation3 + $0x3f8] sm:$0xf] %v6152_v44  ;;  %1340 = vst [vmem:[#allocation3 + $0x41c] sm:$0xf] %v6153_v45  ;;  %v7287_v40 = vld [vmem:[#allocation3 + $0x248] ss:$36 sps:$4 sm:$0xff]   ;;  %v6315_v27 = vpack.c.bf16 %v2143_v23, %v2143_v23 }
 0x1e3   : > { %1530 = vst [vmem:[#allocation3 + $0x3d8] sm:$0xf] %v6089_v41  ;;  %1913 = vst [vmem:[#allocation3 + $0x3bc] sm:$0xf] %v6152_v44  ;;  %v7300_v50 = vld [vmem:[#allocation3 + $0x2dc] ss:$36 sps:$4 sm:$0xff]  }
 0x1e4   : > { %1914 = vst [vmem:[#allocation3 + $0x3e0] sm:$0xf] %v6153_v45  ;;  %2105 = vst [vmem:[#allocation3 + $0x39c] sm:$0xf] %v6089_v41  ;;  %v797_v2 = vld [vmem:[#allocation2 + $0x168] sm:$0xff]  ;;  %6724 = vmatpush3.bf16.msra.mxu0 %v7355_v35  ;;  %v7374_v19 = vld [vmem:[#allocation9 + $0x228] sm:$0xff]  }
 0x1e5   : > { %2488 = vst [vmem:[#allocation3 + $0x380] sm:$0xf] %v6152_v44  ;;  %2489 = vst [vmem:[#allocation3 + $0x3a4] sm:$0xf] %v6153_v45  ;;  %v6090_v5 = vpack.c.bf16 %v797_v2, %v797_v2  ;;  %v7288_v41 = vld [vmem:[#allocation3 + $0x2d4] ss:$36 sps:$4 sm:$0xff]  }
 0x1e6   : > { %764 = vst [vmem:[#allocation2 + $0x171] sm:$0xff] %v732_v46  ;;  %1726 = vst [vmem:[#allocation3 + $0x46c] sm:$0xf] %v6219_v47  ;;  %4072 = vmatmul.mubr.bf16.gmra.mxu1 %v7279_v32  ;;  %v7290_v44 = vld [vmem:[#allocation3 + $0x294] ss:$36 sps:$4 sm:$0xff]   ;;  %v2142_v22 = vld [vmem:[#allocation2 + $0x199] sm:$0xff] }
 0x1e7   : > { %2301 = vst [vmem:[#allocation3 + $0x430] sm:$0xf] %v6219_v47  ;;  %1150 = vst [vmem:[#allocation3 + $0x460] sm:$0xf] %v6123_v53  ;;  %4225 = vmatmul.mubr.bf16.gmra.mxu0 %v7280_v33  ;;  %4079 = vmatprep.mubr.bf16.mxu1 %v7282_v34  ;;  %v7295_v45 = vld [vmem:[#allocation3 + $0x2d0] ss:$36 sps:$4 sm:$0xff]   ;;  %v6314_v26 = vpack.c.bf16 %v2142_v22, %v2142_v22 }
 0x1e8   : > { %1724 = vst [vmem:[#allocation3 + $0x424] sm:$0xf] %v6123_v53  ;;  %2299 = vst [vmem:[#allocation3 + $0x3e8] sm:$0xf] %v6123_v53  ;;  %v1374_v6 = vld [vmem:[#allocation2 + $0x188] sm:$0xff]  ;;  %4232 = vmatprep.mubr.bf16.mxu0 %v7284_v38  ;;  %v7388_v34 = vld [vmem:[#allocation9 + $0x220] sm:$0xff]  }
 0x1e9   : > { %2486 = vst [vmem:[#allocation3 + $0x338] sm:$0xf] %v6150_v57  ;;  %2487 = vst [vmem:[#allocation3 + $0x35c] sm:$0xf] %v6151_v58  ;;  %v1757_v8 = vld [vmem:[#allocation2 + $0x182] sm:$0xff]  ;;  %v1758_v9 = vld [vmem:[#allocation2 + $0x18a] sm:$0xff]  ;;  %v6187_v10 = vpack.c.bf16 %v1374_v6, %v1374_v6 }
 0x1ea   : > { %954 = vst [vmem:[#allocation3 + $0x3cc] sm:$0xf] %v6087_v56  ;;  %1337 = vst [vmem:[#allocation3 + $0x3b0] sm:$0xf] %v6150_v57  ;;  %v6250_v11 = vpack.c.bf16 %v1757_v8, %v1757_v8  ;;  %v6251_v12 = vpack.c.bf16 %v1758_v9, %v1758_v9  ;;  %v7296_v46 = vld [vmem:[#allocation3 + $0x290] ss:$36 sps:$4 sm:$0xff]  }
 0x1eb   : > { %1338 = vst [vmem:[#allocation3 + $0x3d4] sm:$0xf] %v6151_v58  ;;  %1528 = vst [vmem:[#allocation3 + $0x390] sm:$0xf] %v6087_v56  ;;  %v7298_v47 = vld [vmem:[#allocation3 + $0x31c] ss:$36 sps:$4 sm:$0xff]  }
 0x1ec   : > { %1911 = vst [vmem:[#allocation3 + $0x374] sm:$0xf] %v6150_v57  ;;  %1912 = vst [vmem:[#allocation3 + $0x398] sm:$0xf] %v6151_v58  ;;  %v7302_v51 = vld [vmem:[#allocation3 + $0x318] ss:$36 sps:$4 sm:$0xff]  }
 0x1ed   : > { %2103 = vst [vmem:[#allocation3 + $0x354] sm:$0xf] %v6087_v56  ;;  %1533 = vst [vmem:[#allocation3 + $0x444] sm:$0xf] %v6186_v3  ;;  %v798_v13 = vld [vmem:[#allocation2 + $0x170] sm:$0xff]  ;;  %v7401_v38 = vld [vmem:[#allocation9 + $0x218] sm:$0xff]  }
 0x1ee   : > { %2108 = vst [vmem:[#allocation3 + $0x408] sm:$0xf] %v6186_v3  ;;  %957 = vst [vmem:[#allocation3 + $0x438] sm:$0xf] %v6090_v5  ;;  %v1181_v14 = vld [vmem:[#allocation2 + $0x16a] sm:$0xff]  ;;  %v1182_v15 = vld [vmem:[#allocation2 + $0x172] sm:$0xff]  ;;  %v6091_v16 = vpack.c.bf16 %v798_v13, %v798_v13  ;;  %4080 = vmatmul.mubr.bf16.gmra.mxu1 %v7286_v39 }
 0x1ef   : > { %1531 = vst [vmem:[#allocation3 + $0x3fc] sm:$0xf] %v6090_v5  ;;  %2106 = vst [vmem:[#allocation3 + $0x3c0] sm:$0xf] %v6090_v5  ;;  %v6154_v17 = vpack.c.bf16 %v1181_v14, %v1181_v14  ;;  %v6155_v18 = vpack.c.bf16 %v1182_v15, %v1182_v15  ;;  %4233 = vmatmul.mubr.bf16.gmra.mxu0 %v7287_v40  ;;  %4087 = vmatprep.mubr.bf16.mxu1 %v7288_v41  ;;  %v7304_v52 = vld [vmem:[#allocation3 + $0x364] ss:$36 sps:$4 sm:$0xff]  }
 0x1f0   : > { %1534 = vst [vmem:[#allocation3 + $0x468] sm:$0xf] %v6187_v10  ;;  %1917 = vst [vmem:[#allocation3 + $0x44c] sm:$0xf] %v6250_v11  ;;  %4240 = vmatprep.mubr.bf16.mxu0 %v7290_v44  ;;  %v7303_v53 = vld [vmem:[#allocation3 + $0x2d8] ss:$36 sps:$4 sm:$0xff]  }
 0x1f1   : > { %1918 = vst [vmem:[#allocation3 + $0x470] sm:$0xf] %v6251_v12  ;;  %2109 = vst [vmem:[#allocation3 + $0x42c] sm:$0xf] %v6187_v10  ;;  %v7306_v56 = vld [vmem:[#allocation3 + $0x324] ss:$36 sps:$4 sm:$0xff]  }
 0x1f2   : > { %2492 = vst [vmem:[#allocation3 + $0x410] sm:$0xf] %v6250_v11  ;;  %2493 = vst [vmem:[#allocation3 + $0x434] sm:$0xf] %v6251_v12  ;;  %v7311_v57 = vld [vmem:[#allocation3 + $0x360] ss:$36 sps:$4 sm:$0xff]  }
 0x1f3   : > { %2490 = vst [vmem:[#allocation3 + $0x3c8] sm:$0xf] %v6154_v17  ;;  %2491 = vst [vmem:[#allocation3 + $0x3ec] sm:$0xf] %v6155_v18  ;;  %v7312_v58 = vld [vmem:[#allocation3 + $0x320] ss:$36 sps:$4 sm:$0xff]  }
 0x1f4   : > { %958 = vst [vmem:[#allocation3 + $0x45c] sm:$0xf] %v6091_v16  ;;  %1341 = vst [vmem:[#allocation3 + $0x440] sm:$0xf] %v6154_v17  ;;  %v7314_v59 = vld [vmem:[#allocation3 + $0x3ac] ss:$36 sps:$4 sm:$0xff]  }
 0x1f5   : > { %1342 = vst [vmem:[#allocation3 + $0x464] sm:$0xf] %v6155_v18  ;;  %1532 = vst [vmem:[#allocation3 + $0x420] sm:$0xf] %v6091_v16  ;;  %v7316_v3 = vld [vmem:[#allocation3 + $0x36c] ss:$36 sps:$4 sm:$0xff]  }
 0x1f6   : > { %1915 = vst [vmem:[#allocation3 + $0x404] sm:$0xf] %v6154_v17  ;;  %1916 = vst [vmem:[#allocation3 + $0x428] sm:$0xf] %v6155_v18  ;;  %4088 = vmatmul.mubr.bf16.gmra.mxu1 %v7295_v45  ;;  %v7318_v62 = vld [vmem:[#allocation3 + $0x3a8] ss:$36 sps:$4 sm:$0xff]  }
 0x1f7   : > { %2107 = vst [vmem:[#allocation3 + $0x3e4] sm:$0xf] %v6091_v16  ;;  %4241 = vmatmul.mubr.bf16.gmra.mxu0 %v7296_v46  ;;  %4095 = vmatprep.mubr.bf16.mxu1 %v7298_v47  ;;  %v7322_v2 = vld [vmem:[#allocation3 + $0x3b4] ss:$36 sps:$4 sm:$0xff]   ;;  %v7330_v6 = vld [vmem:[#allocation3 + $0x43c] ss:$36 sps:$4 sm:$0xff]  }
 0x1f8   : > { %4248 = vmatprep.mubr.bf16.mxu0 %v7300_v50  ;;  %v7327_v4 = vld [vmem:[#allocation3 + $0x3f0] ss:$36 sps:$4 sm:$0xff]   ;;  %v7335_v10 = vld [vmem:[#allocation3 + $0x3f8] ss:$36 sps:$4 sm:$0xff]   ;;  %v7337_v12 = vld [vmem:[#allocation3 + $0x444] ss:$36 sps:$4 sm:$0xff]  }
 0x1f9   : > { %v7328_v5 = vld [vmem:[#allocation3 + $0x3b0] ss:$36 sps:$4 sm:$0xff]   ;;  %v7348_v16 = vld [vmem:[#allocation3 + $0x5c] ss:$36 sps:$4 sm:$0xff]   ;;  %2110 = vst [vmem:[#allocation3 + $0x450] sm:$0xf] %v6282_v21 }
 0x1fa   : > { %v7341_v11 = vld [vmem:[#allocation3 + $0x14] ss:$36 sps:$4 sm:$0xff]   ;;  %v7353_v17 = vld [vmem:[#allocation3 + $0x1c] ss:$36 sps:$4 sm:$0xff]   ;;  %2111 = vst [vmem:[#allocation3 + $0x474] sm:$0xf] %v6282_v21  ;;  %v6393_v21 = vpop.f32.mrf.mxu1 }
 0x1fb   : > { %v7334_v9 = vld [vmem:[#allocation3 + $0x438] ss:$36 sps:$4 sm:$0xff]   ;;  %v7339_v13 = vld [vmem:[#allocation3 + $0x10] ss:$36 sps:$4 sm:$0xff]   ;;  %2302 = vst [vmem:[#allocation3 + $0x454] sm:$0xf] %v6314_v26 }
 0x1fc   : > { %v7332_v8 = vld [vmem:[#allocation3 + $0x3fc] ss:$36 sps:$4 sm:$0xff]   ;;  %v7361_v15 = vld [vmem:[#allocation9 + $0x230] sm:$0xff]   ;;  %2303 = vst [vmem:[#allocation3 + $0x478] sm:$0xf] %v6315_v27  ;;  %v7428_v46 = vld [vmem:[#allocation9 + $0x208] sm:$0xff]  }
 0x1fd   : > { %v7346_v14 = vld [vmem:[#allocation3 + $0x440] ss:$36 sps:$4 sm:$0xff]   ;;  %v7484_v18 = vld [vmem:[#allocation9 + $0x238] sm:$0xff]   ;;  %v7364_v41 = vld [vmem:[#allocation3 + $0xec] ss:$36 sps:$4 sm:$0xff]  }
 0x1fe   : > { %4096 = vmatmul.mubr.bf16.gmra.mxu1 %v7302_v51  ;;  %v7351_v32 = vld [vmem:[#allocation3 + $0x18] ss:$36 sps:$4 sm:$0xff]   ;;  %v7357_v33 = vld [vmem:[#allocation3 + $0xa4] ss:$36 sps:$4 sm:$0xff]   ;;  %v7414_v44 = vld [vmem:[#allocation9 + $0x210] sm:$0xff]  }
 0x1ff   : > { %4249 = vmatmul.mubr.bf16.gmra.mxu0 %v7303_v53  ;;  %4103 = vmatprep.mubr.bf16.mxu1 %v7304_v52  ;;  %v7359_v35 = vld [vmem:[#allocation3 + $0x64] ss:$36 sps:$4 sm:$0xff]   ;;  %v7366_v45 = vld [vmem:[#allocation3 + $0xac] ss:$36 sps:$4 sm:$0xff]   ;;  %v7370_v51 = vld [vmem:[#allocation3 + $0x134] ss:$36 sps:$4 sm:$0xff]  }
 0x200   : > { %4256 = vmatprep.mubr.bf16.mxu0 %v7306_v56  ;;  %v7362_v39 = vld [vmem:[#allocation3 + $0xa0] ss:$36 sps:$4 sm:$0xff]   ;;  %v7368_v47 = vld [vmem:[#allocation3 + $0xe8] ss:$36 sps:$4 sm:$0xff]   ;;  %v7372_v53 = vld [vmem:[#allocation3 + $0xf4] ss:$36 sps:$4 sm:$0xff]  }
 0x201   : > { %v7363_v40 = vld [vmem:[#allocation3 + $0x60] ss:$36 sps:$4 sm:$0xff]   ;;  %v7369_v50 = vld [vmem:[#allocation3 + $0xa8] ss:$36 sps:$4 sm:$0xff]   ;;  %v7375_v56 = vld [vmem:[#allocation3 + $0x130] ss:$36 sps:$4 sm:$0xff]  }
 0x202   : > { %v7441_v52 = vld [vmem:[#allocation9 + $0x200] sm:$0xff]   ;;  %v7408_v22 = vld [vmem:[#allocation3 + $0x298] ss:$36 sps:$4 sm:$0xff]  }
 0x203   : > { %v7405_v23 = vld [vmem:[#allocation3 + $0x258] ss:$36 sps:$4 sm:$0xff]   ;;  %v7409_v26 = vld [vmem:[#allocation3 + $0x2e4] ss:$36 sps:$4 sm:$0xff]  }
 0x206   : > { %4104 = vmatmul.mubr.bf16.gmra.mxu1 %v7311_v57  ;;  %v7376_v57 = vld [vmem:[#allocation3 + $0xf0] ss:$36 sps:$4 sm:$0xff]  }
 0x207   : > { %4257 = vmatmul.mubr.bf16.gmra.mxu0 %v7312_v58  ;;  %4111 = vmatprep.mubr.bf16.mxu1 %v7314_v59  ;;  %v7377_v58 = vld [vmem:[#allocation3 + $0x17c] ss:$36 sps:$4 sm:$0xff]  }
 0x208   : > { %4264 = vmatprep.mubr.bf16.mxu0 %v7316_v3  ;;  %v7381_v59 = vld [vmem:[#allocation3 + $0x13c] ss:$36 sps:$4 sm:$0xff]  }
 0x209   : > { %v7382_v3 = vld [vmem:[#allocation3 + $0x178] ss:$36 sps:$4 sm:$0xff]  }
 0x20e   : > { %4112 = vmatmul.mubr.bf16.gmra.mxu1 %v7318_v62  ;;  %v7379_v62 = vld [vmem:[#allocation3 + $0x138] ss:$36 sps:$4 sm:$0xff]  }
 0x20f   : > { %4265 = vmatmul.mubr.bf16.gmra.mxu0 %v7319_v63  ;;  %4119 = vmatprep.mubr.bf16.mxu1 %v7320_v1  ;;  %v7383_v63 = vld [vmem:[#allocation3 + $0x1c4] ss:$36 sps:$4 sm:$0xff]  }
 0x210   : > { %4272 = vmatprep.mubr.bf16.mxu0 %v7322_v2  ;;  %v7387_v1 = vld [vmem:[#allocation3 + $0x184] ss:$36 sps:$4 sm:$0xff]  }
 0x211   : > { %v7389_v2 = vld [vmem:[#allocation3 + $0x1c0] ss:$36 sps:$4 sm:$0xff]  }
 0x216   : > { %4120 = vmatmul.mubr.bf16.gmra.mxu1 %v7327_v4  ;;  %v7385_v4 = vld [vmem:[#allocation3 + $0x180] ss:$36 sps:$4 sm:$0xff]  }
 0x217   : > { %4273 = vmatmul.mubr.bf16.gmra.mxu0 %v7328_v5  ;;  %4127 = vmatprep.mubr.bf16.mxu1 %v7330_v6  ;;  %v7390_v5 = vld [vmem:[#allocation3 + $0x20c] ss:$36 sps:$4 sm:$0xff]  }
 0x218   : > { %4280 = vmatprep.mubr.bf16.mxu0 %v7332_v8  ;;  %v7394_v6 = vld [vmem:[#allocation3 + $0x1cc] ss:$36 sps:$4 sm:$0xff]  }
 0x219   : > { %v7395_v8 = vld [vmem:[#allocation3 + $0x208] ss:$36 sps:$4 sm:$0xff]  }
 0x21e   : > { %4128 = vmatmul.mubr.bf16.gmra.mxu1 %v7334_v9  ;;  %v7392_v9 = vld [vmem:[#allocation3 + $0x1c8] ss:$36 sps:$4 sm:$0xff]  }
 0x21f   : > { %4281 = vmatmul.mubr.bf16.gmra.mxu0 %v7335_v10  ;;  %4329 = vmatprep.mubr.bf16.mxu1 %v7341_v11  ;;  %v7396_v10 = vld [vmem:[#allocation3 + $0x254] ss:$36 sps:$4 sm:$0xff]  }
 0x220   : > { %4288 = vmatprep.mubr.bf16.mxu0 %v7337_v12  ;;  %v7400_v11 = vld [vmem:[#allocation3 + $0x214] ss:$36 sps:$4 sm:$0xff]   ;;  %v2334_v12 = vld [vmem:[#allocation2 + $0x19a] sm:$0xff] }
 0x226   : > { %4330 = vmatmul.mubr.bf16.vlgmr.msra.gmra.mxu1 %v7339_v13  ;;  %v2335_v13 = vld [vmem:[#allocation2 + $0x1a2] sm:$0xff] }
 0x227   : > { %4289 = vmatmul.mubr.bf16.gmra.mxu0 %v7346_v14  ;;  %6942 = vmatpush3.bf16.msra.mxu1 %v7484_v18  ;;  %v6346_v14 = vpack.c.bf16 %v2334_v12, %v2334_v12  ;;  %v7403_v18 = vld [vmem:[#allocation3 + $0x29c] ss:$36 sps:$4 sm:$0xff]   ;;  %v7421_v12 = vld [vmem:[#allocation3 + $0x328] ss:$36 sps:$4 sm:$0xff]  }
 0x228   : > { %4337 = vmatprep.mubr.bf16.mxu1 %v7348_v16  ;;  %4490 = vmatprep.mubr.bf16.mxu0 %v7353_v17  ;;  %v7402_v16 = vld [vmem:[#allocation3 + $0x250] ss:$36 sps:$4 sm:$0xff]  }
 0x229   : > { %6943 = vmatprep.subr.bf16.mxu1 %v7361_v15  ;;  %2494 = vst [vmem:[#allocation3 + $0x458] sm:$0xf] %v6346_v14  ;;  %v7398_v17 = vld [vmem:[#allocation3 + $0x210] ss:$36 sps:$4 sm:$0xff]  }
 0x22b   : > { %6944 = vmatpush3.bf16.msra.mxu1 %v7361_v15  ;;  %v6347_v15 = vpack.c.bf16 %v2335_v13, %v2335_v13  ;;  %v7418_v13 = vld [vmem:[#allocation3 + $0x2e8] ss:$36 sps:$4 sm:$0xff]  }
 0x22c   : > { %6945 = vmatprep.subr.bf16.mxu1 %v7374_v19 }
 0x22d   : > { %2495 = vst [vmem:[#allocation3 + $0x47c] sm:$0xf] %v6347_v15 }
 0x22e   : > { %4338 = vmatmul.mubr.bf16.gmra.mxu1 %v7356_v28  ;;  %v7413_v28 = vld [vmem:[#allocation3 + $0x2a4] ss:$36 sps:$4 sm:$0xff]  }
 0x22f   : > { %4491 = vmatmul.mubr.bf16.vlgmr.msra.gmra.mxu0 %v7351_v32  ;;  %4345 = vmatprep.mubr.bf16.mxu1 %v7357_v33  ;;  %v8062_v32 = vld [vmem:[%s8636_s4] ss:$0 sm:$0xff] }
 0x230   : > { %4498 = vmatprep.mubr.bf16.mxu0 %v7359_v35  ;;  %6946 = vmatpush3.bf16.msra.mxu1 %v7374_v19  ;;  %v7407_v19 = vld [vmem:[#allocation3 + $0x25c] ss:$36 sps:$4 sm:$0xff]  }
 0x231   : > { %6947 = vmatprep.subr.bf16.mxu1 %v7388_v34 }
 0x234   : > { %6948 = vmatpush3.bf16.msra.mxu1 %v7388_v34 }
 0x235   : > { %6949 = vmatprep.subr.bf16.mxu1 %v7401_v38 }
 0x236   : > { %4346 = vmatmul.mubr.bf16.gmra.mxu1 %v7362_v39  ;;  %v4010_v39 = vadd.f32 %v8057_v29, %v8062_v32  ;;  %v7420_v29 = vld [vmem:[#allocation3 + $0x2ec] ss:$36 sps:$4 sm:$0xff]  }
 0x237   : > { %4499 = vmatmul.mubr.bf16.gmra.mxu0 %v7363_v40  ;;  %4353 = vmatprep.mubr.bf16.mxu1 %v7364_v41  ;;  %v6394_v40 = vadd.f32 %v6393_v21, %v6392_v20  ;;  %v7427_v20 = vld [vmem:[#allocation3 + $0x334] ss:$36 sps:$4 sm:$0xff]  }
 0x238   : > { %4506 = vmatprep.mubr.bf16.mxu0 %v7366_v45  ;;  %6950 = vmatpush3.bf16.msra.mxu1 %v7401_v38 }
 0x239   : > { %6951 = vmatprep.subr.bf16.mxu1 %v7414_v44 }
 0x23c   : > { %6952 = vmatpush3.bf16.msra.mxu1 %v7414_v44  ;;  %v6395_v27 = vpop.f32.mrf.mxu1  ;;  %v6501_v33 = vpop.f32.mrf.mxu0 }
 0x23d   : > { %6953 = vmatprep.subr.bf16.mxu1 %v7428_v46 }
 0x23e   : > { %4354 = vmatmul.mubr.bf16.gmra.mxu1 %v7368_v47  ;;  %v6396_v34 = vpop.f32.mrf.mxu1  ;;  %v6502_v38 = vpop.f32.mrf.mxu0 }
 0x23f   : > { %4507 = vmatmul.mubr.bf16.gmra.mxu0 %v7369_v50  ;;  %4361 = vmatprep.mubr.bf16.mxu1 %v7370_v51  ;;  %v6397_v35 = vadd.f32 %v6396_v34, %v6395_v27  ;;  %v6503_v41 = vadd.f32 %v6502_v38, %v6501_v33  ;;  %v7415_v51 = vld [vmem:[#allocation3 + $0x2e0] ss:$36 sps:$4 sm:$0xff]   ;;  %v7468_v38 = vld [vmem:[#allocation10 + $0x30] sm:$0xff]  }
 0x240   : > { %4514 = vmatprep.mubr.bf16.mxu0 %v7372_v53  ;;  %6954 = vmatpush3.bf16.msra.mxu1 %v7428_v46  ;;  %v6398_v44 = vpop.f32.mrf.mxu1  ;;  %v6504_v45 = vpop.f32.mrf.mxu0  ;;  %v7467_v46 = vld [vmem:[#allocation10 + $0x38] sm:$0xff]  }
 0x241   : > { %6955 = vmatprep.subr.bf16.mxu1 %v7441_v52  ;;  %v8066_v47 = vadd.f32 %v6503_v41, %v4010_v39  ;;  %6989 = vmatprep.subr.bf16.mxu0 %v7467_v46  ;;  %v7422_v39 = vld [vmem:[#allocation3 + $0x370] ss:$36 sps:$4 sm:$0xff]  }
 0x242   : > { %v6399_v50 = vpop.f32.mrf.mxu1  ;;  %6990 = vmatpush3.bf16.msra.mxu0 %v7467_v46 }
 0x243   : > { %v6400_v53 = vadd.f32 %v6399_v50, %v6398_v44  ;;  %v7425_v44 = vld [vmem:[#allocation3 + $0x330] ss:$36 sps:$4 sm:$0xff]   ;;  %v7431_v50 = vld [vmem:[#allocation3 + $0x3bc] ss:$36 sps:$4 sm:$0xff]   ;;  %6991 = vmatprep.subr.bf16.mxu0 %v7468_v38 }
 0x244   : > { %6956 = vmatpush3.bf16.msra.mxu1 %v7441_v52  ;;  %v7411_v52 = vld [vmem:[#allocation3 + $0x2a0] ss:$36 sps:$4 sm:$0xff]  }
 0x246   : > { %4362 = vmatmul.mubr.bf16.gmra.mxu1 %v7375_v56  ;;  %v6505_v56 = vpop.f32.mrf.mxu0  ;;  %6992 = vmatpush3.bf16.msra.mxu0 %v7468_v38 }
 0x247   : > { %4515 = vmatmul.mubr.bf16.gmra.mxu0 %v7376_v57  ;;  %4369 = vmatprep.mubr.bf16.mxu1 %v7377_v58  ;;  %v7416_v57 = vld [vmem:[#allocation3 + $0x32c] ss:$36 sps:$4 sm:$0xff]   ;;  %v4013_v58 = vadd.f32 %v6394_v40, %v8062_v32 }
 0x248   : > { %4522 = vmatprep.mubr.bf16.mxu0 %v7381_v59  ;;  %v6506_v59 = vadd.f32 %v6505_v56, %v6504_v45  ;;  %v7434_v56 = vld [vmem:[#allocation3 + $0x37c] ss:$36 sps:$4 sm:$0xff]  }
 0x24e   : > { %4370 = vmatmul.mubr.bf16.gmra.mxu1 %v7382_v3  ;;  %v6401_v3 = vpop.f32.mrf.mxu1 }
 0x24f   : > { %4523 = vmatmul.mubr.bf16.gmra.mxu0 %v7379_v62  ;;  %4377 = vmatprep.mubr.bf16.mxu1 %v7383_v63  ;;  %v6507_v62 = vpop.f32.mrf.mxu0  ;;  %v8069_v63 = vadd.f32 %v6506_v59, %v4013_v58 }
 0x250   : > { %4530 = vmatprep.mubr.bf16.mxu0 %v7387_v1  ;;  %v6402_v1 = vpop.f32.mrf.mxu1 }
 0x256   : > { %4378 = vmatmul.mubr.bf16.gmra.mxu1 %v7389_v2  ;;  %v6403_v2 = vadd.f32 %v6402_v1, %v6401_v3 }
 0x257   : > { %4531 = vmatmul.mubr.bf16.gmra.mxu0 %v7385_v4  ;;  %4385 = vmatprep.mubr.bf16.mxu1 %v7390_v5  ;;  %v6508_v4 = vpop.f32.mrf.mxu0  ;;  %v4018_v5 = vadd.f32 %v6397_v35, %v8062_v32 }
 0x258   : > { %4538 = vmatprep.mubr.bf16.mxu0 %v7394_v6  ;;  %v6509_v6 = vadd.f32 %v6508_v4, %v6507_v62 }
 0x25e   : > { %4386 = vmatmul.mubr.bf16.gmra.mxu1 %v7395_v8  ;;  %v6404_v8 = vpop.f32.mrf.mxu1 }
 0x25f   : > { %4539 = vmatmul.mubr.bf16.gmra.mxu0 %v7392_v9  ;;  %4393 = vmatprep.mubr.bf16.mxu1 %v7396_v10  ;;  %v6510_v9 = vpop.f32.mrf.mxu0  ;;  %v8072_v10 = vadd.f32 %v6509_v6, %v4018_v5  ;;  %v7429_v5 = vld [vmem:[#allocation3 + $0x3b8] ss:$36 sps:$4 sm:$0xff]  }
 0x260   : > { %4546 = vmatprep.mubr.bf16.mxu0 %v7400_v11  ;;  %v6405_v11 = vpop.f32.mrf.mxu1 }
 0x261   : > { %v6406_v14 = vadd.f32 %v6405_v11, %v6404_v8  ;;  %v6511_v15 = vpop.f32.mrf.mxu0 }
 0x263   : > { %v6513_v21 = vpop.f32.mrf.mxu0 }
 0x265   : > { %v6514_v27 = vpop.f32.mrf.mxu0 }
 0x266   : > { %4394 = vmatmul.mubr.bf16.gmra.mxu1 %v7402_v16  ;;  %v7424_v16 = vld [vmem:[#allocation3 + $0x374] ss:$36 sps:$4 sm:$0xff]   ;;  %v6515_v33 = vadd.f32 %v6514_v27, %v6513_v21 }
 0x267   : > { %4547 = vmatmul.mubr.bf16.gmra.mxu0 %v7398_v17  ;;  %4401 = vmatprep.mubr.bf16.mxu1 %v7403_v18  ;;  %v4021_v17 = vadd.f32 %v6400_v53, %v8062_v32  ;;  %v6512_v18 = vadd.f32 %v6511_v15, %v6510_v9  ;;  %v6516_v35 = vpop.f32.mrf.mxu0  ;;  %v7432_v9 = vld [vmem:[#allocation3 + $0x378] ss:$36 sps:$4 sm:$0xff]  }
 0x268   : > { %4554 = vmatprep.mubr.bf16.mxu0 %v7407_v19  ;;  %v6407_v19 = vpop.f32.mrf.mxu1 }
 0x269   : > { %v6517_v46 = vpop.f32.mrf.mxu0 }
 0x26e   : > { %4402 = vmatmul.mubr.bf16.gmra.mxu1 %v7408_v22  ;;  %v8075_v22 = vadd.f32 %v6512_v18, %v4021_v17  ;;  %v7440_v17 = vld [vmem:[#allocation3 + $0x3c4] ss:$36 sps:$4 sm:$0xff]  }
 0x26f   : > { %4555 = vmatmul.mubr.bf16.gmra.mxu0 %v7405_v23  ;;  %4409 = vmatprep.mubr.bf16.mxu1 %v7409_v26  ;;  %v6408_v23 = vpop.f32.mrf.mxu1 }
 0x270   : > { %4562 = vmatprep.mubr.bf16.mxu0 %v7413_v28  ;;  %v6409_v26 = vadd.f32 %v6408_v23, %v6407_v19  ;;  %v4026_v28 = vadd.f32 %v6403_v2, %v8062_v32 }
 0x271   : > { %v6410_v34 = vpop.f32.mrf.mxu1 }
 0x272   : > { %v8078_v40 = vadd.f32 %v6515_v33, %v4026_v28  ;;  %v4034_v62 = vadd.f32 %v6409_v26, %v8062_v32 }
 0x273   : > { %v6411_v41 = vpop.f32.mrf.mxu1 }
 0x274   : > { %v6412_v45 = vadd.f32 %v6411_v41, %v6410_v34  ;;  %v7469_v34 = vld [vmem:[#allocation10 + $0x28] sm:$0xff]   ;;  %v7438_v41 = vld [vmem:[#allocation3 + $0x3c0] ss:$36 sps:$4 sm:$0xff]  }
 0x275   : > { %v6413_v53 = vpop.f32.mrf.mxu1  ;;  %6993 = vmatprep.subr.bf16.mxu0 %v7469_v34 }
 0x276   : > { %4410 = vmatmul.mubr.bf16.gmra.mxu1 %v7415_v51  ;;  %v4029_v51 = vadd.f32 %v6406_v14, %v8062_v32  ;;  %v4037_v14 = vadd.f32 %v6412_v45, %v8062_v32  ;;  %6994 = vmatpush3.bf16.msra.mxu0 %v7469_v34 }
 0x277   : > { %4563 = vmatmul.mubr.bf16.gmra.mxu0 %v7411_v52  ;;  %4417 = vmatprep.mubr.bf16.mxu1 %v7416_v57  ;;  %v6518_v52 = vadd.f32 %v6517_v46, %v6516_v35  ;;  %v6519_v57 = vpop.f32.mrf.mxu0  ;;  %v6414_v59 = vpop.f32.mrf.mxu1  ;;  %v7435_v35 = vld [vmem:[#allocation3 + $0x400] ss:$36 sps:$4 sm:$0xff]   ;;  %v7444_v46 = vld [vmem:[#allocation3 + $0x44c] ss:$36 sps:$4 sm:$0xff]  }
 0x278   : > { %4570 = vmatprep.mubr.bf16.mxu0 %v7420_v29  ;;  %v6415_v3 = vadd.f32 %v6414_v59, %v6413_v53  ;;  %v7447_v53 = vld [vmem:[#allocation3 + $0x40c] ss:$36 sps:$4 sm:$0xff]  }
 0x279   : > { %v8081_v58 = vadd.f32 %v6518_v52, %v4029_v51  ;;  %v6520_v29 = vpop.f32.mrf.mxu0  ;;  %v6416_v2 = vpop.f32.mrf.mxu1 }
 0x27a   : > { %v6521_v1 = vadd.f32 %v6520_v29, %v6519_v57  ;;  %v4042_v26 = vadd.f32 %v6415_v3, %v8062_v32 }
 0x27b   : > { %v6522_v4 = vpop.f32.mrf.mxu0  ;;  %v6417_v8 = vpop.f32.mrf.mxu1 }
 0x27c   : > { %v8084_v6 = vadd.f32 %v6521_v1, %v4034_v62  ;;  %v6418_v11 = vadd.f32 %v6417_v8, %v6416_v2 }
 0x27e   : > { %4418 = vmatmul.mubr.bf16.gmra.mxu1 %v7421_v12  ;;  %v6523_v12 = vpop.f32.mrf.mxu0 }
 0x27f   : > { %4571 = vmatmul.mubr.bf16.gmra.mxu0 %v7418_v13  ;;  %4425 = vmatprep.mubr.bf16.mxu1 %v7424_v16  ;;  %v7437_v13 = vld [vmem:[#allocation3 + $0x404] ss:$36 sps:$4 sm:$0xff]   ;;  %v6524_v15 = vadd.f32 %v6523_v12, %v6522_v4 }
 0x280   : > { %4578 = vmatprep.mubr.bf16.mxu0 %v7427_v20  ;;  %v6525_v18 = vpop.f32.mrf.mxu0  ;;  %v7445_v12 = vld [vmem:[#allocation3 + $0x408] ss:$36 sps:$4 sm:$0xff]  }
 0x281   : > { %v6419_v16 = vpop.f32.mrf.mxu1  ;;  %v8087_v19 = vadd.f32 %v6524_v15, %v4037_v14  ;;  %v7448_v15 = vld [vmem:[#allocation3 + $0x20] ss:$36 sps:$4 sm:$0xff]  }
 0x282   : > { %v6526_v23 = vpop.f32.mrf.mxu0 }
 0x283   : > { %v6420_v20 = vpop.f32.mrf.mxu1  ;;  %v6527_v27 = vadd.f32 %v6526_v23, %v6525_v18 }
 0x284   : > { %v6421_v21 = vadd.f32 %v6420_v20, %v6419_v16  ;;  %v6528_v33 = vpop.f32.mrf.mxu0 }
 0x285   : > { %v6422_v28 = vpop.f32.mrf.mxu1  ;;  %v8090_v38 = vadd.f32 %v6527_v27, %v4042_v26 }
 0x286   : > { %4426 = vmatmul.mubr.bf16.gmra.mxu1 %v7422_v39  ;;  %v6529_v45 = vpop.f32.mrf.mxu0  ;;  %v4050_v62 = vadd.f32 %v6421_v21, %v8062_v32 }
 0x287   : > { %4579 = vmatmul.mubr.bf16.gmra.mxu0 %v7425_v44  ;;  %4433 = vmatprep.mubr.bf16.mxu1 %v7431_v50  ;;  %v6423_v39 = vpop.f32.mrf.mxu1  ;;  %v4045_v50 = vadd.f32 %v6418_v11, %v8062_v32  ;;  %v6530_v51 = vadd.f32 %v6529_v45, %v6528_v33  ;;  %v7451_v11 = vld [vmem:[#allocation3 + $0x454] ss:$36 sps:$4 sm:$0xff]  }
 0x288   : > { %4586 = vmatprep.mubr.bf16.mxu0 %v7434_v56  ;;  %v6424_v44 = vadd.f32 %v6423_v39, %v6422_v28  ;;  %v7449_v39 = vld [vmem:[#allocation3 + $0x450] ss:$36 sps:$4 sm:$0xff]  }
 0x289   : > { %v6425_v52 = vpop.f32.mrf.mxu1  ;;  %v8093_v57 = vadd.f32 %v6530_v51, %v4045_v50 }
 0x28a   : > { %v4053_v16 = vadd.f32 %v6424_v44, %v8062_v32 }
 0x28b   : > { %v6426_v59 = vpop.f32.mrf.mxu1 }
 0x28c   : > { %v6427_v3 = vadd.f32 %v6426_v59, %v6425_v52  ;;  %v7453_v52 = vld [vmem:[#allocation3 + $0xb0] ss:$36 sps:$4 sm:$0xff]  }
 0x28d   : > { %v6428_v2 = vpop.f32.mrf.mxu1 }
 0x28e   : > { %4434 = vmatmul.mubr.bf16.gmra.mxu1 %v7429_v5  ;;  %v7442_v5 = vld [vmem:[#allocation3 + $0x448] ss:$36 sps:$4 sm:$0xff]   ;;  %v4058_v28 = vadd.f32 %v6427_v3, %v8062_v32 }
 0x28f   : > { %4587 = vmatmul.mubr.bf16.gmra.mxu0 %v7432_v9  ;;  %4441 = vmatprep.mubr.bf16.mxu1 %v7437_v13  ;;  %v6429_v9 = vpop.f32.mrf.mxu1 }
 0x290   : > { %4594 = vmatprep.mubr.bf16.mxu0 %v7440_v17  ;;  %v6430_v13 = vadd.f32 %v6429_v9, %v6428_v2 }
 0x293   : > { %v6531_v56 = vpop.f32.mrf.mxu0 }
 0x295   : > { %v6532_v29 = vpop.f32.mrf.mxu0 }
 0x296   : > { %4442 = vmatmul.mubr.bf16.gmra.mxu1 %v7435_v35  ;;  %v6533_v1 = vadd.f32 %v6532_v29, %v6531_v56 }
 0x297   : > { %4595 = vmatmul.mubr.bf16.gmra.mxu0 %v7438_v41  ;;  %4449 = vmatprep.mubr.bf16.mxu1 %v7444_v46  ;;  %v6534_v4 = vpop.f32.mrf.mxu0  ;;  %v7470_v41 = vld [vmem:[#allocation10 + $0x20] sm:$0xff]   ;;  %v7452_v46 = vld [vmem:[#allocation3 + $0x68] ss:$36 sps:$4 sm:$0xff]  }
 0x298   : > { %4602 = vmatprep.mubr.bf16.mxu0 %v7447_v53  ;;  %v8096_v8 = vadd.f32 %v6533_v1, %v4050_v62  ;;  %6995 = vmatprep.subr.bf16.mxu0 %v7470_v41  ;;  %v4061_v53 = vadd.f32 %v6430_v13, %v8062_v32 }
 0x299   : > { %v6535_v14 = vpop.f32.mrf.mxu0  ;;  %6996 = vmatpush3.bf16.msra.mxu0 %v7470_v41 }
 0x29a   : > { %v6536_v17 = vadd.f32 %v6535_v14, %v6534_v4  ;;  %v7454_v14 = vld [vmem:[#allocation3 + $0xf8] ss:$36 sps:$4 sm:$0xff]  }
 0x29c   : > { %v8099_v21 = vadd.f32 %v6536_v17, %v4053_v16  ;;  %v7455_v17 = vld [vmem:[#allocation3 + $0x140] ss:$36 sps:$4 sm:$0xff]  }
 0x29e   : > { %v6431_v18 = vpop.f32.mrf.mxu1  ;;  %4450 = vmatmul.mubr.bf16.gmra.mxu1 %v7442_v5 }
 0x29f   : > { %v6537_v20 = vpop.f32.mrf.mxu0  ;;  %4603 = vmatmul.mubr.bf16.gmra.mxu0 %v7445_v12  ;;  %6957 = vmatprep.mubr.bf16.mxu1 %v7448_v15 }
 0x2a0   : > { %v6432_v23 = vpop.f32.mrf.mxu1  ;;  %4610 = vmatprep.mubr.bf16.mxu0 %v7451_v11 }
 0x2a1   : > { %v6433_v26 = vadd.f32 %v6432_v23, %v6431_v18  ;;  %v6538_v27 = vpop.f32.mrf.mxu0 }
 0x2a2   : > { %v6539_v33 = vadd.f32 %v6538_v27, %v6537_v20  ;;  %v6434_v34 = vpop.f32.mrf.mxu1 }
 0x2a3   : > { %v6540_v35 = vpop.f32.mrf.mxu0  ;;  %v4066_v4 = vadd.f32 %v6433_v26, %v8062_v32 }
 0x2a4   : > { %v8102_v44 = vadd.f32 %v6539_v33, %v4058_v28  ;;  %v6435_v45 = vpop.f32.mrf.mxu1 }
 0x2a5   : > { %v6436_v50 = vadd.f32 %v6435_v45, %v6434_v34  ;;  %v6541_v51 = vpop.f32.mrf.mxu0 }
 0x2a6   : > { %v6542_v56 = vadd.f32 %v6541_v51, %v6540_v35  ;;  %v6437_v59 = vpop.f32.mrf.mxu1  ;;  %6958 = vmatmul.mubr.bf16.vlgmr.msra.gmra.mxu1 %v7452_v46  ;;  %v7471_v46 = vld [vmem:[#allocation10 + $0x18] sm:$0xff]  }
 0x2a7   : > { %v6543_v3 = vpop.f32.mrf.mxu0  ;;  %4611 = vmatmul.mubr.bf16.gmra.mxu0 %v7449_v39  ;;  %6961 = vmatprep.mubr.bf16.mxu1 %v7453_v52  ;;  %v4069_v18 = vadd.f32 %v6436_v50, %v8062_v32  ;;  %v7456_v50 = vld [vmem:[#allocation3 + $0x188] ss:$36 sps:$4 sm:$0xff]  }
 0x2a8   : > { %v8105_v29 = vadd.f32 %v6542_v56, %v4061_v53  ;;  %v6438_v62 = vpop.f32.mrf.mxu1  ;;  %6997 = vmatprep.subr.bf16.mxu0 %v7471_v46 }
 0x2a9   : > { %v6439_v1 = vadd.f32 %v6438_v62, %v6437_v59  ;;  %v6544_v2 = vpop.f32.mrf.mxu0  ;;  %v7457_v59 = vld [vmem:[#allocation3 + $0x1d0] ss:$36 sps:$4 sm:$0xff]   ;;  %6998 = vmatpush3.bf16.msra.mxu0 %v7471_v46 }
 0x2aa   : > { %v6545_v5 = vadd.f32 %v6544_v2, %v6543_v3  ;;  %v6440_v9 = vpop.f32.mrf.mxu1  ;;  %v7473_v46 = vld [vmem:[#allocation12 + $0x30] sm:$0xff]  }
 0x2ab   : > { %v6546_v11 = vpop.f32.mrf.mxu0  ;;  %v4074_v35 = vadd.f32 %v6439_v1, %v8062_v32  ;;  %v7472_v1 = vld [vmem:[#allocation12 + $0x38] sm:$0xff]  }
 0x2ac   : > { %v8108_v12 = vadd.f32 %v6545_v5, %v4066_v4  ;;  %v6441_v13 = vpop.f32.mrf.mxu1  ;;  %7037 = vmatprep.subr.bf16.mxu1 %v7472_v1 }
 0x2ad   : > { %v6442_v15 = vadd.f32 %v6441_v13, %v6440_v9  ;;  %v6547_v16 = vpop.f32.mrf.mxu0  ;;  %7038 = vmatpush3.bf16.msra.mxu1 %v7472_v1 }
 0x2ae   : > { %v6548_v20 = vadd.f32 %v6547_v16, %v6546_v11  ;;  %v6443_v23 = vpop.f32.mrf.mxu1  ;;  %6962 = vmatmul.mubr.bf16.gmra.mxu1 %v7454_v14  ;;  %7039 = vmatprep.subr.bf16.mxu1 %v7473_v46 }
 0x2af   : > { %v6549_v27 = vpop.f32.mrf.mxu0  ;;  %6965 = vmatprep.mubr.bf16.mxu1 %v7455_v17  ;;  %v4077_v3 = vadd.f32 %v6442_v15, %v8062_v32 }
 0x2b0   : > { %v8111_v28 = vadd.f32 %v6548_v20, %v4069_v18  ;;  %v6444_v26 = vpop.f32.mrf.mxu1 }
 0x2b1   : > { %v6445_v33 = vadd.f32 %v6444_v26, %v6443_v23  ;;  %v6550_v34 = vpop.f32.mrf.mxu0  ;;  %v7458_v23 = vld [vmem:[#allocation3 + $0x218] ss:$36 sps:$4 sm:$0xff]   ;;  %7040 = vmatpush3.bf16.msra.mxu1 %v7473_v46 }
 0x2b2   : > { %v6551_v39 = vadd.f32 %v6550_v34, %v6549_v27  ;;  %v6446_v41 = vpop.f32.mrf.mxu1  ;;  %v7459_v34 = vld [vmem:[#allocation3 + $0x260] ss:$36 sps:$4 sm:$0xff]  }
 0x2b3   : > { %v6552_v45 = vpop.f32.mrf.mxu0  ;;  %v4082_v14 = vadd.f32 %v6445_v33, %v8062_v32 }
 0x2b4   : > { %v8114_v51 = vadd.f32 %v6551_v39, %v4074_v35  ;;  %v6447_v52 = vpop.f32.mrf.mxu1 }
 0x2b5   : > { %v6448_v53 = vadd.f32 %v6447_v52, %v6446_v41  ;;  %v6553_v56 = vpop.f32.mrf.mxu0 }
 0x2b6   : > { %v6554_v62 = vadd.f32 %v6553_v56, %v6552_v45  ;;  %v6449_v2 = vpop.f32.mrf.mxu1  ;;  %6966 = vmatmul.mubr.bf16.gmra.mxu1 %v7456_v50 }
 0x2b7   : > { %v6555_v4 = vpop.f32.mrf.mxu0  ;;  %6969 = vmatprep.mubr.bf16.mxu1 %v7457_v59  ;;  %v4085_v35 = vadd.f32 %v6448_v53, %v8062_v32 }
 0x2b8   : > { %v8117_v5 = vadd.f32 %v6554_v62, %v4077_v3  ;;  %v6450_v9 = vpop.f32.mrf.mxu1 }
 0x2b9   : > { %v6451_v11 = vadd.f32 %v6450_v9, %v6449_v2  ;;  %v6556_v13 = vpop.f32.mrf.mxu0  ;;  %v7460_v9 = vld [vmem:[#allocation3 + $0x2a8] ss:$36 sps:$4 sm:$0xff]  }
 0x2ba   : > { %v6557_v16 = vadd.f32 %v6556_v13, %v6555_v4  ;;  %v6452_v17 = vpop.f32.mrf.mxu1  ;;  %v7474_v4 = vld [vmem:[#allocation10 + $0x10] sm:$0xff]  }
 0x2bb   : > { %v6558_v18 = vpop.f32.mrf.mxu0  ;;  %v4090_v59 = vadd.f32 %v6451_v11, %v8062_v32  ;;  %6999 = vmatprep.subr.bf16.mxu0 %v7474_v4 }
 0x2bc   : > { %v8120_v15 = vadd.f32 %v6557_v16, %v4082_v14  ;;  %v6453_v20 = vpop.f32.mrf.mxu1  ;;  %v7461_v16 = vld [vmem:[#allocation3 + $0x2f0] ss:$36 sps:$4 sm:$0xff]   ;;  %7000 = vmatpush3.bf16.msra.mxu0 %v7474_v4 }
 0x2bd   : > { %v6454_v27 = vadd.f32 %v6453_v20, %v6452_v17  ;;  %v6559_v26 = vpop.f32.mrf.mxu0 }
 0x2be   : > { %v6560_v39 = vadd.f32 %v6559_v26, %v6558_v18  ;;  %v6455_v41 = vpop.f32.mrf.mxu1  ;;  %6970 = vmatmul.mubr.bf16.gmra.mxu1 %v7458_v23  ;;  %v7475_v23 = vld [vmem:[#allocation12 + $0x28] sm:$0xff]  }
 0x2bf   : > { %v6561_v45 = vpop.f32.mrf.mxu0  ;;  %6973 = vmatprep.mubr.bf16.mxu1 %v7459_v34  ;;  %v4093_v17 = vadd.f32 %v6454_v27, %v8062_v32  ;;  %7041 = vmatprep.subr.bf16.mxu1 %v7475_v23 }
 0x2c0   : > { %v8123_v33 = vadd.f32 %v6560_v39, %v4085_v35  ;;  %v6456_v52 = vpop.f32.mrf.mxu1  ;;  %7042 = vmatpush3.bf16.msra.mxu1 %v7475_v23 }
 0x2c1   : > { %v6457_v50 = vadd.f32 %v6456_v52, %v6455_v41  ;;  %v6562_v56 = vpop.f32.mrf.mxu0 }
 0x2c2   : > { %v6563_v3 = vadd.f32 %v6562_v56, %v6561_v45  ;;  %v6458_v62 = vpop.f32.mrf.mxu1 }
 0x2c3   : > { %v6564_v2 = vpop.f32.mrf.mxu0  ;;  %v4098_v41 = vadd.f32 %v6457_v50, %v8062_v32 }
 0x2c4   : > { %v8126_v53 = vadd.f32 %v6563_v3, %v4090_v59  ;;  %v6459_v1 = vpop.f32.mrf.mxu1  ;;  %v7462_v59 = vld [vmem:[#allocation3 + $0x338] ss:$36 sps:$4 sm:$0xff]  }
 0x2c5   : > { %v6460_v13 = vadd.f32 %v6459_v1, %v6458_v62  ;;  %v6565_v14 = vpop.f32.mrf.mxu0 }
 0x2c6   : > { %v6566_v18 = vadd.f32 %v6565_v14, %v6564_v2  ;;  %v6461_v20 = vpop.f32.mrf.mxu1  ;;  %6974 = vmatmul.mubr.bf16.gmra.mxu1 %v7460_v9  ;;  %v7463_v2 = vld [vmem:[#allocation3 + $0x380] ss:$36 sps:$4 sm:$0xff]  }
 0x2c7   : > { %v6567_v11 = vpop.f32.mrf.mxu0  ;;  %6977 = vmatprep.mubr.bf16.mxu1 %v7461_v16  ;;  %v4101_v4 = vadd.f32 %v6460_v13, %v8062_v32  ;;  %v7476_v16 = vld [vmem:[#allocation12 + $0x20] sm:$0xff]  }
 0x2c8   : > { %v8129_v26 = vadd.f32 %v6566_v18, %v4093_v17  ;;  %v6462_v34 = vpop.f32.mrf.mxu1  ;;  %7043 = vmatprep.subr.bf16.mxu1 %v7476_v16 }
 0x2c9   : > { %v6463_v35 = vadd.f32 %v6462_v34, %v6461_v20  ;;  %v6568_v39 = vpop.f32.mrf.mxu0  ;;  %7044 = vmatpush3.bf16.msra.mxu1 %v7476_v16 }
 0x2ca   : > { %v6569_v45 = vadd.f32 %v6568_v39, %v6567_v11  ;;  %v6464_v46 = vpop.f32.mrf.mxu1 }
 0x2cb   : > { %v6570_v52 = vpop.f32.mrf.mxu0  ;;  %v4106_v11 = vadd.f32 %v6463_v35, %v8062_v32 }
 0x2cc   : > { %v8132_v27 = vadd.f32 %v6569_v45, %v4098_v41  ;;  %v6465_v56 = vpop.f32.mrf.mxu1  ;;  %v7477_v41 = vld [vmem:[#allocation10 + $0x8] sm:$0xff]  }
 0x2cd   : > { %v6466_v3 = vadd.f32 %v6465_v56, %v6464_v46  ;;  %v6571_v62 = vpop.f32.mrf.mxu0  ;;  %v7464_v46 = vld [vmem:[#allocation3 + $0x3c8] ss:$36 sps:$4 sm:$0xff]   ;;  %7001 = vmatprep.subr.bf16.mxu0 %v7477_v41 }
 0x2ce   : > { %v6572_v1 = vadd.f32 %v6571_v62, %v6570_v52  ;;  %v6467_v9 = vpop.f32.mrf.mxu1  ;;  %6978 = vmatmul.mubr.bf16.gmra.mxu1 %v7462_v59  ;;  %v7465_v59 = vld [vmem:[#allocation3 + $0x410] ss:$36 sps:$4 sm:$0xff]   ;;  %7002 = vmatpush3.bf16.msra.mxu0 %v7477_v41 }
 0x2cf   : > { %v6573_v14 = vpop.f32.mrf.mxu0  ;;  %6981 = vmatprep.mubr.bf16.mxu1 %v7463_v2  ;;  %v4109_v62 = vadd.f32 %v6466_v3, %v8062_v32 }
 0x2d0   : > { %v8135_v50 = vadd.f32 %v6572_v1, %v4101_v4  ;;  %v6468_v17 = vpop.f32.mrf.mxu1  ;;  %v7478_v1 = vld [vmem:[#allocation12 + $0x18] sm:$0xff]  }
 0x2d1   : > { %v6469_v18 = vadd.f32 %v6468_v17, %v6467_v9  ;;  %v6574_v20 = vpop.f32.mrf.mxu0  ;;  %7045 = vmatprep.subr.bf16.mxu1 %v7478_v1 }
 0x2d2   : > { %v6575_v23 = vadd.f32 %v6574_v20, %v6573_v14  ;;  %v6470_v34 = vpop.f32.mrf.mxu1  ;;  %7046 = vmatpush3.bf16.msra.mxu1 %v7478_v1 }
 0x2d3   : > { %v6576_v39 = vpop.f32.mrf.mxu0  ;;  %v4114_v20 = vadd.f32 %v6469_v18, %v8062_v32 }
 0x2d4   : > { %v8138_v13 = vadd.f32 %v6575_v23, %v4106_v11  ;;  %v6471_v45 = vpop.f32.mrf.mxu1 }
 0x2d5   : > { %v6472_v52 = vadd.f32 %v6471_v45, %v6470_v34  ;;  %v6577_v56 = vpop.f32.mrf.mxu0  ;;  %v7466_v34 = vld [vmem:[#allocation3 + $0x458] ss:$36 sps:$4 sm:$0xff]  }
 0x2d6   : > { %v6578_v2 = vadd.f32 %v6577_v56, %v6576_v39  ;;  %v6473_v4 = vpop.f32.mrf.mxu1  ;;  %6982 = vmatmul.mubr.bf16.gmra.mxu1 %v7464_v46 }
 0x2d7   : > { %v6579_v35 = vpop.f32.mrf.mxu0  ;;  %6985 = vmatprep.mubr.bf16.mxu1 %v7465_v59  ;;  %v4117_v56 = vadd.f32 %v6472_v52, %v8062_v32  ;;  %v7480_v52 = vld [vmem:[#allocation10] sm:$0xff]  }
 0x2d8   : > { %v8141_v9 = vadd.f32 %v6578_v2, %v4109_v62  ;;  %v6474_v14 = vpop.f32.mrf.mxu1  ;;  %7003 = vmatprep.subr.bf16.mxu0 %v7480_v52 }
 0x2d9   : > { %v6475_v16 = vadd.f32 %v6474_v14, %v6473_v4  ;;  %v6580_v17 = vpop.f32.mrf.mxu0  ;;  %v7479_v4 = vld [vmem:[#allocation12 + $0x10] sm:$0xff]   ;;  %7004 = vmatpush3.bf16.msra.mxu0 %v7480_v52 }
 0x2da   : > { %v6581_v11 = vadd.f32 %v6580_v17, %v6579_v35  ;;  %v6476_v23 = vpop.f32.mrf.mxu1  ;;  %7047 = vmatprep.subr.bf16.mxu1 %v7479_v4 }
 0x2db   : > { %v6582_v3 = vpop.f32.mrf.mxu0  ;;  %v4122_v17 = vadd.f32 %v6475_v16, %v8062_v32  ;;  %7048 = vmatpush3.bf16.msra.mxu1 %v7479_v4 }
 0x2dc   : > { %v8144_v39 = vadd.f32 %v6581_v11, %v4114_v20  ;;  %v6477_v45 = vpop.f32.mrf.mxu1 }
 0x2dd   : > { %v6478_v41 = vadd.f32 %v6477_v45, %v6476_v23  ;;  %v6583_v46 = vpop.f32.mrf.mxu0 }
 0x2de   : > { %v6584_v59 = vadd.f32 %v6583_v46, %v6582_v3  ;;  %v6479_v62 = vpop.f32.mrf.mxu1  ;;  %6986 = vmatmul.mubr.bf16.gmra.mxu1 %v7466_v34 }
 0x2df   : > { %v6585_v2 = vpop.f32.mrf.mxu0  ;;  %7053 = vmatprep.mubr.bf16.mxu1 %v7928_v7  ;;  %v4125_v7 = vadd.f32 %v6478_v41, %v8062_v32 }
 0x2e0   : > { %v8148_v18 = vadd.f32 %v6584_v59, %v4117_v56  ;;  %v6480_v35 = vpop.f32.mrf.mxu1 }
 0x2e1   : > { %v6481_v14 = vadd.f32 %v6480_v35, %v6479_v62  ;;  %v6586_v1 = vpop.f32.mrf.mxu0  ;;  %v7481_v35 = vld [vmem:[#allocation12 + $0x8] sm:$0xff]  }
 0x2e2   : > { %8661 = vst [vmem:[#allocation18_spill] sm:$0xff] %v8148_v18  ;;  %v6587_v20 = vadd.f32 %v6586_v1, %v6585_v2  ;;  %v6482_v11 = vpop.f32.mrf.mxu1  ;;  %7049 = vmatprep.subr.bf16.mxu1 %v7481_v35 }
 0x2e3   : > { %v6588_v23 = vpop.f32.mrf.mxu0  ;;  %v4130_v1 = vadd.f32 %v6481_v14, %v8062_v32  ;;  %7050 = vmatpush3.bf16.msra.mxu1 %v7481_v35 }
 0x2e4   : > { %v8151_v3 = vadd.f32 %v6587_v20, %v4122_v17  ;;  %v6483_v34 = vpop.f32.mrf.mxu1 }
 0x2e5   : > { %v6484_v45 = vadd.f32 %v6483_v34, %v6482_v11  ;;  %v6589_v46 = vpop.f32.mrf.mxu0 }
 0x2e6   : > { %8662 = vst [vmem:[#allocation19_spill] sm:$0xff] %v8151_v3  ;;  %v6590_v56 = vadd.f32 %v6589_v46, %v6588_v23  ;;  %v6613_v59 = vpop.f32.mrf.mxu1 }
 0x2e7   : > { %v6591_v62 = vpop.f32.mrf.mxu0 }
 0x2e8   : > { %v8154_v18 = vadd.f32 %v6590_v56, %v4125_v7  ;;  %v6614_v16 = vpop.f32.mrf.mxu1  ;;  %v4133_v7 = vadd.f32 %v6484_v45, %v8062_v32 }
 0x2e9   : > { %v6592_v2 = vpop.f32.mrf.mxu0  ;;  %v6615_v4 = vadd.f32 %v6614_v16, %v6613_v59 }
 0x2ea   : > { %8663 = vst [vmem:[#allocation20_spill] sm:$0xff] %v8154_v18  ;;  %v6593_v17 = vadd.f32 %v6592_v2, %v6591_v62  ;;  %v6616_v20 = vpop.f32.mrf.mxu1  ;;  %v7482_v2 = vld [vmem:[#allocation12] sm:$0xff]  }
 0x2eb   : > { %v4332_v11 = vadd.f32 %v6615_v4, %v8066_v47  ;;  %v6594_v34 = vpop.f32.mrf.mxu0  ;;  %7051 = vmatprep.subr.bf16.mxu1 %v7482_v2 }
 0x2ec   : > { %v8158_v41 = vadd.f32 %v6593_v17, %v4130_v1  ;;  %v6617_v23 = vpop.f32.mrf.mxu1  ;;  %7052 = vmatpush3.bf16.msra.mxu1 %v7482_v2 }
 0x2ed   : > { %v6595_v52 = vpop.f32.mrf.mxu0  ;;  %v6618_v46 = vadd.f32 %v6617_v23, %v6616_v20 }
 0x2ee   : > { %v6596_v56 = vadd.f32 %v6595_v52, %v6594_v34  ;;  %v6619_v18 = vpop.f32.mrf.mxu1 }
 0x2ef   : > { %v4335_v59 = vadd.f32 %v6618_v46, %v8069_v63  ;;  %v6725_v16 = vpop.f32.mrf.mxu0  ;;  %7054 = vmatmul.mubr.bf16.vlgmr.msra.gmra.mxu1 %v7935_v24 }
 0x2f0   : > { %v8162_v3 = vadd.f32 %v6596_v56, %v4133_v7  ;;  %v6620_v14 = vpop.f32.mrf.mxu1  ;;  %7057 = vmatprep.mubr.bf16.mxu1 %v7937_v25 }
 0x2f1   : > { %v6621_v62 = vadd.f32 %v6620_v14, %v6619_v18  ;;  %v6726_v35 = vpop.f32.mrf.mxu0 }
 0x2f2   : > { %8664 = vst [vmem:[#allocation21_spill] sm:$0xff] %v8162_v3  ;;  %v6727_v47 = vadd.f32 %v6726_v35, %v6725_v16  ;;  %v6622_v4 = vpop.f32.mrf.mxu1 }
 0x2f3   : > { %v8165_v1 = vadd.f32 %v6621_v62, %v8072_v10  ;;  %v6728_v17 = vpop.f32.mrf.mxu0 }
 0x2f4   : > { %v6623_v20 = vpop.f32.mrf.mxu1  ;;  %v8167_v32 = vadd.f32 %v6727_v47, %v4332_v11 }
 0x2f5   : > { %v6624_v45 = vadd.f32 %v6623_v20, %v6622_v4  ;;  %v6729_v63 = vpop.f32.mrf.mxu0 }
 0x2f6   : > { %v6730_v34 = vadd.f32 %v6729_v63, %v6728_v17  ;;  %v6625_v23 = vpop.f32.mrf.mxu1 }
 0x2f7   : > { %v8170_v52 = vadd.f32 %v6624_v45, %v8075_v22  ;;  %v8172_v18 = vpop.f32.mrf.mxu0  ;;  %7058 = vmatmul.mubr.bf16.gmra.mxu1 %v7945_v30 }
 0x2f8   : > { %v6626_v46 = vpop.f32.mrf.mxu1  ;;  %v8175_v10 = vadd.f32 %v6730_v34, %v4335_v59  ;;  %7061 = vmatprep.mubr.bf16.mxu1 %v7947_v31 }
 0x2f9   : > { %v6627_v7 = vadd.f32 %v6626_v46, %v6625_v23  ;;  %v8178_v11 = vpop.f32.mrf.mxu0 }
 0x2fa   : > { %v6628_v56 = vpop.f32.mrf.mxu1 }
 0x2fb   : > { %v8181_v16 = vadd.f32 %v6627_v7, %v8078_v40  ;;  %v8183_v14 = vpop.f32.mrf.mxu0 }
 0x2fc   : > { %v6629_v22 = vpop.f32.mrf.mxu1 }
 0x2fd   : > { %v6630_v62 = vadd.f32 %v6629_v22, %v6628_v56  ;;  %v8185_v35 = vpop.f32.mrf.mxu0 }
 0x2fe   : > { %v6631_v2 = vpop.f32.mrf.mxu1 }
 0x2ff   : > { %v8188_v24 = vadd.f32 %v6630_v62, %v8081_v58  ;;  %v8190_v59 = vpop.f32.mrf.mxu0  ;;  %7062 = vmatmul.mubr.bf16.gmra.mxu1 %v7955_v36 }
 0x300   : > { %v6632_v25 = vpop.f32.mrf.mxu1  ;;  %7065 = vmatprep.mubr.bf16.mxu1 %v7957_v37 }
 0x301   : > { %v6633_v47 = vadd.f32 %v6632_v25, %v6631_v2  ;;  %v8194_v40 = vpop.f32.mrf.mxu0 }
 0x302   : > { %v6634_v4 = vpop.f32.mrf.mxu1 }
 0x303   : > { %v8197_v17 = vadd.f32 %v6633_v47, %v8084_v6  ;;  %v8199_v20 = vpop.f32.mrf.mxu0 }
 0x304   : > { %v6635_v45 = vpop.f32.mrf.mxu1 }
 0x305   : > { %v6636_v63 = vadd.f32 %v6635_v45, %v6634_v4  ;;  %v8201_v58 = vpop.f32.mrf.mxu0 }
 0x306   : > { %v6637_v34 = vpop.f32.mrf.mxu1 }
 0x307   : > { %v8204_v23 = vadd.f32 %v6636_v63, %v8087_v19  ;;  %v8206_v30 = vpop.f32.mrf.mxu0  ;;  %7066 = vmatmul.mubr.bf16.gmra.mxu1 %v7965_v42 }
 0x308   : > { %v6638_v31 = vpop.f32.mrf.mxu1  ;;  %7069 = vmatprep.mubr.bf16.mxu1 %v7967_v43 }
 0x309   : > { %v6639_v46 = vadd.f32 %v6638_v31, %v6637_v34  ;;  %v8210_v6 = vpop.f32.mrf.mxu0 }
 0x30a   : > { %v6640_v7 = vpop.f32.mrf.mxu1 }
 0x30b   : > { %v8213_v56 = vadd.f32 %v6639_v46, %v8090_v38  ;;  %v8215_v22 = vpop.f32.mrf.mxu0 }
 0x30c   : > { %v6641_v62 = vpop.f32.mrf.mxu1 }
 0x30d   : > { %v6642_v2 = vadd.f32 %v6641_v62, %v6640_v7  ;;  %v8217_v19 = vpop.f32.mrf.mxu0 }
 0x30e   : > { %v6643_v25 = vpop.f32.mrf.mxu1 }
 0x30f   : > { %v8220_v47 = vadd.f32 %v6642_v2, %v8093_v57  ;;  %v8222_v36 = vpop.f32.mrf.mxu0  ;;  %7070 = vmatmul.mubr.bf16.gmra.mxu1 %v7975_v48 }
 0x310   : > { %v6644_v37 = vpop.f32.mrf.mxu1  ;;  %7073 = vmatprep.mubr.bf16.mxu1 %v7977_v49 }
 0x311   : > { %v6645_v4 = vadd.f32 %v6644_v37, %v6643_v25  ;;  %v8226_v38 = vpop.f32.mrf.mxu0 }
 0x312   : > { %v6646_v45 = vpop.f32.mrf.mxu1 }
 0x313   : > { %v8229_v63 = vadd.f32 %v6645_v4, %v8096_v8  ;;  %v8231_v34 = vpop.f32.mrf.mxu0 }
 0x314   : > { %v6647_v31 = vpop.f32.mrf.mxu1 }
 0x315   : > { %v6648_v46 = vadd.f32 %v6647_v31, %v6646_v45  ;;  %v8233_v57 = vpop.f32.mrf.mxu0 }
 0x316   : > { %v6649_v7 = vpop.f32.mrf.mxu1 }
 0x317   : > { %v8236_v62 = vadd.f32 %v6648_v46, %v8099_v21  ;;  %v8238_v42 = vpop.f32.mrf.mxu0  ;;  %7074 = vmatmul.mubr.bf16.gmra.mxu1 %v7985_v54 }
 0x318   : > { %v6650_v43 = vpop.f32.mrf.mxu1  ;;  %7077 = vmatprep.mubr.bf16.mxu1 %v7987_v55 }
 0x319   : > { %v6651_v2 = vadd.f32 %v6650_v43, %v6649_v7  ;;  %v8242_v8 = vpop.f32.mrf.mxu0 }
 0x31a   : > { %v6652_v25 = vpop.f32.mrf.mxu1 }
 0x31b   : > { %v8245_v37 = vadd.f32 %v6651_v2, %v8102_v44  ;;  %v8247_v4 = vpop.f32.mrf.mxu0 }
 0x31c   : > { %v6653_v45 = vpop.f32.mrf.mxu1 }
 0x31d   : > { %8665 = vst [vmem:[#allocation22_spill] sm:$0xff] %v8245_v37  ;;  %v6654_v31 = vadd.f32 %v6653_v45, %v6652_v25  ;;  %v8249_v21 = vpop.f32.mrf.mxu0 }
 0x31e   : > { %v6655_v46 = vpop.f32.mrf.mxu1 }
 0x31f   : > { %v8252_v3 = vadd.f32 %v6654_v31, %v8105_v29  ;;  %v8254_v48 = vpop.f32.mrf.mxu0  ;;  %7078 = vmatmul.mubr.bf16.gmra.mxu1 %v7995_v60 }
 0x320   : > { %v6656_v49 = vpop.f32.mrf.mxu1  ;;  %7081 = vmatprep.mubr.bf16.mxu1 %v7997_v61 }
 0x321   : > { %8666 = vst [vmem:[#allocation23_spill] sm:$0xff] %v8252_v3  ;;  %v6657_v7 = vadd.f32 %v6656_v49, %v6655_v46  ;;  %v8258_v44 = vpop.f32.mrf.mxu0 }
 0x322   : > { %v6658_v43 = vpop.f32.mrf.mxu1 }
 0x323   : > { %v8261_v2 = vadd.f32 %v6657_v7, %v8108_v12  ;;  %v8263_v25 = vpop.f32.mrf.mxu0 }
 0x324   : > { %v6659_v45 = vpop.f32.mrf.mxu1 }
 0x325   : > { %8667 = vst [vmem:[#allocation24_spill] sm:$0xff] %v8261_v2  ;;  %v6660_v37 = vadd.f32 %v6659_v45, %v6658_v43  ;;  %v8265_v29 = vpop.f32.mrf.mxu0 }
 0x326   : > { %8668 = vst [vmem:[#allocation25_spill] sm:$0xff] %v8265_v29  ;;  %v6661_v31 = vpop.f32.mrf.mxu1 }
 0x327   : > { %v8268_v3 = vadd.f32 %v6660_v37, %v8111_v28  ;;  %v8270_v54 = vpop.f32.mrf.mxu0  ;;  %7082 = vmatmul.mubr.bf16.gmra.mxu1 %v8003_v0 }
 0x328   : > { %v6662_v55 = vpop.f32.mrf.mxu1 }
 0x329   : > { %8669 = vst [vmem:[#allocation26_spill] sm:$0xff] %v8268_v3  ;;  %v6663_v46 = vadd.f32 %v6662_v55, %v6661_v31  ;;  %v8274_v12 = vpop.f32.mrf.mxu0 }
 0x32a   : > { %v6664_v49 = vpop.f32.mrf.mxu1 }
 0x32b   : > { %v8277_v7 = vadd.f32 %v6663_v46, %v8114_v51  ;;  %v8279_v43 = vpop.f32.mrf.mxu0 }
 0x32c   : > { %v6665_v45 = vpop.f32.mrf.mxu1 }
 0x32d   : > { %8670 = vst [vmem:[#allocation27_spill] sm:$0xff] %v8277_v7  ;;  %v6666_v2 = vadd.f32 %v6665_v45, %v6664_v49  ;;  %v8281_v28 = vpop.f32.mrf.mxu0 }
 0x32e   : > { %v6667_v37 = vpop.f32.mrf.mxu1 }
 0x32f   : > { %v8284_v3 = vadd.f32 %v6666_v2, %v8117_v5  ;;  %v8286_v60 = vpop.f32.mrf.mxu0 }
 0x330   : > { %v6668_v61 = vpop.f32.mrf.mxu1 }
 0x331   : > { %8671 = vst [vmem:[#allocation28_spill] sm:$0xff] %v8284_v3  ;;  %v6669_v31 = vadd.f32 %v6668_v61, %v6667_v37  ;;  %v8289_v55 = vpop.f32.mrf.mxu0 }
 0x332   : > { %8672 = vst [vmem:[#allocation29_spill] sm:$0xff] %v8289_v55  ;;  %v6670_v51 = vpop.f32.mrf.mxu1 }
 0x333   : > { %v8292_v46 = vadd.f32 %v6669_v31, %v8120_v15  ;;  %v8294_v7 = vpop.f32.mrf.mxu0 }
 0x334   : > { %8674 = vst [vmem:[#allocation31_spill] sm:$0xff] %v8294_v7  ;;  %v6671_v49 = vpop.f32.mrf.mxu1 }
 0x335   : > { %8673 = vst [vmem:[#allocation30_spill] sm:$0xff] %v8292_v46  ;;  %v6672_v45 = vadd.f32 %v6671_v49, %v6670_v51  ;;  %v8296_v29 = vpop.f32.mrf.mxu0 }
 0x336   : > { %8675 = vst [vmem:[#allocation32_spill] sm:$0xff] %v8296_v29  ;;  %v6673_v5 = vpop.f32.mrf.mxu1 }
 0x337   : > { %v8299_v2 = vadd.f32 %v6672_v45, %v8123_v33  ;;  %v8301_v3 = vpop.f32.mrf.mxu0 }
 0x338   : > { %v6674_v0 = vpop.f32.mrf.mxu1 }
 0x339   : > { %8676 = vst [vmem:[#allocation33_spill] sm:$0xff] %v8299_v2  ;;  %v6675_v37 = vadd.f32 %v6674_v0, %v6673_v5  ;;  %v8303_v61 = vpop.f32.mrf.mxu0 }
 0x33a   : > { %v6676_v55 = vpop.f32.mrf.mxu1 }
 0x33b   : > { %v8306_v15 = vadd.f32 %v6675_v37, %v8126_v53  ;;  %v8308_v31 = vpop.f32.mrf.mxu0 }
 0x33c   : > { %8678 = vst [vmem:[#allocation35_spill] sm:$0xff] %v8308_v31  ;;  %v6677_v46 = vpop.f32.mrf.mxu1 }
 0x33d   : > { %8677 = vst [vmem:[#allocation34_spill] sm:$0xff] %v8306_v15  ;;  %v6678_v51 = vadd.f32 %v6677_v46, %v6676_v55  ;;  %v8310_v49 = vpop.f32.mrf.mxu0 }
 0x33e   : > { %v6679_v29 = vpop.f32.mrf.mxu1 }
 0x33f   : > { %v8313_v33 = vadd.f32 %v6678_v51, %v8129_v26  ;;  %v8315_v45 = vpop.f32.mrf.mxu0 }
 0x340   : > { %8680 = vst [vmem:[#allocation37_spill] sm:$0xff] %v8315_v45  ;;  %v6680_v2 = vpop.f32.mrf.mxu1 }
 0x341   : > { %8679 = vst [vmem:[#allocation36_spill] sm:$0xff] %v8313_v33  ;;  %v6681_v5 = vadd.f32 %v6680_v2, %v6679_v29  ;;  %v8317_v0 = vpop.f32.mrf.mxu0 }
 0x342   : > { %8681 = vst [vmem:[#allocation38_spill] sm:$0xff] %v8317_v0  ;;  %v6682_v7 = vpop.f32.mrf.mxu1 }
 0x343   : > { %v8320_v53 = vadd.f32 %v6681_v5, %v8132_v27  ;;  %v8322_v31 = vpop.f32.mrf.mxu0 }
 0x344   : > { %v6683_v37 = vpop.f32.mrf.mxu1  ;;  %8683 = vst [vmem:[#allocation40_spill] sm:$0xff] %v8322_v31 }
 0x345   : > { %8682 = vst [vmem:[#allocation39_spill] sm:$0xff] %v8320_v53  ;;  %v6684_v15 = vadd.f32 %v6683_v37, %v6682_v7  ;;  %v8327_v33 = vpop.f32.mrf.mxu0 }
 0x346   : > { %v6685_v55 = vpop.f32.mrf.mxu1  ;;  %8685 = vst [vmem:[#allocation42_spill] sm:$0xff] %v8327_v33 }
 0x347   : > { %v8325_v46 = vadd.f32 %v6684_v15, %v8135_v50  ;;  %v8332_v27 = vpop.f32.mrf.mxu0 }
 0x348   : > { %v6686_v26 = vpop.f32.mrf.mxu1 }
 0x349   : > { %8684 = vst [vmem:[#allocation41_spill] sm:$0xff] %v8325_v46  ;;  %v6687_v51 = vadd.f32 %v6686_v26, %v6685_v55  ;;  %v8337_v50 = vpop.f32.mrf.mxu0 }
 0x34a   : > { %v6688_v45 = vpop.f32.mrf.mxu1 }
 0x34b   : > { %v8330_v29 = vadd.f32 %v6687_v51, %v8138_v13  ;;  %v8342_v13 = vpop.f32.mrf.mxu0 }
 0x34c   : > { %v6689_v2 = vpop.f32.mrf.mxu1  ;;  %8689 = vst [vmem:[#allocation46_spill] sm:$0xff] %v8342_v13 }
 0x34d   : > { %8686 = vst [vmem:[#allocation43_spill] sm:$0xff] %v8330_v29  ;;  %v6690_v0 = vadd.f32 %v6689_v2, %v6688_v45  ;;  %v8690_v45 = vld [vmem:[#allocation18_spill] sm:$0xff] }
 0x34e   : > { %v6691_v5 = vpop.f32.mrf.mxu1 }
 0x34f   : > { %v8335_v7 = vadd.f32 %v6690_v0, %v8141_v9  ;;  %v8347_v9 = vpop.f32.mrf.mxu0 }
 0x350   : > { %v6692_v37 = vpop.f32.mrf.mxu1 }
 0x351   : > { %8687 = vst [vmem:[#allocation44_spill] sm:$0xff] %v8335_v7  ;;  %v6693_v53 = vadd.f32 %v6692_v37, %v6691_v5  ;;  %v8691_v5 = vld [vmem:[#allocation19_spill] sm:$0xff] }
 0x352   : > { %v6694_v15 = vpop.f32.mrf.mxu1 }
 0x353   : > { %v8340_v55 = vadd.f32 %v6693_v53, %v8144_v39  ;;  %v8352_v39 = vpop.f32.mrf.mxu0 }
 0x354   : > { %v6695_v26 = vpop.f32.mrf.mxu1 }
 0x355   : > { %8688 = vst [vmem:[#allocation45_spill] sm:$0xff] %v8340_v55  ;;  %v6696_v46 = vadd.f32 %v6695_v26, %v6694_v15  ;;  %v8692_v15 = vld [vmem:[#allocation20_spill] sm:$0xff] }
 0x356   : > { %v6697_v51 = vpop.f32.mrf.mxu1 }
 0x357   : > { %v8345_v2 = vadd.f32 %v6696_v46, %v8690_v45  ;;  %v8357_v46 = vpop.f32.mrf.mxu0 }
 0x358   : > { %v6698_v29 = vpop.f32.mrf.mxu1 }
 0x359   : > { %v6699_v33 = vadd.f32 %v6698_v29, %v6697_v51  ;;  %v6733_v29 = vadd.f32 %v8178_v11, %v8172_v18 }
 0x35a   : > { %v6700_v0 = vpop.f32.mrf.mxu1 }
 0x35b   : > { %v8350_v37 = vadd.f32 %v6699_v33, %v8691_v5 }
 0x35c   : > { %v6701_v7 = vpop.f32.mrf.mxu1 }
 0x35d   : > { %v6702_v31 = vadd.f32 %v6701_v7, %v6700_v0  ;;  %v6736_v7 = vadd.f32 %v8185_v35, %v8183_v14  ;;  %v8370_v0 = vpop.f32.mrf.mxu0  ;;  %v6739_v14 = vadd.f32 %v8194_v40, %v8190_v59 }
 0x35e   : > { %v6703_v53 = vpop.f32.mrf.mxu1 }
 0x35f   : > { %v8355_v26 = vadd.f32 %v6702_v31, %v8692_v15  ;;  %v4504_v15 = vadd.f32 %v6736_v7, %v8170_v52  ;;  %v6742_v7 = vadd.f32 %v8201_v58, %v8199_v20  ;;  %v6757_v20 = vadd.f32 %v8242_v8, %v8238_v42 }
 0x360   : > { %v6704_v55 = vpop.f32.mrf.mxu1 }
 0x361   : > { %8693 = vst [vmem:[#allocation18_spill] sm:$0xff] %v8355_v26  ;;  %v6705_v13 = vadd.f32 %v6704_v55, %v6703_v53  ;;  %v4501_v55 = vadd.f32 %v6733_v29, %v8165_v1  ;;  %v8374_v26 = vpop.f32.mrf.mxu0  ;;  %v6748_v1 = vadd.f32 %v8217_v19, %v8215_v22  ;;  %v4509_v22 = vadd.f32 %v6739_v14, %v8181_v16 }
 0x362   : > { %v8359_v45 = vpop.f32.mrf.mxu1  ;;  %v6760_v16 = vadd.f32 %v8249_v21, %v8247_v4 }
 0x363   : > { %v8364_v33 = vadd.f32 %v6705_v13, %v8158_v41  ;;  %v6745_v41 = vadd.f32 %v8210_v6, %v8206_v30  ;;  %v4520_v19 = vadd.f32 %v6748_v1, %v8204_v23  ;;  %v6754_v1 = vadd.f32 %v8233_v57, %v8231_v34 }
 0x364   : > { %v8366_v51 = vpop.f32.mrf.mxu1  ;;  %v4536_v4 = vadd.f32 %v6760_v16, %v8236_v62  ;;  %v6769_v34 = vadd.f32 %v8274_v12, %v8270_v54 }
 0x366   : > { %v6959_v31 = vpop.f32.mrf.mxu1 }
 0x367   : > { %v4662_v53 = vadd.f32 %v6959_v31, %v4501_v55  ;;  %v8386_v55 = vpop.f32.mrf.mxu0 }
 0x368   : > { %v4653_v5 = vpop.f32.mrf.mxu1 }
 0x369   : > { %v4654_v11 = vadd.f32 %v4653_v5, %v8167_v32  ;;  %v4782_v29 = vmax.f32 %v4662_v53, 0.0  ;;  %v8391_v53 = vpop.f32.mrf.mxu0 }
 0x36a   : > { %v6960_v18 = vpop.f32.mrf.mxu1 }
 0x36b   : > { %v4665_v13 = vadd.f32 %v6960_v18, %v4504_v15  ;;  %v4780_v6 = vmax.f32 %v4654_v11, 0.0  ;;  %v4517_v15 = vadd.f32 %v6745_v41, %v8197_v17  ;;  %v4512_v11 = vadd.f32 %v6742_v7, %v8188_v24  ;;  %v8402_v42 = vpop.f32.mrf.mxu0 }
 0x36c   : > { %v4656_v35 = vpop.f32.mrf.mxu1  ;;  %v6751_v17 = vadd.f32 %v8226_v38, %v8222_v36 }
 0x36d   : > { %v4783_v31 = vmax.f32 %v4665_v13, 0.0  ;;  %v4657_v52 = vadd.f32 %v4656_v35, %v8175_v10  ;;  %v8407_v21 = vpop.f32.mrf.mxu0 }
 0x36e   : > { %v6963_v30 = vpop.f32.mrf.mxu1 }
 0x36f   : > { %v4813_v32 = vpack.c.bf16 %v4783_v31, %v4782_v29  ;;  %v4781_v5 = vmax.f32 %v4657_v52, 0.0  ;;  %v4678_v18 = vadd.f32 %v6963_v30, %v4517_v15  ;;  %v4533_v52 = vadd.f32 %v6757_v20, %v8229_v63  ;;  %v8418_v54 = vpop.f32.mrf.mxu0  ;;  %v8695_v20 = vld [vmem:[#allocation24_spill] sm:$0xff] }
 0x370   : > { %v4669_v59 = vpop.f32.mrf.mxu1  ;;  %v4525_v30 = vadd.f32 %v6751_v17, %v8213_v56  ;;  %v6763_v63 = vadd.f32 %v8258_v44, %v8254_v48  ;;  %v6772_v56 = vadd.f32 %v8281_v28, %v8279_v43  ;;  %v8697_v43 = vld [vmem:[#allocation26_spill] sm:$0xff] }
 0x371   : > { %v4812_v40 = vpack.c.bf16 %v4781_v5, %v4780_v6  ;;  %v4670_v58 = vadd.f32 %v4669_v59, %v4509_v22  ;;  %v4786_v23 = vmax.f32 %v4678_v18, 0.0  ;;  %v4528_v5 = vadd.f32 %v6754_v1, %v8220_v47  ;;  %v8694_v18 = vld [vmem:[#allocation25_spill] sm:$0xff] }
 0x372   : > { %v6964_v10 = vpop.f32.mrf.mxu1  ;;  %v6766_v22 = vadd.f32 %v8694_v18, %v8263_v25  ;;  %v4552_v28 = vadd.f32 %v6772_v56, %v8697_v43  ;;  %v6781_v25 = vadd.f32 %v8303_v61, %v8301_v3 }
 0x373   : > { %v4681_v13 = vadd.f32 %v6964_v10, %v4520_v19  ;;  %7005 = vmatprep.mubr.bf16.mxu0 %v4812_v40  ;;  %v4784_v29 = vmax.f32 %v4670_v58, 0.0  ;;  %v4549_v58 = vadd.f32 %v6769_v34, %v8695_v20 }
 0x374   : > { %v4672_v41 = vpop.f32.mrf.mxu1  ;;  %7006 = vmatmul.mubr.bf16.vlgmr.msra.gmra.mxu0 %v4813_v32 }
 0x375   : > { %v4787_v14 = vmax.f32 %v4681_v13, 0.0  ;;  %v4673_v35 = vadd.f32 %v4672_v41, %v4512_v11  ;;  %v8696_v11 = vld [vmem:[#allocation22_spill] sm:$0xff]  ;;  %v8423_v41 = vpop.f32.mrf.mxu0 }
 0x376   : > { %v6967_v8 = vpop.f32.mrf.mxu1  ;;  %v4541_v17 = vadd.f32 %v6763_v63, %v8696_v11  ;;  %v8709_v11 = vld [vmem:[#allocation46_spill] sm:$0xff] }
 0x377   : > { %v4815_v31 = vpack.c.bf16 %v4787_v14, %v4786_v23  ;;  %v4785_v24 = vmax.f32 %v4673_v35, 0.0  ;;  %v4694_v7 = vadd.f32 %v6967_v8, %v4533_v52  ;;  %v8698_v35 = vld [vmem:[#allocation23_spill] sm:$0xff]  ;;  %v8699_v8 = vld [vmem:[#allocation29_spill] sm:$0xff]  ;;  %v8434_v3 = vpop.f32.mrf.mxu0 }
 0x378   : > { %v4685_v36 = vpop.f32.mrf.mxu1  ;;  %v4544_v1 = vadd.f32 %v6766_v22, %v8698_v35 }
 0x379   : > { %v4814_v38 = vpack.c.bf16 %v4785_v24, %v4784_v29  ;;  %v4686_v57 = vadd.f32 %v4685_v36, %v4525_v30  ;;  %v4790_v62 = vmax.f32 %v4694_v7, 0.0  ;;  %v6775_v29 = vadd.f32 %v8699_v8, %v8286_v60  ;;  %v8700_v24 = vld [vmem:[#allocation35_spill] sm:$0xff]  ;;  %v8439_v18 = vpop.f32.mrf.mxu0 }
 0x37a   : > { %v6968_v6 = vpop.f32.mrf.mxu1  ;;  %v6784_v52 = vadd.f32 %v8310_v49, %v8700_v24  ;;  %v8701_v30 = vld [vmem:[#allocation31_spill] sm:$0xff]  ;;  %v8705_v49 = vld [vmem:[#allocation33_spill] sm:$0xff] }
 0x37b   : > { %v4697_v32 = vadd.f32 %v6968_v6, %v4536_v4  ;;  %7009 = vmatprep.mubr.bf16.mxu0 %v4814_v38  ;;  %v4788_v19 = vmax.f32 %v4686_v57, 0.0  ;;  %v8702_v4 = vld [vmem:[#allocation32_spill] sm:$0xff] }
 0x37c   : > { %v4688_v15 = vpop.f32.mrf.mxu1  ;;  %7010 = vmatmul.mubr.bf16.gmra.mxu0 %v4815_v31  ;;  %v6778_v6 = vadd.f32 %v8702_v4, %v8701_v30  ;;  %v8714_v30 = vld [vmem:[#allocation41_spill] sm:$0xff] }
 0x37d   : > { %v4791_v59 = vmax.f32 %v4697_v32, 0.0  ;;  %v4689_v40 = vadd.f32 %v4688_v15, %v4528_v5  ;;  %v8703_v5 = vld [vmem:[#allocation30_spill] sm:$0xff] }
 0x37e   : > { %v6971_v12 = vpop.f32.mrf.mxu1  ;;  %v4565_v63 = vadd.f32 %v6781_v25, %v8703_v5  ;;  %v8710_v25 = vld [vmem:[#allocation40_spill] sm:$0xff] }
 0x37f   : > { %v4817_v10 = vpack.c.bf16 %v4791_v59, %v4790_v62  ;;  %v4789_v47 = vmax.f32 %v4689_v40, 0.0  ;;  %v4710_v13 = vadd.f32 %v6971_v12, %v4549_v58  ;;  %v8704_v62 = vld [vmem:[#allocation27_spill] sm:$0xff]  ;;  %v4568_v40 = vadd.f32 %v6784_v52, %v8705_v49  ;;  %v8707_v58 = vld [vmem:[#allocation37_spill] sm:$0xff] }
 0x380   : > { %v4701_v48 = vpop.f32.mrf.mxu1  ;;  %v4557_v59 = vadd.f32 %v6775_v29, %v8704_v62  ;;  %v6793_v12 = vadd.f32 %v8337_v50, %v8332_v27  ;;  %v6815_v27 = vpop.f32.mrf.mxu0  ;;  %v8712_v29 = vld [vmem:[#allocation39_spill] sm:$0xff]  ;;  %v6802_v49 = vadd.f32 %v8374_v26, %v8370_v0 }
 0x381   : > { %v4816_v44 = vpack.c.bf16 %v4789_v47, %v4788_v19  ;;  %v4702_v23 = vadd.f32 %v4701_v48, %v4541_v17  ;;  %v4794_v36 = vmax.f32 %v4710_v13, 0.0  ;;  %v8706_v47 = vld [vmem:[#allocation28_spill] sm:$0xff]  ;;  %v8708_v48 = vld [vmem:[#allocation38_spill] sm:$0xff]  ;;  %v6796_v17 = vadd.f32 %v8347_v9, %v8709_v11 }
 0x382   : > { %v6972_v16 = vpop.f32.mrf.mxu1  ;;  %v4560_v20 = vadd.f32 %v6778_v6, %v8706_v47  ;;  %v6816_v4 = vpop.f32.mrf.mxu0  ;;  %v8718_v11 = vld [vmem:[#allocation44_spill] sm:$0xff] }
 0x383   : > { %v4713_v14 = vadd.f32 %v6972_v16, %v4552_v28  ;;  %7013 = vmatprep.mubr.bf16.mxu0 %v4816_v44  ;;  %v4792_v34 = vmax.f32 %v4702_v23, 0.0  ;;  %v6787_v44 = vadd.f32 %v8708_v48, %v8707_v58  ;;  %v8711_v23 = vld [vmem:[#allocation42_spill] sm:$0xff]  ;;  %v4584_v9 = vadd.f32 %v6796_v17, %v8714_v30 }
 0x384   : > { %v4704_v31 = vpop.f32.mrf.mxu1  ;;  %7014 = vmatmul.mubr.bf16.gmra.mxu0 %v4817_v10  ;;  %v6817_v26 = vadd.f32 %v6816_v4, %v6815_v27  ;;  %v4592_v17 = vadd.f32 %v6802_v49, %v8718_v11 }
 0x385   : > { %v4795_v38 = vmax.f32 %v4713_v14, 0.0  ;;  %v4705_v7 = vadd.f32 %v4704_v31, %v4544_v1  ;;  %v6790_v14 = vadd.f32 %v8711_v23, %v8710_v25  ;;  %v4581_v31 = vadd.f32 %v6793_v12, %v8712_v29 }
 0x386   : > { %v6975_v61 = vpop.f32.mrf.mxu1 }
 0x387   : > { %v4819_v57 = vpack.c.bf16 %v4795_v38, %v4794_v36  ;;  %v4793_v32 = vmax.f32 %v4705_v7, 0.0  ;;  %v4726_v56 = vadd.f32 %v6975_v61, %v4565_v63  ;;  %v8713_v38 = vld [vmem:[#allocation34_spill] sm:$0xff]  ;;  %v6805_v61 = vadd.f32 %v8391_v53, %v8386_v55  ;;  %v6818_v55 = vpop.f32.mrf.mxu0 }
 0x388   : > { %v4717_v60 = vpop.f32.mrf.mxu1  ;;  %v4573_v7 = vadd.f32 %v6787_v44, %v8713_v38  ;;  %v6799_v63 = vadd.f32 %v8357_v46, %v8352_v39 }
 0x389   : > { %v4818_v15 = vpack.c.bf16 %v4793_v32, %v4792_v34  ;;  %v4718_v19 = vadd.f32 %v4717_v60, %v4557_v59  ;;  %v4798_v43 = vmax.f32 %v4726_v56, 0.0  ;;  %v8715_v32 = vld [vmem:[#allocation36_spill] sm:$0xff]  ;;  %v6819_v48 = vpop.f32.mrf.mxu0 }
 0x38a   : > { %v6976_v22 = vpop.f32.mrf.mxu1  ;;  %v4576_v5 = vadd.f32 %v6790_v14, %v8715_v32  ;;  %v8719_v14 = vld [vmem:[#allocation21_spill] sm:$0xff] }
 0x38b   : > { %v4729_v10 = vadd.f32 %v6976_v22, %v4568_v40  ;;  %7017 = vmatprep.mubr.bf16.mxu0 %v4818_v15  ;;  %v4796_v35 = vmax.f32 %v4718_v19, 0.0  ;;  %v6808_v15 = vadd.f32 %v8407_v21, %v8402_v42  ;;  %v8716_v19 = vld [vmem:[#allocation45_spill] sm:$0xff]  ;;  %v6708_v21 = vadd.f32 %v8366_v51, %v8359_v45 }
 0x38c   : > { %v4720_v13 = vpop.f32.mrf.mxu1  ;;  %7018 = vmatmul.mubr.bf16.gmra.mxu0 %v4819_v57  ;;  %v6814_v45 = vadd.f32 %v8439_v18, %v8434_v3 }
 0x38d   : > { %v4799_v28 = vmax.f32 %v4729_v10, 0.0  ;;  %v4721_v16 = vadd.f32 %v4720_v13, %v4560_v20  ;;  %v4597_v10 = vadd.f32 %v6805_v61, %v8716_v19  ;;  %v8717_v20 = vld [vmem:[#allocation43_spill] sm:$0xff]  ;;  %v4600_v42 = vadd.f32 %v6808_v15, %v8345_v2 }
 0x38e   : > { %v6979_v50 = vpop.f32.mrf.mxu1  ;;  %v4589_v58 = vadd.f32 %v6799_v63, %v8717_v20 }
 0x38f   : > { %v4821_v1 = vpack.c.bf16 %v4799_v28, %v4798_v43  ;;  %v4797_v8 = vmax.f32 %v4721_v16, 0.0  ;;  %v4742_v36 = vadd.f32 %v6979_v50, %v4581_v31  ;;  %v6811_v43 = vadd.f32 %v8423_v41, %v8418_v54 }
 0x390   : > { %v4733_v24 = vpop.f32.mrf.mxu1  ;;  %v6820_v16 = vadd.f32 %v6819_v48, %v6818_v55  ;;  %v4455_v50 = vadd.f32 %v6708_v21, %v8719_v14 }
 0x391   : > { %v4820_v52 = vpack.c.bf16 %v4797_v8, %v4796_v35  ;;  %v4734_v34 = vadd.f32 %v4733_v24, %v4573_v7  ;;  %v4802_v56 = vmax.f32 %v4742_v36, 0.0  ;;  %v4613_v8 = vadd.f32 %v6817_v26, %v8364_v33  ;;  %v8720_v7 = vld [vmem:[#allocation18_spill] sm:$0xff] }
 0x392   : > { %v6980_v6 = vpop.f32.mrf.mxu1  ;;  %v4605_v41 = vadd.f32 %v6811_v43, %v8350_v37  ;;  %v4616_v24 = vadd.f32 %v6820_v16, %v4455_v50  ;;  %v4608_v30 = vadd.f32 %v6814_v45, %v8720_v7 }
 0x393   : > { %v4745_v57 = vadd.f32 %v6980_v6, %v4584_v9  ;;  %7021 = vmatprep.mubr.bf16.mxu0 %v4820_v52  ;;  %v4800_v40 = vmax.f32 %v4734_v34, 0.0 }
 0x394   : > { %v4736_v60 = vpop.f32.mrf.mxu1  ;;  %7022 = vmatmul.mubr.bf16.gmra.mxu0 %v4821_v1 }
 0x395   : > { %v4803_v62 = vmax.f32 %v4745_v57, 0.0  ;;  %v4737_v59 = vadd.f32 %v4736_v60, %v4576_v5 }
 0x396   : > { %v6983_v53 = vpop.f32.mrf.mxu1 }
 0x397   : > { %v4823_v22 = vpack.c.bf16 %v4803_v62, %v4802_v56  ;;  %v4801_v12 = vmax.f32 %v4737_v59, 0.0  ;;  %v4758_v46 = vadd.f32 %v6983_v53, %v4597_v10 }
 0x398   : > { %v4749_v47 = vpop.f32.mrf.mxu1 }
 0x399   : > { %v4822_v39 = vpack.c.bf16 %v4801_v12, %v4800_v40  ;;  %v4750_v0 = vadd.f32 %v4749_v47, %v4589_v58  ;;  %v4806_v25 = vmax.f32 %v4758_v46, 0.0  ;;  %v8489_v12 = vld [vmem:[%s8638_s6] ss:$0 sm:$0xff] }
 0x39a   : > { %v6984_v44 = vpop.f32.mrf.mxu1 }
 0x39b   : > { %v4761_v13 = vadd.f32 %v6984_v44, %v4600_v42  ;;  %7025 = vmatprep.mubr.bf16.mxu0 %v4822_v39  ;;  %v4804_v27 = vmax.f32 %v4750_v0, 0.0 }
 0x39c   : > { %v4752_v28 = vpop.f32.mrf.mxu1  ;;  %7026 = vmatmul.mubr.bf16.gmra.mxu0 %v4823_v22 }
 0x39d   : > { %v4807_v23 = vmax.f32 %v4761_v13, 0.0  ;;  %v4753_v2 = vadd.f32 %v4752_v28, %v4592_v17 }
 0x39e   : > { %v6987_v51 = vpop.f32.mrf.mxu1 }
 0x39f   : > { %v4825_v35 = vpack.c.bf16 %v4807_v23, %v4806_v25  ;;  %v4805_v1 = vmax.f32 %v4753_v2, 0.0  ;;  %v4774_v54 = vadd.f32 %v6987_v51, %v4613_v8 }
 0x3a0   : > { %v4765_v29 = vpop.f32.mrf.mxu1 }
 0x3a1   : > { %v4824_v31 = vpack.c.bf16 %v4805_v1, %v4804_v27  ;;  %v4766_v36 = vadd.f32 %v4765_v29, %v4605_v41  ;;  %v4810_v3 = vmax.f32 %v4774_v54, 0.0 }
 0x3a2   : > { %v6988_v52 = vpop.f32.mrf.mxu1 }
 0x3a3   : > { %v4777_v38 = vadd.f32 %v6988_v52, %v4616_v24  ;;  %7029 = vmatprep.mubr.bf16.mxu0 %v4824_v31  ;;  %v4808_v6 = vmax.f32 %v4766_v36, 0.0 }
 0x3a4   : > { %v4768_v9 = vpop.f32.mrf.mxu1  ;;  %7030 = vmatmul.mubr.bf16.gmra.mxu0 %v4825_v35 }
 0x3a5   : > { %v4811_v18 = vmax.f32 %v4777_v38, 0.0  ;;  %v4769_v4 = vadd.f32 %v4768_v9, %v4608_v30 }
 0x3a7   : > { %v4827_v61 = vpack.c.bf16 %v4811_v18, %v4810_v3  ;;  %v4809_v33 = vmax.f32 %v4769_v4, 0.0 }
 0x3a9   : > { %v4826_v34 = vpack.c.bf16 %v4809_v33, %v4808_v6 }
 0x3ab   : > { %7033 = vmatprep.mubr.bf16.mxu0 %v4826_v34 }
 0x3ac   : > { %7034 = vmatmul.mubr.bf16.gmra.mxu0 %v4827_v61 }
 0x3af   : > { %v7055_v57 = vpop.f32.mrf.mxu1 }
 0x3b1   : > { %v5158_v37 = vpop.f32.mrf.mxu1 }
 0x3b3   : > { %v7056_v32 = vpop.f32.mrf.mxu1 }
 0x3b5   : > { %v5161_v5 = vpop.f32.mrf.mxu1 }
 0x3b7   : > { %v7059_v63 = vpop.f32.mrf.mxu1 }
 0x3b9   : > { %v5174_v60 = vpop.f32.mrf.mxu1 }
 0x3bb   : > { %v7060_v15 = vpop.f32.mrf.mxu1 }
 0x3bd   : > { %v5177_v56 = vpop.f32.mrf.mxu1 }
 0x3bf   : > { %v7063_v62 = vpop.f32.mrf.mxu1 }
 0x3c1   : > { %v5190_v59 = vpop.f32.mrf.mxu1 }
 0x3c3   : > { %v8476_v49 = vpop.f32.mrf.mxu1 }
 0x3c5   : > { %v8478_v55 = vpop.f32.mrf.mxu1 }
 0x3c7   : > { %v8480_v53 = vpop.f32.mrf.mxu1 }
 0x3c9   : > { %v8482_v40 = vpop.f32.mrf.mxu1 }
 0x3cb   : > { %v8484_v22 = vpop.f32.mrf.mxu1 }
 0x3cd   : > { %v8491_v10 = vpop.f32.mrf.mxu1 }
 0x3cf   : > { %v8495_v42 = vpop.f32.mrf.mxu1 }
 0x3d1   : > { %v8504_v43 = vpop.f32.mrf.mxu1 }
 0x3d3   : > { %v8510_v51 = vpop.f32.mrf.mxu1 }
 0x3d5   : > { %v8516_v24 = vpop.f32.mrf.mxu1 }
 0x3d7   : > { %v8522_v4 = vpop.f32.mrf.mxu1 }
 0x434   : > { %v7007_v19 = vpop.f32.mrf.mxu0 }
 0x435   : > { %v4942_v47 = vadd.f32 %v7007_v19, %v8489_v12 }
 0x436   : > { %v4933_v39 = vpop.f32.mrf.mxu0 }
 0x437   : > { %v5287_v46 = vadd.f32 %v7055_v57, %v4942_v47  ;;  %v4934_v20 = vadd.f32 %v8489_v12, %v4933_v39 }
 0x438   : > { %v7008_v58 = vpop.f32.mrf.mxu0 }
 0x439   : > { %v5319_v21 = vmax.f32 %v5287_v46, 0.0  ;;  %v5285_v48 = vadd.f32 %v5158_v37, %v4934_v20  ;;  %v4945_v44 = vadd.f32 %v7008_v58, %v8489_v12 }
 0x43a   : > { %v4936_v26 = vpop.f32.mrf.mxu0 }
 0x43b   : > { %5351 = vst [vmem:[%s8500_s22 + $0x10] sm:$0xff] %v5319_v21  ;;  %v5317_v0 = vmax.f32 %v5285_v48, 0.0  ;;  %v5288_v13 = vadd.f32 %v7056_v32, %v4945_v44  ;;  %v4937_v11 = vadd.f32 %v8489_v12, %v4936_v26 }
 0x43c   : > { %v7011_v17 = vpop.f32.mrf.mxu0 }
 0x43d   : > { %5349 = vst [vmem:[%s8500_s22] sm:$0xff] %v5317_v0  ;;  %v5320_v28 = vmax.f32 %v5288_v13, 0.0  ;;  %v5286_v16 = vadd.f32 %v5161_v5, %v4937_v11  ;;  %v4958_v25 = vadd.f32 %v7011_v17, %v8489_v12 }
 0x43e   : > { %v4949_v23 = vpop.f32.mrf.mxu0 }
 0x43f   : > { %5352 = vst [vmem:[%s8500_s22 + $0x18] sm:$0xff] %v5320_v28  ;;  %v5318_v2 = vmax.f32 %v5286_v16, 0.0  ;;  %v5291_v14 = vadd.f32 %v7059_v63, %v4958_v25  ;;  %v4950_v50 = vadd.f32 %v8489_v12, %v4949_v23  ;;  %v5238_v63 = vpop.f32.mrf.mxu1 }
 0x440   : > { %v7012_v45 = vpop.f32.mrf.mxu0 }
 0x441   : > { %5350 = vst [vmem:[%s8500_s22 + $0x8] sm:$0xff] %v5318_v2  ;;  %v5323_v27 = vmax.f32 %v5291_v14, 0.0  ;;  %v5289_v35 = vadd.f32 %v5174_v60, %v4950_v50  ;;  %v4961_v1 = vadd.f32 %v7012_v45, %v8489_v12  ;;  %v7076_v39 = vpop.f32.mrf.mxu1 }
 0x442   : > { %v4952_v8 = vpop.f32.mrf.mxu0 }
 0x443   : > { %5355 = vst [vmem:[%s8500_s22 + $0x30] sm:$0xff] %v5323_v27  ;;  %v5321_v29 = vmax.f32 %v5289_v35, 0.0  ;;  %v5292_v31 = vadd.f32 %v7060_v15, %v4961_v1  ;;  %v4953_v54 = vadd.f32 %v8489_v12, %v4952_v8  ;;  %v5241_v26 = vpop.f32.mrf.mxu1 }
 0x444   : > { %v7015_v41 = vpop.f32.mrf.mxu0 }
 0x445   : > { %5353 = vst [vmem:[%s8500_s22 + $0x20] sm:$0xff] %v5321_v29  ;;  %v5324_v52 = vmax.f32 %v5292_v31, 0.0  ;;  %v5290_v36 = vadd.f32 %v5177_v56, %v4953_v54  ;;  %v4974_v38 = vadd.f32 %v7015_v41, %v8489_v12  ;;  %v7079_v25 = vpop.f32.mrf.mxu1 }
 0x446   : > { %v4965_v7 = vpop.f32.mrf.mxu0 }
 0x447   : > { %5356 = vst [vmem:[%s8500_s22 + $0x38] sm:$0xff] %v5324_v52  ;;  %v5322_v30 = vmax.f32 %v5290_v36, 0.0  ;;  %v5295_v9 = vadd.f32 %v7063_v62, %v4974_v38  ;;  %v4966_v3 = vadd.f32 %v8489_v12, %v4965_v7  ;;  %v5254_v35 = vpop.f32.mrf.mxu1 }
 0x448   : > { %v7016_v18 = vpop.f32.mrf.mxu0 }
 0x449   : > { %5354 = vst [vmem:[%s8500_s22 + $0x28] sm:$0xff] %v5322_v30  ;;  %v5327_v6 = vmax.f32 %v5295_v9, 0.0  ;;  %v5293_v61 = vadd.f32 %v5190_v59, %v4966_v3  ;;  %v4977_v33 = vadd.f32 %v7016_v18, %v8489_v12  ;;  %v7080_v52 = vpop.f32.mrf.mxu1 }
 0x44a   : > { %v4968_v34 = vpop.f32.mrf.mxu0 }
 0x44b   : > { %5359 = vst [vmem:[%s8500_s22 + $0x50] sm:$0xff] %v5327_v6  ;;  %v5325_v57 = vmax.f32 %v5293_v61, 0.0  ;;  %v5296_v37 = vadd.f32 %v8476_v49, %v4977_v33  ;;  %v4969_v32 = vadd.f32 %v8489_v12, %v4968_v34  ;;  %v5257_v6 = vpop.f32.mrf.mxu1 }
 0x44c   : > { %v7019_v5 = vpop.f32.mrf.mxu0 }
 0x44d   : > { %5357 = vst [vmem:[%s8500_s22 + $0x40] sm:$0xff] %v5325_v57  ;;  %v5328_v60 = vmax.f32 %v5296_v37, 0.0  ;;  %v5294_v15 = vadd.f32 %v8478_v55, %v4969_v32  ;;  %v4990_v56 = vadd.f32 %v7019_v5, %v8489_v12 }
 0x44e   : > { %v4981_v62 = vpop.f32.mrf.mxu0 }
 0x44f   : > { %5360 = vst [vmem:[%s8500_s22 + $0x58] sm:$0xff] %v5328_v60  ;;  %v5326_v59 = vmax.f32 %v5294_v15, 0.0  ;;  %v5299_v19 = vadd.f32 %v8480_v53, %v4990_v56  ;;  %v4982_v47 = vadd.f32 %v8489_v12, %v4981_v62 }
 0x450   : > { %v7020_v49 = vpop.f32.mrf.mxu0 }
 0x451   : > { %5358 = vst [vmem:[%s8500_s22 + $0x48] sm:$0xff] %v5326_v59  ;;  %v5331_v46 = vmax.f32 %v5299_v19, 0.0  ;;  %v5297_v20 = vadd.f32 %v8482_v40, %v4982_v47  ;;  %v4993_v58 = vadd.f32 %v7020_v49, %v8489_v12 }
 0x452   : > { %v4984_v55 = vpop.f32.mrf.mxu0 }
 0x453   : > { %5363 = vst [vmem:[%s8500_s22 + $0x70] sm:$0xff] %v5331_v46  ;;  %v5329_v21 = vmax.f32 %v5297_v20, 0.0  ;;  %v5300_v48 = vadd.f32 %v8484_v22, %v4993_v58  ;;  %v4985_v44 = vadd.f32 %v8489_v12, %v4984_v55 }
 0x454   : > { %v7023_v53 = vpop.f32.mrf.mxu0 }
 0x455   : > { %5361 = vst [vmem:[%s8500_s22 + $0x60] sm:$0xff] %v5329_v21  ;;  %v5332_v0 = vmax.f32 %v5300_v48, 0.0  ;;  %v5298_v13 = vadd.f32 %v8491_v10, %v4985_v44  ;;  %v5006_v11 = vadd.f32 %v7023_v53, %v8489_v12 }
 0x456   : > { %v4997_v40 = vpop.f32.mrf.mxu0 }
 0x457   : > { %5364 = vst [vmem:[%s8500_s22 + $0x78] sm:$0xff] %v5332_v0  ;;  %v5330_v17 = vmax.f32 %v5298_v13, 0.0  ;;  %v5303_v28 = vadd.f32 %v8495_v42, %v5006_v11  ;;  %v4998_v16 = vadd.f32 %v8489_v12, %v4997_v40 }
 0x458   : > { %v7024_v22 = vpop.f32.mrf.mxu0 }
 0x459   : > { %5362 = vst [vmem:[%s8500_s22 + $0x68] sm:$0xff] %v5330_v17  ;;  %v5335_v23 = vmax.f32 %v5303_v28, 0.0  ;;  %v5301_v2 = vadd.f32 %v8504_v43, %v4998_v16  ;;  %v5009_v14 = vadd.f32 %v7024_v22, %v8489_v12 }
 0x45a   : > { %v5000_v10 = vpop.f32.mrf.mxu0 }
 0x45b   : > { %5367 = vst [vmem:[%s8500_s22 + $0x90] sm:$0xff] %v5335_v23  ;;  %v5333_v50 = vmax.f32 %v5301_v2, 0.0  ;;  %v5304_v45 = vadd.f32 %v8510_v51, %v5009_v14  ;;  %v5001_v27 = vadd.f32 %v8489_v12, %v5000_v10 }
 0x45c   : > { %v7027_v42 = vpop.f32.mrf.mxu0 }
 0x45d   : > { %5365 = vst [vmem:[%s8500_s22 + $0x80] sm:$0xff] %v5333_v50  ;;  %v5336_v1 = vmax.f32 %v5304_v45, 0.0  ;;  %v5302_v8 = vadd.f32 %v8516_v24, %v5001_v27  ;;  %v5022_v29 = vadd.f32 %v7027_v42, %v8489_v12 }
 0x45e   : > { %v5013_v43 = vpop.f32.mrf.mxu0 }
 0x45f   : > { %5368 = vst [vmem:[%s8500_s22 + $0x98] sm:$0xff] %v5336_v1  ;;  %v5334_v31 = vmax.f32 %v5302_v8, 0.0  ;;  %v5307_v54 = vadd.f32 %v8522_v4, %v5022_v29  ;;  %v5014_v41 = vadd.f32 %v8489_v12, %v5013_v43 }
 0x460   : > { %v7028_v51 = vpop.f32.mrf.mxu0 }
 0x461   : > { %5366 = vst [vmem:[%s8500_s22 + $0x88] sm:$0xff] %v5334_v31  ;;  %v5339_v36 = vmax.f32 %v5307_v54, 0.0  ;;  %v5305_v38 = vadd.f32 %v5238_v63, %v5014_v41  ;;  %v5025_v7 = vadd.f32 %v7028_v51, %v8489_v12  ;;  %v7083_v63 = vpop.f32.mrf.mxu1 }
 0x462   : > { %v5016_v30 = vpop.f32.mrf.mxu0 }
 0x463   : > { %5371 = vst [vmem:[%s8500_s22 + $0xb0] sm:$0xff] %v5339_v36  ;;  %v5337_v24 = vmax.f32 %v5305_v38, 0.0  ;;  %v5308_v9 = vadd.f32 %v7076_v39, %v5025_v7  ;;  %v5017_v3 = vadd.f32 %v8489_v12, %v5016_v30  ;;  %v5270_v49 = vpop.f32.mrf.mxu1 }
 0x464   : > { %v7031_v18 = vpop.f32.mrf.mxu0 }
 0x465   : > { %5369 = vst [vmem:[%s8500_s22 + $0xa0] sm:$0xff] %v5337_v24  ;;  %v5340_v4 = vmax.f32 %v5308_v9, 0.0  ;;  %v5306_v61 = vadd.f32 %v5241_v26, %v5017_v3  ;;  %v5038_v33 = vadd.f32 %v7031_v18, %v8489_v12  ;;  %v7084_v53 = vpop.f32.mrf.mxu1 }
 0x466   : > { %v5029_v34 = vpop.f32.mrf.mxu0 }
 0x467   : > { %5372 = vst [vmem:[%s8500_s22 + $0xb8] sm:$0xff] %v5340_v4  ;;  %v5338_v57 = vmax.f32 %v5306_v61, 0.0  ;;  %v5311_v37 = vadd.f32 %v7079_v25, %v5038_v33  ;;  %v5030_v32 = vadd.f32 %v8489_v12, %v5029_v34  ;;  %v5273_v22 = vpop.f32.mrf.mxu1 }
 0x468   : > { %v7032_v5 = vpop.f32.mrf.mxu0 }
 0x469   : > { %5370 = vst [vmem:[%s8500_s22 + $0xa8] sm:$0xff] %v5338_v57  ;;  %v5343_v60 = vmax.f32 %v5311_v37, 0.0  ;;  %v5309_v15 = vadd.f32 %v5254_v35, %v5030_v32  ;;  %v5041_v56 = vadd.f32 %v7032_v5, %v8489_v12 }
 0x46a   : > { %v5032_v62 = vpop.f32.mrf.mxu0 }
 0x46b   : > { %5375 = vst [vmem:[%s8500_s22 + $0xd0] sm:$0xff] %v5343_v60  ;;  %v5341_v59 = vmax.f32 %v5309_v15, 0.0  ;;  %v5312_v19 = vadd.f32 %v7080_v52, %v5041_v56  ;;  %v5033_v47 = vadd.f32 %v8489_v12, %v5032_v62 }
 0x46c   : > { %v7035_v39 = vpop.f32.mrf.mxu0 }
 0x46d   : > { %5373 = vst [vmem:[%s8500_s22 + $0xc0] sm:$0xff] %v5341_v59  ;;  %v5344_v46 = vmax.f32 %v5312_v19, 0.0  ;;  %v5310_v20 = vadd.f32 %v5257_v6, %v5033_v47  ;;  %v5054_v58 = vadd.f32 %v7035_v39, %v8489_v12 }
 0x46e   : > { %v5045_v55 = vpop.f32.mrf.mxu0 }
 0x46f   : > { %5376 = vst [vmem:[%s8500_s22 + $0xd8] sm:$0xff] %v5344_v46  ;;  %v5342_v21 = vmax.f32 %v5310_v20, 0.0  ;;  %v5315_v48 = vadd.f32 %v7083_v63, %v5054_v58  ;;  %v5046_v44 = vadd.f32 %v8489_v12, %v5045_v55 }
 0x470   : > { %v7036_v26 = vpop.f32.mrf.mxu0 }
 0x471   : > { %5374 = vst [vmem:[%s8500_s22 + $0xc8] sm:$0xff] %v5342_v21  ;;  %v5347_v0 = vmax.f32 %v5315_v48, 0.0  ;;  %v5313_v13 = vadd.f32 %v5270_v49, %v5046_v44  ;;  %v5057_v11 = vadd.f32 %v7036_v26, %v8489_v12 }
 0x472   : > { %v5048_v40 = vpop.f32.mrf.mxu0 }
 0x473   : > { %5379 = vst [vmem:[%s8500_s22 + $0xf0] sm:$0xff] %v5347_v0  ;;  %v5345_v17 = vmax.f32 %v5313_v13, 0.0  ;;  %v5316_v28 = vadd.f32 %v7084_v53, %v5057_v11  ;;  %v5049_v16 = vadd.f32 %v8489_v12, %v5048_v40 }
 0x475   : > { %5377 = vst [vmem:[%s8500_s22 + $0xe0] sm:$0xff] %v5345_v17  ;;  %v5348_v25 = vmax.f32 %v5316_v28, 0.0  ;;  %v5314_v23 = vadd.f32 %v5273_v22, %v5049_v16 }
 0x477   : > { %5380 = vst [vmem:[%s8500_s22 + $0xf8] sm:$0xff] %v5348_v25  ;;  %v5346_v2 = vmax.f32 %v5314_v23, 0.0 }
 0x479   : > { %5378 = vst [vmem:[%s8500_s22 + $0xe8] sm:$0xff] %v5346_v2 }
 0x47a   : > { %7631 = shalt.err (!%p7628_p5)
}
 0x47b   : > { %s7632_s25 = scalar_lea.hbm %s8585_s18, 4096  ;;  %s7636_s17 = scalar_lea.hbm %s8640_s8, 8192 }
 0x47c   : > { %p7633_p3 = scmp.ne.s32.totalorder %s8585_s18, %s7632_s25  ;;  %p7637_p8 = scmp.lt.s32.totalorder %s8585_s18, %s8640_s8 }
 0x47d   : > { %p7638_p9 = scmp.lt.s32.totalorder %s7636_s17, %s7632_s25 }
 0x47e   : > { %p7634_p4 = pnand %p7633_p3, %p8721_p12 }
 0x47f   : > { %p7639_p2 = por %p7638_p9, %p7637_p8 }
 0x480   : > { %p7635_p6 = pneg %p7634_p4 }
 0x482   : > { %p7640_p10 = pnand %p7639_p2, %p7635_p6 }
 0x484   : > { %7643 = shalt.err (!%p7640_p10)
}
 0x485   : > { %s7704_s3 = smov 128   ;;  %s7705_s19 = smov 8  }
 0x486   : > { %7103 = dma.vmem_to_hbm [thread:$0]  (%p8721_p12), %s8587_s23, 4096, %s8585_s18, %s5382_s11, %s7704_s3, %s7704_s3, %s7705_s19  }
 0x487 PF: > { %s5410_s9 = sand.u32 1, %s7678_s27   ;;  %p8722_p7 = scmp.ne.s32.totalorder %s8648_s12, 0 }
 0x488   : > { %p8723_p1 = scmp.ge.s32.totalorder %s7690_s30, 2  ;;  %s5411_s13 = scalar_lea.sflag [#allocation6], %s5410_s9 }
 0x48a   : > { %p7123_p13 = pnand %p8723_p1, %p8722_p7 }
 0x48c   : > { %p7124_p0 = pneg %p7123_p13 }
 0x48e   : > { %7673 = dma.done.wait (%p7124_p0), %s5411_s13, 4096  }
 0x48f   : > { %7675 = vsyncadd (%p7124_p0), %s5411_s13, 4294963200  ;;  %p23_p11 = scmp.ge.s32.totalorder %s7851_s26, 4   ;;  %s8724_s27 = smov %s7682_s28 }
 0x490   : > { %s8725_s28 = smov %s7686_s29  ;;  %s8726_s29 = smov %s7867_s15 }
 0x491   : > { %s8727_s30 = smov %s7851_s26  ;;  %25 = sbr.rel (!%p23_p11) target bundleno = 10 (0xa), region = 116 }
 0x496   :  { %5416 = vsyncpa [#allocation5], 1 }
 0x497   :  { %5418 = vsyncpa [#allocation5 + $0x1], 1 }
 0x498   :  { %5419 = vsyncpa [#allocation8], 1 }
 0x499   :  { %5420 = vsyncpa [#allocation11], 1 }
 0x49a   :  { %5421 = vsyncpa [#allocation6], 1 }
 0x49b   :  { %5423 = vsyncpa [#allocation6 + $0x1], 1 }

</bundles_post_ra>
